<compile_context>
chip_gen: v6e
topology: v6e:2x2x1
jax: 0.10.0
libtpu: 0.0.40
codegen_flags: <defaults>
</compile_context>

<pallas_src>
import jax
import jax.numpy as jnp
from jax.experimental import pallas as pl
from jax.experimental.pallas import tpu as pltpu

# ---- small, module-consistent shapes (module defaults are L=50, E=768, F=100,
#      kernel_list=(10,20,30)); kept small here but lane-aligned where it matters ----
B = 16            # batch (multiple of TB)
TB = 8            # batch tile per grid step (multiple of 8 -> aligned output blocks)
L = 8             # sequence length (pooling is (L - k + 1, 1), matching the module)
E = 128           # embedding dim (lane-aligned; module uses 768)
F = 8             # real filter_num (module default 100)
F_PAD = 128       # lane-padded filter dim
KERNELS = (2, 3, 4)   # kernel_list (module default (10, 20, 30))
OUT = 4           # output_size
OUT_PAD = 128     # lane-padded output dim
VOCAB = 50        # tiny synthetic vocab for the embedding table
NEG_SLOPE = 0.01  # nn.LeakyReLU default negative_slope


def textcnn_kernel(x_ref, w1_ref, b1_ref, w2_ref, b2_ref, w3_ref, b3_ref,
                   wfc_ref, bfc_ref, out_ref):
    """Fused conv branches + LeakyReLU + max-pool + FC for one batch tile.

    x_ref  : (TB, L, E)            bf16 embeddings (one batch tile)
    wK_ref : (k*E, F_PAD)          bf16 pre-transposed conv weight
    bK_ref : (1, F_PAD)            f32  conv bias (zero-padded)
    wfc_ref: (3*F_PAD, OUT_PAD)    f32  packed FC weight
    bfc_ref: (1, OUT_PAD)          f32  FC bias (zero-padded)
    out_ref: (TB, OUT_PAD)         f32  lane-dense padded logits
    """
    fc_acc = jnp.zeros((TB, OUT_PAD), jnp.float32)

    branches = ((w1_ref, b1_ref, KERNELS[0]),
                (w2_ref, b2_ref, KERNELS[1]),
                (w3_ref, b3_ref, KERNELS[2]))
    for idx, (w_ref, b_ref, k) in enumerate(branches):
        T = L - k + 1
        acc = jnp.zeros((TB, T, F_PAD), jnp.float32)
        # Conv as k shifted (TB,T,E) x (E,F_PAD) MXU contractions, accumulated in f32.
        # Ref-side slices (no value-level sublane relayouts); weight slices are at
        # sublane-aligned offsets dt*E.
        for dt in range(k):
            xs = x_ref[:, pl.ds(dt, T), :]              # (TB, T, E)   bf16
            wdt = w_ref[pl.ds(dt * E, E), :]            # (E, F_PAD)   bf16
            acc = acc + jnp.einsum('bte,ef->btf', xs, wdt,
                                   preferred_element_type=jnp.float32)
        acc = acc + b_ref[...][:, None, :]              # bias broadcast (f32)
        acc = jnp.where(acc > 0, acc, NEG_SLOPE * acc)  # LeakyReLU (f32)
        pooled = jnp.max(acc, axis=1)                   # MaxPool over T -> (TB, F_PAD)

        # FC contribution of this branch (replaces concat + single big matmul).
        w_fc_i = wfc_ref[pl.ds(idx * F_PAD, F_PAD), :]  # (F_PAD, OUT_PAD) f32
        fc_acc = fc_acc + jnp.dot(pooled, w_fc_i,
                                  preferred_element_type=jnp.float32)

    # TODO(synk): nn.Dropout(0.3) is treated as inference-mode identity (no RNG mask).
    out_ref[...] = (fc_acc + bfc_ref[...]).astype(out_ref.dtype)


def pack_params(params):
    """Host-side one-time relayout: pre-transpose, lane-pad, cast conv weights to bf16."""
    packed = {}
    for i, k in enumerate(KERNELS, start=1):
        w = params[f'w{i}'].astype(jnp.float32)               # (k, F, E)
        w = jnp.transpose(w, (0, 2, 1))                       # (k, E, F)
        w = jnp.pad(w, ((0, 0), (0, 0), (0, F_PAD - F)))      # (k, E, F_PAD)
        packed[f'w{i}'] = w.reshape(k * E, F_PAD).astype(jnp.bfloat16)
        b = params[f'b{i}'].astype(jnp.float32)               # (1, F)
        packed[f'b{i}'] = jnp.pad(b, ((0, 0), (0, F_PAD - F)))
    wfc = params['wfc'].astype(jnp.float32)                   # (OUT, 3F)
    wfc_p = jnp.zeros((len(KERNELS) * F_PAD, OUT_PAD), jnp.float32)
    for i in range(len(KERNELS)):
        blk = wfc[:, i * F:(i + 1) * F].T                     # (F, OUT)
        wfc_p = wfc_p.at[i * F_PAD:i * F_PAD + F, :OUT].set(blk)
    packed['wfc'] = wfc_p
    packed['bfc'] = jnp.pad(params['bfc'].astype(jnp.float32),
                            ((0, 0), (0, OUT_PAD - OUT)))
    return packed


def textcnn_forward(x_emb, packed):
    B_ = x_emb.shape[0]
    assert B_ % TB == 0, "batch must be a multiple of the batch tile"
    xb = x_emb.astype(jnp.bfloat16)
    n_steps = B_ // TB

    def _nbytes(a):
        return a.size * a.dtype.itemsize

    conv_flops = 2 * B_ * sum((L - k + 1) * k * E * F_PAD for k in KERNELS)
    fc_flops = 2 * B_ * (len(KERNELS) * F_PAD) * OUT_PAD
    bytes_accessed = (_nbytes(xb)
                      + sum(_nbytes(v) for v in packed.values())
                      + B_ * OUT_PAD * 4)

    def resident(shape):  # full-extent block, stays VMEM-resident across the grid
        return pl.BlockSpec(shape, lambda i: (0, 0))

    in_specs = [
        pl.BlockSpec((TB, L, E), lambda i: (i, 0, 0)),        # x: tiled over batch
        resident((KERNELS[0] * E, F_PAD)), resident((1, F_PAD)),
        resident((KERNELS[1] * E, F_PAD)), resident((1, F_PAD)),
        resident((KERNELS[2] * E, F_PAD)), resident((1, F_PAD)),
        resident((len(KERNELS) * F_PAD, OUT_PAD)), resident((1, OUT_PAD)),
    ]

    out = pl.pallas_call(
        textcnn_kernel,
        out_shape=jax.ShapeDtypeStruct((B_, OUT_PAD), jnp.float32),
        grid_spec=pltpu.PrefetchScalarGridSpec(
            num_scalar_prefetch=0,
            grid=(n_steps,),
            in_specs=in_specs,
            out_specs=pl.BlockSpec((TB, OUT_PAD), lambda i: (i, 0)),
        ),
        compiler_params=pltpu.CompilerParams(
            dimension_semantics=("parallel",)),
        cost_estimate=pl.CostEstimate(flops=conv_flops + fc_flops,
                                      transcendentals=0,
                                      bytes_accessed=bytes_accessed),
    )(xb, packed['w1'], packed['b1'], packed['w2'], packed['b2'],
      packed['w3'], packed['b3'], packed['wfc'], packed['bfc'])

    return out[:, :OUT]   # drop lane padding


def reference_forward(x_emb, params):
    """Pure-JAX replica of the PyTorch forward (eval mode), with the same bf16
    rounding points as the kernel (x and conv weights), f32 everything else."""
    x = x_emb.astype(jnp.bfloat16).astype(jnp.float32)
    Bv = x.shape[0]
    feats = []
    for k, (w, b) in zip(KERNELS, ((params['w1'], params['b1']),
                                   (params['w2'], params['b2']),
                                   (params['w3'], params['b3']))):
        wq = w.astype(jnp.bfloat16).astype(jnp.float32)       # (k, F, E)
        T = L - k + 1
        w_t = jnp.transpose(wq, (1, 0, 2)).reshape(F, k * E)  # (F, k*E)
        rows = []
        for t in range(T):
            win = x[:, t:t + k, :].reshape(Bv, k * E)         # (B, k*E)
            rows.append(win @ w_t.T + b[0])                   # (B, F)
        conv = jnp.stack(rows, axis=1)                        # (B, T, F)
        conv = jnp.where(conv > 0, conv, NEG_SLOPE * conv)
        feats.append(conv.max(axis=1))
    h = jnp.concatenate(feats, axis=-1)                       # (B, 3F)
    return h @ params['wfc'].T + params['bfc'][0]


if __name__ == "__main__":
    key = jax.random.PRNGKey(0)
    keys = jax.random.split(key, 10)

    # Deterministic synthetic parameters (shapes follow the module __init__).
    emb_table = jax.random.normal(keys[0], (VOCAB, E), jnp.float32) * 0.1
    params = {
        'w1': jax.random.normal(keys[1], (KERNELS[0], F, E), jnp.float32) * 0.1,
        'b1': jax.random.normal(keys[2], (1, F), jnp.float32) * 0.1,
        'w2': jax.random.normal(keys[3], (KERNELS[1], F, E), jnp.float32) * 0.1,
        'b2': jax.random.normal(keys[4], (1, F), jnp.float32) * 0.1,
        'w3': jax.random.normal(keys[5], (KERNELS[2], F, E), jnp.float32) * 0.1,
        'b3': jax.random.normal(keys[6], (1, F), jnp.float32) * 0.1,
        'wfc': jax.random.normal(keys[7], (OUT, F * len(KERNELS)), jnp.float32) * 0.1,
        'bfc': jax.random.normal(keys[8], (1, OUT), jnp.float32) * 0.1,
    }

    # inputs_embeds is None -> embedding lookup on input_ids (glue, outside kernel).
    input_ids = jax.random.randint(keys[9], (B, L), 0, VOCAB)
    x_emb = jnp.take(emb_table, input_ids, axis=0)            # (B, L, E)

    packed = pack_params(params)
    logits = textcnn_forward(x_emb, packed)
    logits = jax.block_until_ready(logits)

    ref = reference_forward(x_emb, params)
    assert logits.shape == (B, OUT)
    assert jnp.allclose(logits, ref, atol=2e-3, rtol=2e-2), "mismatch vs reference"

    print("KERNEL_OK")
</pallas_src>

<mosaic_0001>
module attributes {stable_mosaic.version = 11 : i64} {
  func.func @textcnn_kernel(%arg0: i32, %arg1: memref<8x8x128xbf16, #tpu.memory_space<vmem>>, %arg2: memref<256x128xbf16, #tpu.memory_space<vmem>>, %arg3: memref<1x128xf32, #tpu.memory_space<vmem>>, %arg4: memref<384x128xbf16, #tpu.memory_space<vmem>>, %arg5: memref<1x128xf32, #tpu.memory_space<vmem>>, %arg6: memref<512x128xbf16, #tpu.memory_space<vmem>>, %arg7: memref<1x128xf32, #tpu.memory_space<vmem>>, %arg8: memref<384x128xf32, #tpu.memory_space<vmem>>, %arg9: memref<1x128xf32, #tpu.memory_space<vmem>>, %arg10: memref<8x128xf32, #tpu.memory_space<vmem>>) attributes {dimension_semantics = [#tpu.dimension_semantics<parallel>], iteration_bounds = array<i64: 2>, scalar_prefetch = 0 : i64, scratch_operands = 0 : i64, tpu.core_type = #tpu.core_type<tc>, window_params = [{transform_indices = @transform_0, window_bounds = array<i64: 8, 8, 128>}, {pipeline_mode = #tpu.pipeline_mode<synchronous>, transform_indices = @transform_1, window_bounds = array<i64: 256, 128>}, {pipeline_mode = #tpu.pipeline_mode<synchronous>, transform_indices = @transform_2, window_bounds = array<i64: 1, 128>}, {pipeline_mode = #tpu.pipeline_mode<synchronous>, transform_indices = @transform_3, window_bounds = array<i64: 384, 128>}, {pipeline_mode = #tpu.pipeline_mode<synchronous>, transform_indices = @transform_4, window_bounds = array<i64: 1, 128>}, {pipeline_mode = #tpu.pipeline_mode<synchronous>, transform_indices = @transform_5, window_bounds = array<i64: 512, 128>}, {pipeline_mode = #tpu.pipeline_mode<synchronous>, transform_indices = @transform_6, window_bounds = array<i64: 1, 128>}, {pipeline_mode = #tpu.pipeline_mode<synchronous>, transform_indices = @transform_7, window_bounds = array<i64: 384, 128>}, {pipeline_mode = #tpu.pipeline_mode<synchronous>, transform_indices = @transform_8, window_bounds = array<i64: 1, 128>}, {transform_indices = @transform_9, window_bounds = array<i64: 8, 128>}]} {
    %cst = arith.constant 0.000000e+00 : f32
    %0 = vector.broadcast %cst : f32 to vector<8x128xf32>
    %cst_0 = arith.constant 0.000000e+00 : f32
    %1 = vector.broadcast %cst_0 : f32 to vector<8x7x128xf32>
    %c0 = arith.constant 0 : index
    %c0_1 = arith.constant 0 : index
    %c0_2 = arith.constant 0 : index
    %2 = vector.load %arg1[%c0, %c0_1, %c0_2] : memref<8x8x128xbf16, #tpu.memory_space<vmem>>, vector<8x7x128xbf16>
    %c0_3 = arith.constant 0 : index
    %c0_4 = arith.constant 0 : index
    %3 = vector.load %arg2[%c0_3, %c0_4] : memref<256x128xbf16, #tpu.memory_space<vmem>>, vector<128x128xbf16>
    "tpu.trace_start"() <{level = 10 : i32, message = "bte,ef->btf"}> : () -> ()
    %cst_5 = arith.constant dense<0.000000e+00> : vector<8x7x128xf32>
    %4 = tpu.matmul %2, %3, %cst_5 {dimension_numbers = #tpu.dot_dimension_numbers<[2], [0], [0, 1], [1], [0, 0, 0, 1, 1, 1], [], []>} : vector<8x7x128xbf16>, vector<128x128xbf16>, vector<8x7x128xf32> -> vector<8x7x128xf32>
    "tpu.trace_stop"() : () -> ()
    %5 = arith.addf %1, %4 : vector<8x7x128xf32>
    %c0_6 = arith.constant 0 : index
    %c1 = arith.constant 1 : index
    %c0_7 = arith.constant 0 : index
    %6 = vector.load %arg1[%c0_6, %c1, %c0_7] : memref<8x8x128xbf16, #tpu.memory_space<vmem>>, vector<8x7x128xbf16>
    %c128 = arith.constant 128 : index
    %c0_8 = arith.constant 0 : index
    %7 = vector.load %arg2[%c128, %c0_8] : memref<256x128xbf16, #tpu.memory_space<vmem>>, vector<128x128xbf16>
    "tpu.trace_start"() <{level = 10 : i32, message = "bte,ef->btf"}> : () -> ()
    %cst_9 = arith.constant dense<0.000000e+00> : vector<8x7x128xf32>
    %8 = tpu.matmul %6, %7, %cst_9 {dimension_numbers = #tpu.dot_dimension_numbers<[2], [0], [0, 1], [1], [0, 0, 0, 1, 1, 1], [], []>} : vector<8x7x128xbf16>, vector<128x128xbf16>, vector<8x7x128xf32> -> vector<8x7x128xf32>
    "tpu.trace_stop"() : () -> ()
    %9 = arith.addf %5, %8 : vector<8x7x128xf32>
    %c0_10 = arith.constant 0 : index
    %c0_11 = arith.constant 0 : index
    %10 = vector.load %arg3[%c0_10, %c0_11] : memref<1x128xf32, #tpu.memory_space<vmem>>, vector<1x128xf32>
    %11 = vector.shape_cast %10 : vector<1x128xf32> to vector<1x1x128xf32>
    %12 = vector.broadcast %11 : vector<1x1x128xf32> to vector<8x7x128xf32>
    %13 = arith.addf %9, %12 : vector<8x7x128xf32>
    %cst_12 = arith.constant 0.000000e+00 : f32
    %14 = vector.broadcast %cst_12 : f32 to vector<8x7x128xf32>
    %15 = arith.cmpf ogt, %13, %14 : vector<8x7x128xf32>
    %cst_13 = arith.constant 0.00999999977 : f32
    %16 = vector.broadcast %cst_13 : f32 to vector<8x7x128xf32>
    %17 = arith.mulf %16, %13 : vector<8x7x128xf32>
    %18 = arith.select %15, %13, %17 : vector<8x7x128xi1>, vector<8x7x128xf32>
    %cst_14 = arith.constant dense<0xFF800000> : vector<8x128xf32>
    %19 = vector.multi_reduction <maximumf>, %18, %cst_14 [1] : vector<8x7x128xf32> to vector<8x128xf32>
    %c0_15 = arith.constant 0 : index
    %c0_16 = arith.constant 0 : index
    %20 = vector.load %arg8[%c0_15, %c0_16] : memref<384x128xf32, #tpu.memory_space<vmem>>, vector<128x128xf32>
    %cst_17 = arith.constant dense<0.000000e+00> : vector<8x128xf32>
    %21 = tpu.matmul %19, %20, %cst_17 {dimension_numbers = #tpu.dot_dimension_numbers<[1], [0], [0], [1], [0, 0, 1, 1], [], []>} : vector<8x128xf32>, vector<128x128xf32>, vector<8x128xf32> -> vector<8x128xf32>
    %22 = arith.addf %0, %21 : vector<8x128xf32>
    %cst_18 = arith.constant 0.000000e+00 : f32
    %23 = vector.broadcast %cst_18 : f32 to vector<8x6x128xf32>
    %c0_19 = arith.constant 0 : index
    %c0_20 = arith.constant 0 : index
    %c0_21 = arith.constant 0 : index
    %24 = vector.load %arg1[%c0_19, %c0_20, %c0_21] : memref<8x8x128xbf16, #tpu.memory_space<vmem>>, vector<8x6x128xbf16>
    %c0_22 = arith.constant 0 : index
    %c0_23 = arith.constant 0 : index
    %25 = vector.load %arg4[%c0_22, %c0_23] : memref<384x128xbf16, #tpu.memory_space<vmem>>, vector<128x128xbf16>
    "tpu.trace_start"() <{level = 10 : i32, message = "bte,ef->btf"}> : () -> ()
    %cst_24 = arith.constant dense<0.000000e+00> : vector<8x6x128xf32>
    %26 = tpu.matmul %24, %25, %cst_24 {dimension_numbers = #tpu.dot_dimension_numbers<[2], [0], [0, 1], [1], [0, 0, 0, 1, 1, 1], [], []>} : vector<8x6x128xbf16>, vector<128x128xbf16>, vector<8x6x128xf32> -> vector<8x6x128xf32>
    "tpu.trace_stop"() : () -> ()
    %27 = arith.addf %23, %26 : vector<8x6x128xf32>
    %c0_25 = arith.constant 0 : index
    %c1_26 = arith.constant 1 : index
    %c0_27 = arith.constant 0 : index
    %28 = vector.load %arg1[%c0_25, %c1_26, %c0_27] : memref<8x8x128xbf16, #tpu.memory_space<vmem>>, vector<8x6x128xbf16>
    %c128_28 = arith.constant 128 : index
    %c0_29 = arith.constant 0 : index
    %29 = vector.load %arg4[%c128_28, %c0_29] : memref<384x128xbf16, #tpu.memory_space<vmem>>, vector<128x128xbf16>
    "tpu.trace_start"() <{level = 10 : i32, message = "bte,ef->btf"}> : () -> ()
    %cst_30 = arith.constant dense<0.000000e+00> : vector<8x6x128xf32>
    %30 = tpu.matmul %28, %29, %cst_30 {dimension_numbers = #tpu.dot_dimension_numbers<[2], [0], [0, 1], [1], [0, 0, 0, 1, 1, 1], [], []>} : vector<8x6x128xbf16>, vector<128x128xbf16>, vector<8x6x128xf32> -> vector<8x6x128xf32>
    "tpu.trace_stop"() : () -> ()
    %31 = arith.addf %27, %30 : vector<8x6x128xf32>
    %c0_31 = arith.constant 0 : index
    %c2 = arith.constant 2 : index
    %c0_32 = arith.constant 0 : index
    %32 = vector.load %arg1[%c0_31, %c2, %c0_32] : memref<8x8x128xbf16, #tpu.memory_space<vmem>>, vector<8x6x128xbf16>
    %c256 = arith.constant 256 : index
    %c0_33 = arith.constant 0 : index
    %33 = vector.load %arg4[%c256, %c0_33] : memref<384x128xbf16, #tpu.memory_space<vmem>>, vector<128x128xbf16>
    "tpu.trace_start"() <{level = 10 : i32, message = "bte,ef->btf"}> : () -> ()
    %cst_34 = arith.constant dense<0.000000e+00> : vector<8x6x128xf32>
    %34 = tpu.matmul %32, %33, %cst_34 {dimension_numbers = #tpu.dot_dimension_numbers<[2], [0], [0, 1], [1], [0, 0, 0, 1, 1, 1], [], []>} : vector<8x6x128xbf16>, vector<128x128xbf16>, vector<8x6x128xf32> -> vector<8x6x128xf32>
    "tpu.trace_stop"() : () -> ()
    %35 = arith.addf %31, %34 : vector<8x6x128xf32>
    %c0_35 = arith.constant 0 : index
    %c0_36 = arith.constant 0 : index
    %36 = vector.load %arg5[%c0_35, %c0_36] : memref<1x128xf32, #tpu.memory_space<vmem>>, vector<1x128xf32>
    %37 = vector.shape_cast %36 : vector<1x128xf32> to vector<1x1x128xf32>
    %38 = vector.broadcast %37 : vector<1x1x128xf32> to vector<8x6x128xf32>
    %39 = arith.addf %35, %38 : vector<8x6x128xf32>
    %cst_37 = arith.constant 0.000000e+00 : f32
    %40 = vector.broadcast %cst_37 : f32 to vector<8x6x128xf32>
    %41 = arith.cmpf ogt, %39, %40 : vector<8x6x128xf32>
    %cst_38 = arith.constant 0.00999999977 : f32
    %42 = vector.broadcast %cst_38 : f32 to vector<8x6x128xf32>
    %43 = arith.mulf %42, %39 : vector<8x6x128xf32>
    %44 = arith.select %41, %39, %43 : vector<8x6x128xi1>, vector<8x6x128xf32>
    %cst_39 = arith.constant dense<0xFF800000> : vector<8x128xf32>
    %45 = vector.multi_reduction <maximumf>, %44, %cst_39 [1] : vector<8x6x128xf32> to vector<8x128xf32>
    %c128_40 = arith.constant 128 : index
    %c0_41 = arith.constant 0 : index
    %46 = vector.load %arg8[%c128_40, %c0_41] : memref<384x128xf32, #tpu.memory_space<vmem>>, vector<128x128xf32>
    %cst_42 = arith.constant dense<0.000000e+00> : vector<8x128xf32>
    %47 = tpu.matmul %45, %46, %cst_42 {dimension_numbers = #tpu.dot_dimension_numbers<[1], [0], [0], [1], [0, 0, 1, 1], [], []>} : vector<8x128xf32>, vector<128x128xf32>, vector<8x128xf32> -> vector<8x128xf32>
    %48 = arith.addf %22, %47 : vector<8x128xf32>
    %cst_43 = arith.constant 0.000000e+00 : f32
    %49 = vector.broadcast %cst_43 : f32 to vector<8x5x128xf32>
    %c0_44 = arith.constant 0 : index
    %c0_45 = arith.constant 0 : index
    %c0_46 = arith.constant 0 : index
    %50 = vector.load %arg1[%c0_44, %c0_45, %c0_46] : memref<8x8x128xbf16, #tpu.memory_space<vmem>>, vector<8x5x128xbf16>
    %c0_47 = arith.constant 0 : index
    %c0_48 = arith.constant 0 : index
    %51 = vector.load %arg6[%c0_47, %c0_48] : memref<512x128xbf16, #tpu.memory_space<vmem>>, vector<128x128xbf16>
    "tpu.trace_start"() <{level = 10 : i32, message = "bte,ef->btf"}> : () -> ()
    %cst_49 = arith.constant dense<0.000000e+00> : vector<8x5x128xf32>
    %52 = tpu.matmul %50, %51, %cst_49 {dimension_numbers = #tpu.dot_dimension_numbers<[2], [0], [0, 1], [1], [0, 0, 0, 1, 1, 1], [], []>} : vector<8x5x128xbf16>, vector<128x128xbf16>, vector<8x5x128xf32> -> vector<8x5x128xf32>
    "tpu.trace_stop"() : () -> ()
    %53 = arith.addf %49, %52 : vector<8x5x128xf32>
    %c0_50 = arith.constant 0 : index
    %c1_51 = arith.constant 1 : index
    %c0_52 = arith.constant 0 : index
    %54 = vector.load %arg1[%c0_50, %c1_51, %c0_52] : memref<8x8x128xbf16, #tpu.memory_space<vmem>>, vector<8x5x128xbf16>
    %c128_53 = arith.constant 128 : index
    %c0_54 = arith.constant 0 : index
    %55 = vector.load %arg6[%c128_53, %c0_54] : memref<512x128xbf16, #tpu.memory_space<vmem>>, vector<128x128xbf16>
    "tpu.trace_start"() <{level = 10 : i32, message = "bte,ef->btf"}> : () -> ()
    %cst_55 = arith.constant dense<0.000000e+00> : vector<8x5x128xf32>
    %56 = tpu.matmul %54, %55, %cst_55 {dimension_numbers = #tpu.dot_dimension_numbers<[2], [0], [0, 1], [1], [0, 0, 0, 1, 1, 1], [], []>} : vector<8x5x128xbf16>, vector<128x128xbf16>, vector<8x5x128xf32> -> vector<8x5x128xf32>
    "tpu.trace_stop"() : () -> ()
    %57 = arith.addf %53, %56 : vector<8x5x128xf32>
    %c0_56 = arith.constant 0 : index
    %c2_57 = arith.constant 2 : index
    %c0_58 = arith.constant 0 : index
    %58 = vector.load %arg1[%c0_56, %c2_57, %c0_58] : memref<8x8x128xbf16, #tpu.memory_space<vmem>>, vector<8x5x128xbf16>
    %c256_59 = arith.constant 256 : index
    %c0_60 = arith.constant 0 : index
    %59 = vector.load %arg6[%c256_59, %c0_60] : memref<512x128xbf16, #tpu.memory_space<vmem>>, vector<128x128xbf16>
    "tpu.trace_start"() <{level = 10 : i32, message = "bte,ef->btf"}> : () -> ()
    %cst_61 = arith.constant dense<0.000000e+00> : vector<8x5x128xf32>
    %60 = tpu.matmul %58, %59, %cst_61 {dimension_numbers = #tpu.dot_dimension_numbers<[2], [0], [0, 1], [1], [0, 0, 0, 1, 1, 1], [], []>} : vector<8x5x128xbf16>, vector<128x128xbf16>, vector<8x5x128xf32> -> vector<8x5x128xf32>
    "tpu.trace_stop"() : () -> ()
    %61 = arith.addf %57, %60 : vector<8x5x128xf32>
    %c0_62 = arith.constant 0 : index
    %c3 = arith.constant 3 : index
    %c0_63 = arith.constant 0 : index
    %62 = vector.load %arg1[%c0_62, %c3, %c0_63] : memref<8x8x128xbf16, #tpu.memory_space<vmem>>, vector<8x5x128xbf16>
    %c384 = arith.constant 384 : index
    %c0_64 = arith.constant 0 : index
    %63 = vector.load %arg6[%c384, %c0_64] : memref<512x128xbf16, #tpu.memory_space<vmem>>, vector<128x128xbf16>
    "tpu.trace_start"() <{level = 10 : i32, message = "bte,ef->btf"}> : () -> ()
    %cst_65 = arith.constant dense<0.000000e+00> : vector<8x5x128xf32>
    %64 = tpu.matmul %62, %63, %cst_65 {dimension_numbers = #tpu.dot_dimension_numbers<[2], [0], [0, 1], [1], [0, 0, 0, 1, 1, 1], [], []>} : vector<8x5x128xbf16>, vector<128x128xbf16>, vector<8x5x128xf32> -> vector<8x5x128xf32>
    "tpu.trace_stop"() : () -> ()
    %65 = arith.addf %61, %64 : vector<8x5x128xf32>
    %c0_66 = arith.constant 0 : index
    %c0_67 = arith.constant 0 : index
    %66 = vector.load %arg7[%c0_66, %c0_67] : memref<1x128xf32, #tpu.memory_space<vmem>>, vector<1x128xf32>
    %67 = vector.shape_cast %66 : vector<1x128xf32> to vector<1x1x128xf32>
    %68 = vector.broadcast %67 : vector<1x1x128xf32> to vector<8x5x128xf32>
    %69 = arith.addf %65, %68 : vector<8x5x128xf32>
    %cst_68 = arith.constant 0.000000e+00 : f32
    %70 = vector.broadcast %cst_68 : f32 to vector<8x5x128xf32>
    %71 = arith.cmpf ogt, %69, %70 : vector<8x5x128xf32>
    %cst_69 = arith.constant 0.00999999977 : f32
    %72 = vector.broadcast %cst_69 : f32 to vector<8x5x128xf32>
    %73 = arith.mulf %72, %69 : vector<8x5x128xf32>
    %74 = arith.select %71, %69, %73 : vector<8x5x128xi1>, vector<8x5x128xf32>
    %cst_70 = arith.constant dense<0xFF800000> : vector<8x128xf32>
    %75 = vector.multi_reduction <maximumf>, %74, %cst_70 [1] : vector<8x5x128xf32> to vector<8x128xf32>
    %c256_71 = arith.constant 256 : index
    %c0_72 = arith.constant 0 : index
    %76 = vector.load %arg8[%c256_71, %c0_72] : memref<384x128xf32, #tpu.memory_space<vmem>>, vector<128x128xf32>
    %cst_73 = arith.constant dense<0.000000e+00> : vector<8x128xf32>
    %77 = tpu.matmul %75, %76, %cst_73 {dimension_numbers = #tpu.dot_dimension_numbers<[1], [0], [0], [1], [0, 0, 1, 1], [], []>} : vector<8x128xf32>, vector<128x128xf32>, vector<8x128xf32> -> vector<8x128xf32>
    %78 = arith.addf %48, %77 : vector<8x128xf32>
    %c0_74 = arith.constant 0 : index
    %c0_75 = arith.constant 0 : index
    %79 = vector.load %arg9[%c0_74, %c0_75] : memref<1x128xf32, #tpu.memory_space<vmem>>, vector<1x128xf32>
    %80 = vector.broadcast %79 : vector<1x128xf32> to vector<8x128xf32>
    %81 = arith.addf %78, %80 : vector<8x128xf32>
    %c0_76 = arith.constant 0 : index
    %c0_77 = arith.constant 0 : index
    %82 = vector.load %arg10[%c0_76, %c0_77] : memref<8x128xf32, #tpu.memory_space<vmem>>, vector<8x128xf32>
    tpu.vector_store %arg10[%c0_76, %c0_77], %81 {strides = array<i32>} : memref<8x128xf32, #tpu.memory_space<vmem>>, vector<8x128xf32>,
    return
  }
  func.func @transform_0(%arg0: i32) -> (i32, i32, i32) {
    %c0_i32 = arith.constant 0 : i32
    %c0_i32_0 = arith.constant 0 : i32
    %c0_i32_1 = arith.constant 0 : i32
    return %arg0, %c0_i32, %c0_i32_0 : i32, i32, i32
  }
  func.func @transform_1(%arg0: i32) -> (i32, i32) {
    %c0_i32 = arith.constant 0 : i32
    %c0_i32_0 = arith.constant 0 : i32
    %c0_i32_1 = arith.constant 0 : i32
    return %c0_i32, %c0_i32_0 : i32, i32
  }
  func.func @transform_2(%arg0: i32) -> (i32, i32) {
    %c0_i32 = arith.constant 0 : i32
    %c0_i32_0 = arith.constant 0 : i32
    %c0_i32_1 = arith.constant 0 : i32
    return %c0_i32, %c0_i32_0 : i32, i32
  }
  func.func @transform_3(%arg0: i32) -> (i32, i32) {
    %c0_i32 = arith.constant 0 : i32
    %c0_i32_0 = arith.constant 0 : i32
    %c0_i32_1 = arith.constant 0 : i32
    return %c0_i32, %c0_i32_0 : i32, i32
  }
  func.func @transform_4(%arg0: i32) -> (i32, i32) {
    %c0_i32 = arith.constant 0 : i32
    %c0_i32_0 = arith.constant 0 : i32
    %c0_i32_1 = arith.constant 0 : i32
    return %c0_i32, %c0_i32_0 : i32, i32
  }
  func.func @transform_5(%arg0: i32) -> (i32, i32) {
    %c0_i32 = arith.constant 0 : i32
    %c0_i32_0 = arith.constant 0 : i32
    %c0_i32_1 = arith.constant 0 : i32
    return %c0_i32, %c0_i32_0 : i32, i32
  }
  func.func @transform_6(%arg0: i32) -> (i32, i32) {
    %c0_i32 = arith.constant 0 : i32
    %c0_i32_0 = arith.constant 0 : i32
    %c0_i32_1 = arith.constant 0 : i32
    return %c0_i32, %c0_i32_0 : i32, i32
  }
  func.func @transform_7(%arg0: i32) -> (i32, i32) {
    %c0_i32 = arith.constant 0 : i32
    %c0_i32_0 = arith.constant 0 : i32
    %c0_i32_1 = arith.constant 0 : i32
    return %c0_i32, %c0_i32_0 : i32, i32
  }
  func.func @transform_8(%arg0: i32) -> (i32, i32) {
    %c0_i32 = arith.constant 0 : i32
    %c0_i32_0 = arith.constant 0 : i32
    %c0_i32_1 = arith.constant 0 : i32
    return %c0_i32, %c0_i32_0 : i32, i32
  }
  func.func @transform_9(%arg0: i32) -> (i32, i32) {
    %c0_i32 = arith.constant 0 : i32
    %c0_i32_0 = arith.constant 0 : i32
    return %arg0, %c0_i32 : i32, i32
  }
}

</mosaic_0001>

<bundles_post_ra>
// kernel: tpu_custom_call.1
= control target key start
LH: loop header
LB: loop body
LE: loop exit
PB: predicated region body
PF: predicated region fallthrough
CT: control target
= control target key end

     0   :  { %s12741_s0 = inlined_call_operand.hbm [shape: bf16[16,8,128], index: 0, kind: input, shape index: {}]   ;;  %s12742_s1 = inlined_call_operand.hbm [shape: bf16[256,128], index: 1, kind: input, shape index: {}]   ;;  %s12743_s2 = inlined_call_operand.vmem [shape: f32[1,128], index: 2, kind: input, shape index: {}]   ;;  %s12744_s3 = inlined_call_operand.hbm [shape: bf16[384,128], index: 3, kind: input, shape index: {}]   ;;  %s12745_s4 = inlined_call_operand.vmem [shape: f32[1,128], index: 4, kind: input, shape index: {}]   ;;  %s12746_s5 = inlined_call_operand.hbm [shape: bf16[512,128], index: 5, kind: input, shape index: {}]   ;;  %s12747_s6 = inlined_call_operand.vmem [shape: f32[1,128], index: 6, kind: input, shape index: {}]   ;;  %s12748_s7 = inlined_call_operand.hbm [shape: f32[384,128], index: 7, kind: input, shape index: {}]   ;;  %s12749_s8 = inlined_call_operand.vmem [shape: f32[1,128], index: 8, kind: input, shape index: {}]   ;;  %s12750_s9 = inlined_call_operand.hbm [shape: f32[16,128], index: 9, kind: output, shape index: {}]  }
   0x1   :  { %12764 = sst [smem:[#allocation19_spill]] %s12742_s1 }
   0x2   :  { %12765 = sst [smem:[#allocation20_spill]] %s12744_s3 }
   0x3   :  { %12766 = sst [smem:[#allocation21_spill]] %s12746_s5 }
   0x4   :  { %14 = vsyncpa [#allocation3], 0 }
   0x5   :  { %16 = vsyncpa [#allocation3 + $0x1], 0 }
   0x6   :  { %17 = vsyncpa [#allocation6], 0 }
   0x7   :  { %18 = vsyncpa [#allocation9], 0 }
   0x8   :  { %19 = vsyncpa [#allocation4], 0 }
   0x9   :  { %21 = vsyncpa [#allocation4 + $0x1], 0  ;;  %s10333_s30 = smov 0   ;;  %s10335_s10 = smov 0  }
   0xa   :  { %s10337_s11 = smov 0   ;;  %s10339_s12 = smov 0  }
   0xb LB: > { %s10354_s13 = sadd.s32 4294967295, %s10267_s12   ;;  %s9125_s14 = sadd.s32 4294967294, %s10267_s12   ;;  %s10267_s12 = sphi %s10339_s12, %s12850_s12   ;;  %s10263_s11 = sphi %s10337_s11, %s12849_s11   ;;  %s10259_s10 = sphi %s10335_s10, %s12848_s10   ;;  %s10255_s30 = sphi %s10333_s30, %s12847_s30  }
   0xc   : > { %p47_p0 = scmp.ne.s32.totalorder %s10259_s10, %s10255_s30  ;;  %p12751_p1 = scmp.eq.s32.totalorder %s10354_s13, 0 }
   0xd   : > { %p239_p2 = scmp.eq.s32.totalorder %s10354_s13, 1  ;;  %p245_p3 = scmp.eq.s32.totalorder %s9125_s14, 1 }
   0xe   : > { %p10363_p4 = por %p12751_p1, %p47_p0  ;;  %p9126_p5 = scmp.ge.s32.totalorder %s10267_s12, 1 }
   0xf   : > { %p10368_p6 = por %p245_p3, %p47_p0  ;;  %p252_p7 = scmp.lt.s32.totalorder %s10267_s12, 3 }
  0x10   : > { %s12767_s15 = scalar_select %p10363_p4, 1, 0 }
  0x11   : > { %s12768_s16 = scalar_select %p10368_p6, 1, 0 }
  0x12   : > { %p10373_p8 = pnand %p9126_p5, %p252_p7  ;;  %s10269_s18 = smov [#allocation5]  }
  0x13   : > { %s264_s19 = sshll.u32 %s10269_s18, 4  ;;  %s10270_s21 = smov [#allocation8]   ;;  %s265_s19 = int_to_ptr.vmem [resolvable:$true] %s264_s19 }
  0x14   : > { %s12769_s17 = scalar_select %p10373_p8, 1, 0 }
  0x15   : > { %p9916_p9 = pneg %p10373_p8  ;;  %s296_s22 = sshll.u32 %s10270_s21, 4  ;;  %s297_s22 = int_to_ptr.vmem [resolvable:$true] %s296_s22 }
  0x16   : > { %s10271_s23 = smov [#allocation7]   ;;  %s10074_s25 = scalar_lea.vmem %s265_s19, 2048 }
  0x17   : > { %p10382_p11 = pnand %p9916_p9, %p12751_p1  ;;  %s280_s24 = sshll.u32 %s10271_s23, 4  ;;  %s281_s24 = int_to_ptr.vmem [resolvable:$true] %s280_s24 }
  0x18   : > { %p10075_p13 = scmp.ne.s32.totalorder %s265_s19, %s10074_s25  ;;  %p10082_p5 = scmp.lt.s32.totalorder %s265_s19, %s265_s19 }
  0x19   : > { %p10065_p12 = pneg %p10382_p11  ;;  %p10083_p7 = scmp.lt.s32.totalorder %s10074_s25, %s10074_s25 }
  0x1b   : > { %p10077_p0 = pnand %p10075_p13, %p10065_p12  ;;  %p10084_p9 = por %p10083_p7, %p10082_p5 }
  0x1d   : > { %p10078_p3 = pneg %p10077_p0 }
  0x1f   : > { %p10085_p10 = pnand %p10084_p9, %p10078_p3 }
  0x21   : > { %10088 = shalt.err (!%p10085_p10)
}
  0x22   : > { %s12752_s26 = smov 64   ;;  %s12753_s27 = smov 4  }
  0x23   : > { %s12771_s1 = sld [smem:[#allocation19_spill]]  ;;  %s10100_s14 = scalar_lea.vmem %s297_s22, 4096 }
  0x24   : > { %p10101_p13 = scmp.ne.s32.totalorder %s297_s22, %s10100_s14  ;;  %p10108_p3 = scmp.lt.s32.totalorder %s297_s22, %s297_s22 }
  0x25   : > { %p10109_p10 = scmp.lt.s32.totalorder %s10100_s14, %s10100_s14 }
  0x26   : > { %p10103_p0 = pnand %p10101_p13, %p10065_p12 }
  0x27   : > { %p10110_p7 = por %p10109_p10, %p10108_p3 }
  0x28   : > { %p10104_p5 = pneg %p10103_p0 }
  0x29   : > { %9919 = dma.hbm_to_vmem [thread:$0]  (!%p10382_p11), %s12771_s1, 2048, %s265_s19, [#allocation6], %s12752_s26, %s12752_s26, %s12753_s27  }
  0x2a   : > { %p10111_p9 = pnand %p10110_p7, %p10104_p5 }
  0x2c   : > { %10114 = shalt.err (!%p10111_p9)
}
  0x2d   : > { %s12772_s5 = sld [smem:[#allocation21_spill]]  ;;  %s10126_s19 = scalar_lea.vmem %s281_s24, 3072 }
  0x2e   : > { %p10127_p1 = scmp.ne.s32.totalorder %s281_s24, %s10126_s19  ;;  %p10134_p3 = scmp.lt.s32.totalorder %s281_s24, %s281_s24 }
  0x2f   : > { %p10135_p5 = scmp.lt.s32.totalorder %s10126_s19, %s10126_s19 }
  0x30   : > { %p10129_p13 = pnand %p10127_p1, %p10065_p12 }
  0x31   : > { %p10136_p10 = por %p10135_p5, %p10134_p3 }
  0x32   : > { %p10130_p0 = pneg %p10129_p13 }
  0x33   : > { %9925 = dma.hbm_to_vmem [thread:$0]  (!%p10382_p11), %s12772_s5, 4096, %s297_s22, [#allocation9], %s12752_s26, %s12752_s26, %s12753_s27  }
  0x34   : > { %p10137_p7 = pnand %p10136_p10, %p10130_p0 }
  0x36   : > { %10140 = shalt.err (!%p10137_p7)
}
  0x37   : > { %s12773_s3 = sld [smem:[#allocation20_spill]]  ;;  %s10274_s22 = smov [#allocation10]  }
  0x38   : > { %s312_s28 = sshll.u32 %s10274_s22, 4  ;;  %s313_s28 = int_to_ptr.vmem [resolvable:$true] %s312_s28 }
  0x39   : > { %s10152_s29 = scalar_lea.vmem %s313_s28, 6144  ;;  %p10160_p0 = scmp.lt.s32.totalorder %s313_s28, %s313_s28 }
  0x3a   : > { %p10153_p1 = scmp.ne.s32.totalorder %s313_s28, %s10152_s29  ;;  %p10161_p3 = scmp.lt.s32.totalorder %s10152_s29, %s10152_s29 }
  0x3c   : > { %p10155_p9 = pnand %p10153_p1, %p10065_p12  ;;  %p10162_p5 = por %p10161_p3, %p10160_p0 }
  0x3d   : > { %9922 = dma.hbm_to_vmem [thread:$0]  (!%p10382_p11), %s12773_s3, 3072, %s281_s24, [#allocation6], %s12752_s26, %s12752_s26, %s12753_s27  }
  0x3e   : > { %p10156_p13 = pneg %p10155_p9 }
  0x40   : > { %p10163_p10 = pnand %p10162_p5, %p10156_p13 }
  0x42   : > { %10166 = shalt.err (!%p10163_p10)
}
  0x43   : > { %s10275_s14 = smov 128   ;;  %s10276_s24 = smov 8  }
  0x44   : > { %9928 = dma.hbm_to_vmem [thread:$0]  (!%p10382_p11), %s12748_s7, 6144, %s313_s28, [#allocation9], %s10275_s14, %s10275_s14, %s10276_s24  }
  0x45   : > { %s10430_s19 = sadd.s32 1, %s10267_s12   ;;  %s34_s25 = sadd.s32 1, %s10263_s11 }
  0x46   : > { %s31_s23 = ssub.s32 %s10267_s12, %s10430_s19  ;;  %p41_p7 = scmp.ne.s32.totalorder %s10263_s11, %s10259_s10 }
  0x47   : > { %p32_p12 = scmp.eq.s32.totalorder %s31_s23, 0  ;;  %p42_p1 = scmp.eq.s32.totalorder %s10267_s12, 0 }
  0x48   : > { %p10443_p13 = por %p239_p2, %p41_p7  ;;  %p9941_p0 = scmp.lt.s32.totalorder %s10267_s12, 2 }
  0x49   : > { %s10439_s22 = scalar_select %p32_p12, %s10263_s11, %s34_s25  }
  0x4a   : > { %p43_p9 = por %p42_p1, %p41_p7  ;;  %s329_s20 = sand.u32 1, %s10263_s11  }
  0x4b   : > { %s12774_s29 = scalar_select %p10443_p13, 1, 0 }
  0x4c   : > { %s9132_s18 = sshll.u32 %s329_s20, 5  ;;  %s9394_s28 = sshll.u32 %s10267_s12, 9 }
  0x4d   : > { %s10453_s21 = scalar_lea.hbm %s12741_s0, %s9394_s28  ;;  %s333_s23 = scalar_lea.vmem [#allocation2], %s9132_s18 }
  0x4e   : > { %s340_s25 = sshll.u32 %s333_s23, 4  ;;  %p10457_p2 = pnand %p9941_p0, %p43_p9  ;;  %s10455_s25 = int_to_ptr.vmem [resolvable:$true] %s340_s25 }
  0x4f   : > { %s10461_s27 = scalar_lea.sflag [#allocation3], %s329_s20  ;;  %s10167_s1 = scalar_lea.hbm %s10453_s21, 512 }
  0x50   : > { %p10168_p11 = scmp.ne.s32.totalorder %s10453_s21, %s10167_s1  ;;  %p10169_p3 = pneg %p10457_p2 }
  0x51   : > { %s10172_s18 = scalar_lea.hbm %s12741_s0, 1024  ;;  %p10173_p12 = scmp.lt.s32.totalorder %s10453_s21, %s12741_s0 }
  0x52   : > { %p10170_p5 = pnand %p10169_p3, %p10168_p11  ;;  %p10174_p7 = scmp.lt.s32.totalorder %s10172_s18, %s10167_s1 }
  0x54   : > { %p10171_p10 = pneg %p10170_p5  ;;  %p10175_p1 = por %p10174_p7, %p10173_p12 }
  0x56   : > { %p10176_p9 = pnand %p10175_p1, %p10171_p10 }
  0x58   : > { %10179 = shalt.err (!%p10176_p9)
}
  0x59   : > { %s10180_s20 = scalar_lea.vmem %s10455_s25, 512  ;;  %s10277_s3 = smov [#allocation2]  }
  0x5a   : > { %p10181_p0 = scmp.ne.s32.totalorder %s10455_s25, %s10180_s20  ;;  %s10185_s5 = sshll.u32 %s10277_s3, 4  ;;  %s10186_s5 = int_to_ptr.vmem [resolvable:$false] %s10185_s5 }
  0x5b   : > { %s10187_s28 = scalar_lea.vmem %s10186_s5, 1024  ;;  %p10188_p5 = scmp.lt.s32.totalorder %s10455_s25, %s10186_s5 }
  0x5c   : > { %p10183_p6 = pnand %p10181_p0, %p10169_p3  ;;  %p10189_p13 = scmp.lt.s32.totalorder %s10187_s28, %s10180_s20 }
  0x5e   : > { %p10184_p11 = pneg %p10183_p6  ;;  %p10190_p4 = por %p10189_p13, %p10188_p5 }
  0x60   : > { %p10191_p8 = pnand %p10190_p4, %p10184_p11 }
  0x62   : > { %10194 = shalt.err (!%p10191_p8)
}
  0x63   : > { %s12776_s1 = smov 4   ;;  %s12777_s14 = smov 64  }
  0x64   : > { %9932 = dma.hbm_to_vmem [thread:$0]  (!%p10457_p2), %s10453_s21, 512, %s10455_s25, %s10461_s27, %s12777_s14, %s12777_s14, %s12776_s1  }
  0x65   : > { %p12778_p6 = scmp.ne.s32.totalorder %s12769_s17, 0 }
  0x67   : > { %352 = sbr.rel (%p12778_p6) target bundleno = 1166 (0x48e), region = 56 }
  0x6c   : > { %s10488_s3 = sand.u32 1, %s10259_s10   ;;  %p12779_p4 = scmp.ne.s32.totalorder %s12767_s15, 0 }
  0x6d   : > { %s9136_s5 = sshll.u32 %s10488_s3, 5  ;;  %s355_s18 = scalar_lea.sflag [#allocation3], %s10488_s3 }
  0x6e   : > { %s10492_s24 = scalar_lea.vmem [#allocation2], %s9136_s5 }
  0x6f   : > { %10238 = dma.done.wait (%p12779_p4), %s355_s18, 512  }
  0x70   : > { %10240 = vsyncadd (%p12779_p4), %s355_s18, 4294966784  ;;  %p12780_p8 = scmp.eq.s32.totalorder %s10354_s13, 0 }
  0x72   : > { %10242 = dma.done.wait (%p12780_p8), [#allocation6], 5120   ;;  %p12781_p13 = pmov %p12780_p8 }
  0x73   : > { %p12782_p2 = pmov %p12780_p8 }
  0x74   : > { %10244 = vsyncadd (%p12781_p13), [#allocation6], 4294962176 }
  0x75   : > { %10246 = dma.done.wait (%p12782_p2), [#allocation9], 10240   ;;  %p12783_p3 = pmov %p12782_p2 }
  0x76   : > { %v9991_v0 = vld [vmem:[#allocation5 + $0x78] sm:$0xff]   ;;  %v9993_v2 = vld [vmem:[#allocation5 + $0x70] sm:$0xff]   ;;  %v9995_v4 = vld [vmem:[#allocation5 + $0x68] sm:$0xff]   ;;  %v10278_v6 = vmov 1966171168   ;;  %v478_v8 = vlaneseq  ;;  %vm10280_vm15 = vmmov 0  }
  0x77   : > { %10248 = vsyncadd (%p12783_p3), [#allocation9], 4294957056  ;;  %v9992_v1 = vld [vmem:[#allocation5 + $0x38] sm:$0xff]   ;;  %9547 = vmatprep.subr.bf16.mxu0 %v9991_v0  ;;  %v9994_v3 = vld [vmem:[#allocation5 + $0x30] sm:$0xff]   ;;  %v476_v7 = vunpack.c.l.s4 %v10278_v6  ;;  %vm3061_vm0 = vsmask.f32 256 }
  0x78   : > { %9571 = vmatprep.subr.bf16.mxu1 %v9992_v1  ;;  %9548 = vmatpush3.bf16.msra.mxu0 %v9991_v0  ;;  %v9996_v5 = vld [vmem:[#allocation5 + $0x28] sm:$0xff]   ;;  %v9997_v9 = vld [vmem:[#allocation5 + $0x60] sm:$0xff]   ;;  %v10506_v12 = vshrl.u32 %v478_v8, 7  ;;  %v9999_v13 = vld [vmem:[#allocation5 + $0x58] sm:$0xff]   ;;  %vm3062_vm1 = vsmask.f32 1284 }
  0x79   : > { %9572 = vmatpush3.bf16.msra.mxu1 %v9992_v1  ;;  %9549 = vmatprep.subr.bf16.mxu0 %v9993_v2  ;;  %v9998_v10 = vld [vmem:[#allocation5 + $0x20] sm:$0xff]   ;;  %v477_v11 = vunpack.c.0.s8 %v476_v7  ;;  %v10000_v14 = vld [vmem:[#allocation5 + $0x18] sm:$0xff]   ;;  %v10001_v16 = vld [vmem:[#allocation5 + $0x50] sm:$0xff]   ;;  %vm3064_vm2 = vsmask.f32 2312  ;;  %s9141_s23 = sshll.u32 %s10488_s3, 3 }
  0x7a   : > { %9573 = vmatprep.subr.bf16.mxu1 %v9994_v3  ;;  %v10002_v17 = vld [vmem:[#allocation5 + $0x10] sm:$0xff]   ;;  %v9142_v18 = vld.sshfl [vmem:[%s10492_s24] sm:$0x33 pattern:$0x75316420]  ;;  %v10003_v29 = vld [vmem:[#allocation5 + $0x48] sm:$0xff]  }
  0x7b   : > { %v10509_v15 = vsub.s32 %v477_v11, %v10506_v12  ;;  %v9143_v19 = vld.sshfl [vmem:[%s10492_s24 + $0x4] sm:$0x33 pattern:$0x75316420]  ;;  %v474_v20 = vcombine.high %v9142_v18, %v9142_v18  ;;  %v10004_v34 = vld [vmem:[#allocation5 + $0x8] sm:$0xff]   ;;  %vm10624_vm5 = vmor %vm3061_vm0, %vm3062_vm1  ;;  %s9391_s1 = sshll.u32 %s10354_s13, 7 }
  0x7c   : > { %9550 = vmatpush3.bf16.msra.mxu0 %v9993_v2  ;;  %v9144_v22 = vld.sshfl [vmem:[%s10492_s24 + $0x8] sm:$0x33 pattern:$0x75316420]  ;;  %v498_v23 = vcombine.high %v9143_v19, %v9143_v19  ;;  %v10005_v47 = vld [vmem:[#allocation5 + $0x40] sm:$0xff]   ;;  %vm10649_vm7 = vmor %vm10624_vm5, %vm3064_vm2  ;;  %s408_s14 = scalar_lea.vmem [#allocation11], %s9141_s23  ;;  %s9015_s15 = scalar_lea.hbm %s12750_s9, %s9391_s1 }
  0x7d   : > { %9574 = vmatpush3.bf16.msra.mxu1 %v9994_v3  ;;  %9551 = vmatprep.subr.bf16.mxu0 %v9995_v4  ;;  %v10514_v21 = vrot.slane %v9142_v18, %v10509_v15  ;;  %v10518_v24 = vrot.slane %v9143_v19, %v10509_v15  ;;  %v10521_v25 = vrot.slane %v474_v20, %v10509_v15  ;;  %v10006_v52 = vld [vmem:[#allocation5] sm:$0xff]   ;;  %v9145_v57 = vld.sshfl [vmem:[%s10492_s24 + $0xc] sm:$0x33 pattern:$0x75316420]  ;;  %s9017_s5 = sshll.u32 %s408_s14, 4  ;;  %s9018_s5 = int_to_ptr.vmem [resolvable:$true] %s9017_s5 }
  0x7e   : > { %9575 = vmatprep.subr.bf16.mxu1 %v9996_v5  ;;  %v522_v27 = vcombine.high %v9144_v22, %v9144_v22  ;;  %v10528_v28 = vrot.slane %v9144_v22, %v10509_v15  ;;  %v10531_v30 = vrot.slane %v498_v23, %v10509_v15  ;;  %v9146_v62 = vld.sshfl [vmem:[%s10492_s24 + $0x10] sm:$0x33 pattern:$0x75316420]  ;;  %v10592_v18 = vrot.slane %v9145_v57, %v10509_v15  ;;  %s9004_s17 = scalar_lea.sflag [#allocation4], %s10488_s3  ;;  %s10195_s26 = scalar_lea.vmem %s9018_s5, 128 }
  0x7f   : > { %v10525_v26 = vcombine.high %v10514_v21, %v10514_v21  ;;  %v10535_v31 = vcombine.high %v10518_v24, %v10518_v24  ;;  %v659_v32 = vunpack.i.h.s16 %v10514_v21  ;;  %v666_v33 = vunpack.i.h.s16 %v10518_v24  ;;  %p10196_p10 = scmp.ne.s32.totalorder %s9018_s5, %s10195_s26  ;;  %p12844_p12 = scmp.ne.s32.totalorder %s12774_s29, 0 }
  0x80   : > { %9552 = vmatpush3.bf16.msra.mxu0 %v9995_v4  ;;  %v10541_v35 = vcombine.high %v10521_v25, %v10521_v25  ;;  %v10544_v36 = vrot.slane %v522_v27, %v10509_v15  ;;  %v661_v37 = vunpack.i.h.s16 %v10521_v25  ;;  %v10550_v39 = vcombine.high %v10531_v30, %v10531_v30  ;;  %s10282_s27 = smov [#allocation11]  }
  0x81   : > { %9576 = vmatpush3.bf16.msra.mxu1 %v9996_v5  ;;  %9553 = vmatprep.subr.bf16.mxu0 %v9997_v9  ;;  %v663_v38 = vunpack.i.h.s16 %v10525_v26  ;;  %v673_v40 = vunpack.i.h.s16 %v10528_v28  ;;  %v9150_v41 = vpack.i.b16 %v10521_v25, %v659_v32  ;;  %v745_v42 = vcombine.low %v10531_v30, %v10535_v31  ;;  %p10197_p7 = pnand %p10196_p10, %p12844_p12  ;;  %s10199_s21 = sshll.u32 %s10282_s27, 4  ;;  %s10200_s21 = int_to_ptr.vmem [resolvable:$false] %s10199_s21 }
  0x82   : > { %9577 = vmatprep.subr.bf16.mxu1 %v9998_v10  ;;  %v665_v43 = vunpack.i.h.s16 %v10541_v35  ;;  %v9151_v44 = vpack.i.b16 %v10525_v26, %v661_v37  ;;  %v10561_v46 = vcombine.high %v10528_v28, %v10528_v28  ;;  %v1240_v50 = vunpack.i.h.s16 %v10531_v30  ;;  %s10201_s13 = scalar_lea.vmem %s10200_s21, 256  ;;  %p10202_p9 = scmp.lt.s32.totalorder %s9018_s5, %s10200_s21 }
  0x83   : > { %v9152_v45 = vpack.i.b16 %v10541_v35, %v663_v38  ;;  %v9153_v48 = vpack.i.b16 %v10544_v36, %v673_v40  ;;  %v767_v49 = vrot.slane %v745_v42, %v10509_v15  ;;  %v1242_v51 = vunpack.i.h.s16 %v10535_v31  ;;  %p10198_p1 = pneg %p10197_p7  ;;  %p10203_p0 = scmp.lt.s32.totalorder %s10201_s13, %s10195_s26 }
  0x84   : > { %9554 = vmatpush3.bf16.msra.mxu0 %v9997_v9  ;;  %v718_v53 = vpack.i.b16 %v666_v33, %v665_v43  ;;  %v743_v54 = vcombine.low %v9150_v41, %v9151_v44  ;;  %v9180_v55 = vpack.i.b16 %v10518_v24, %v10541_v35  ;;  %v9181_v56 = vpack.i.b16 %v10531_v30, %v666_v33 }
  0x85   : > { %9578 = vmatpush3.bf16.msra.mxu1 %v9998_v10  ;;  %9555 = vmatprep.subr.bf16.mxu0 %v9999_v13  ;;  %v746_v58 = vcombine.low %v10550_v39, %v9153_v48  ;;  %v9182_v59 = vpack.i.b16 %v10535_v31, %v1240_v50  ;;  %v9183_v60 = vpack.i.b16 %v10550_v39, %v1242_v51  ;;  %v675_v5 = vunpack.i.h.s16 %v10544_v36  ;;  %p10204_p11 = por %p10203_p0, %p10202_p9 }
  0x86   : > { %9579 = vmatprep.subr.bf16.mxu1 %v10000_v14  ;;  %v1314_v61 = vcombine.low %v10514_v21, %v10521_v25  ;;  %v744_v63 = vcombine.low %v9152_v45, %v718_v53  ;;  %v753_v0 = vrot.slane %v743_v54, %v10509_v15  ;;  %v1315_v1 = vcombine.low %v10525_v26, %v9180_v55 }
  0x87   : > { %v774_v2 = vrot.slane %v746_v58, %v10509_v15  ;;  %v1316_v3 = vcombine.low %v9181_v56, %v9182_v59  ;;  %v1317_v4 = vcombine.low %v9183_v60, %v10528_v28  ;;  %v10587_v9 = vcombine.high %v10544_v36, %v10544_v36  ;;  %p10205_p5 = pnand %p10204_p11, %p10198_p1 }
  0x88   : > { %9556 = vmatpush3.bf16.msra.mxu0 %v9999_v13  ;;  %v760_v6 = vrot.slane %v744_v63, %v10509_v15  ;;  %v1324_v7 = vrot.slane %v1314_v61, %v10509_v15  ;;  %v1331_v8 = vrot.slane %v1315_v1, %v10509_v15  ;;  %v570_v19 = vcombine.high %v9146_v62, %v9146_v62  ;;  %v9147_v1 = vld.sshfl [vmem:[%s10492_s24 + $0x14] sm:$0x33 pattern:$0x75316420] }
  0x89   : > { %9580 = vmatpush3.bf16.msra.mxu1 %v10000_v14  ;;  %9557 = vmatprep.subr.bf16.mxu0 %v10001_v16  ;;  %v776_v10 = vcombine.low %v767_v49, %v774_v2  ;;  %v1338_v11 = vrot.slane %v1316_v3, %v10509_v15  ;;  %v1345_v13 = vrot.slane %v1317_v4, %v10509_v15  ;;  %vm3066_vm3 = vsmask.f32 3340 }
  0x8a   : > { %9581 = vmatprep.subr.bf16.mxu1 %v10002_v17  ;;  %v546_v14 = vcombine.high %v9145_v57, %v9145_v57  ;;  %v10599_v27 = vrot.slane %v9146_v62, %v10509_v15  ;;  %v10604_v33 = vrot.slane %v570_v19, %v10509_v15  ;;  %v12757_v37 = vmov 0.0   ;;  %vm10673_vm9 = vmor %vm10649_vm7, %vm3066_vm3 }
  0x8b   : > { %v790_v20 = vrot.slane %v776_v10, %v10509_v15  ;;  %v1347_v22 = vcombine.low %v1338_v11, %v1345_v13  ;;  %v679_v41 = vunpack.i.h.s16 %v10587_v9  ;;  %v680_v42 = vunpack.i.h.s16 %v10592_v18  ;;  %v9148_v13 = vld.sshfl [vmem:[%s10492_s24 + $0x18] sm:$0x33 pattern:$0x75316420] }
  0x8c   : > { %9558 = vmatpush3.bf16.msra.mxu0 %v10001_v16  ;;  %v775_v16 = vcombine.low %v753_v0, %v760_v6  ;;  %v10596_v23 = vrot.slane %v546_v14, %v10509_v15  ;;  %v10612_v40 = vcombine.high %v10599_v27, %v10599_v27  ;;  %v687_v44 = vunpack.i.h.s16 %v10599_v27 }
  0x8d   : > { %9582 = vmatpush3.bf16.msra.mxu1 %v10002_v17  ;;  %9559 = vmatprep.subr.bf16.mxu0 %v10003_v29  ;;  %v1346_v17 = vcombine.low %v1324_v7, %v1331_v8  ;;  %v1361_v38 = vrot.slane %v1347_v22, %v10509_v15  ;;  %v689_v45 = vunpack.i.h.s16 %v10604_v33  ;;  %vm3068_vm4 = vsmask.f32 4368 }
  0x8e   : > { %9583 = vmatprep.subr.bf16.mxu1 %v10004_v34  ;;  %v725_v50 = vpack.i.b16 %v680_v42, %v679_v41  ;;  %v9162_v51 = vcombine.high %v10592_v18, %v10596_v23  ;;  %v9156_v53 = vpack.i.b16 %v10604_v33, %v687_v44  ;;  %v10632_v55 = vcombine.high %v10592_v18, %v10592_v18  ;;  %vm3069_vm11 = vmor %vm10673_vm9, %vm3068_vm4 }
  0x8f   : > { %v1354_v32 = vrot.slane %v1346_v17, %v10509_v15  ;;  %v9157_v54 = vpack.i.b16 %v10612_v40, %v689_v45  ;;  %v10636_v56 = vcombine.high %v10596_v23, %v10596_v23  ;;  %v1254_v60 = vunpack.i.h.s16 %v10596_v23 }
  0x90   : > { %9560 = vmatpush3.bf16.msra.mxu0 %v10003_v29  ;;  %v783_v29 = vrot.slane %v775_v16, %v10509_v15  ;;  %v793_v58 = vcombine.low %v725_v50, %v10596_v23  ;;  %v816_v59 = vrot.slane %v9162_v51, %v10509_v15  ;;  %vm3070_vm6 = vsmask.f32 5396 }
  0x91   : > { %9584 = vmatpush3.bf16.msra.mxu1 %v10004_v34  ;;  %9561 = vmatprep.subr.bf16.mxu0 %v10005_v47  ;;  %v677_v34 = vunpack.i.h.s16 %v10561_v46  ;;  %v1362_v48 = vcombine.low %v1354_v32, %v1361_v38  ;;  %v795_v61 = vcombine.low %v9156_v53, %v9157_v54  ;;  %v1256_v62 = vunpack.i.h.s16 %v10632_v55  ;;  %vm10721_vm12 = vmor %vm3069_vm11, %vm3070_vm6 }
  0x92   : > { %9585 = vmatprep.subr.bf16.mxu1 %v10006_v52  ;;  %v791_v43 = vcombine.low %v783_v29, %v790_v20  ;;  %v9184_v63 = vpack.i.b16 %v10592_v18, %v10587_v9  ;;  %v9185_v0 = vpack.i.b16 %v10596_v23, %v680_v42  ;;  %v809_v4 = vrot.slane %v793_v58, %v10509_v15 }
  0x93   : > { %v9155_v49 = vpack.i.b16 %v10587_v9, %v677_v34  ;;  %9587 = vmatprep.mubr.bf16.mxu1 %v1362_v48  ;;  %v1363_v6 = vcombine.low %v10544_v36, %v10561_v46  ;;  %v823_v7 = vrot.slane %v795_v61, %v10509_v15  ;;  %v9187_v8 = vpack.i.b16 %v10636_v56, %v1256_v62 }
  0x94   : > { %9562 = vmatpush3.bf16.msra.mxu0 %v10005_v47  ;;  %v9154_v47 = vpack.i.b16 %v10561_v46, %v675_v5  ;;  %9563 = vmatprep.mubr.bf16.mxu0 %v791_v43  ;;  %v9186_v5 = vpack.i.b16 %v10632_v55, %v1254_v60  ;;  %v1364_v10 = vcombine.low %v9184_v63, %v9185_v0  ;;  %vm3072_vm8 = vsmask.f32 6424 }
  0x95   : > { %9586 = vmatpush3.bf16.msra.mxu1 %v10006_v52  ;;  %9595 = vmatprep.subr.bf16.mxu0 %v12757_v37  ;;  %v1366_v11 = vcombine.low %v10599_v27, %v10604_v33  ;;  %v1373_v16 = vrot.slane %v1363_v6, %v10509_v15  ;;  %v10666_v17 = vcombine.high %v10604_v33, %v10604_v33  ;;  %vm3074_vm10 = vsmask.f32 7452  ;;  %v10009_v6 = vld [vmem:[#allocation7 + $0x70] sm:$0xff]   ;;  %vm10744_vm13 = vmor %vm10721_vm12, %vm3072_vm8 }
  0x96   : > { %9623 = vmatprep.subr.bf16.mxu1 %v12757_v37  ;;  %v792_v57 = vcombine.low %v9154_v47, %v9155_v49  ;;  %v594_v19 = vcombine.high %v9147_v1, %v9147_v1  ;;  %v825_v20 = vcombine.low %v816_v59, %v823_v7  ;;  %v1365_v22 = vcombine.low %v9186_v5, %v9187_v8  ;;  %v10007_v49 = vld [vmem:[#allocation7 + $0x78] sm:$0xff]   ;;  %vm10765_vm14 = vmor %vm10744_vm13, %vm3074_vm10 }
  0x97   : > { %v1380_v29 = vrot.slane %v1364_v10, %v10509_v15  ;;  %v1394_v32 = vrot.slane %v1366_v11, %v10509_v15  ;;  %v10679_v41 = vrot.slane %v9147_v1, %v10509_v15  ;;  %v618_v43 = vcombine.high %v9148_v13, %v9148_v13  ;;  %v10008_v5 = vld [vmem:[#allocation7 + $0x38] sm:$0xff]  }
  0x98   : > { %v802_v3 = vrot.slane %v792_v57, %v10509_v15  ;;  %v10682_v42 = vrot.slane %v594_v19, %v10509_v15  ;;  %v839_v44 = vrot.slane %v825_v20, %v10509_v15  ;;  %v1387_v45 = vrot.slane %v1365_v22, %v10509_v15 }
  0x99   : > { %v1395_v47 = vcombine.low %v1373_v16, %v1380_v29  ;;  %v10687_v48 = vrot.slane %v9148_v13, %v10509_v15  ;;  %v10691_v50 = vcombine.high %v10679_v41, %v10679_v41  ;;  %v10698_v52 = vrot.slane %v618_v43, %v10509_v15 }
  0x9a   : > { %v824_v14 = vcombine.low %v802_v3, %v809_v4  ;;  %v10695_v51 = vcombine.high %v10682_v42, %v10682_v42  ;;  %v691_v53 = vunpack.i.h.s16 %v10612_v40  ;;  %v1396_v57 = vcombine.low %v1387_v45, %v1394_v32  ;;  %v9149_v45 = vld.sshfl [vmem:[%s10492_s24 + $0x1c] sm:$0x33 pattern:$0x75316420] }
  0x9b   : > { %v1403_v58 = vrot.slane %v1395_v47, %v10509_v15  ;;  %v10707_v59 = vcombine.high %v10687_v48, %v10687_v48  ;;  %v10711_v60 = vcombine.high %v10698_v52, %v10698_v52  ;;  %v693_v61 = vunpack.i.h.s16 %v10666_v17 }
  0x9c   : > { %v832_v38 = vrot.slane %v824_v14, %v10509_v15  ;;  %v694_v62 = vunpack.i.h.s16 %v10679_v41  ;;  %v701_v63 = vunpack.i.h.s16 %v10687_v48  ;;  %v1410_v0 = vrot.slane %v1396_v57, %v10509_v15 }
  0x9d   : > { %v703_v1 = vunpack.i.h.s16 %v10698_v52  ;;  %v705_v2 = vunpack.i.h.s16 %v10707_v59  ;;  %v9158_v3 = vpack.i.b16 %v10666_v17, %v691_v53  ;;  %v842_v10 = vcombine.low %v10682_v42, %v10691_v50 }
  0x9e   : > { %v840_v54 = vcombine.low %v832_v38, %v839_v44  ;;  %v732_v7 = vpack.i.b16 %v694_v62, %v693_v61  ;;  %v9159_v8 = vpack.i.b16 %v10698_v52, %v701_v63  ;;  %v1268_v11 = vunpack.i.h.s16 %v10682_v42  ;;  %v10011_v61 = vld [vmem:[#allocation7 + $0x68] sm:$0xff]  }
  0x9f   : > { %v1411_v13 = vcombine.low %v1403_v58, %v1410_v0  ;;  %v9160_v14 = vpack.i.b16 %v10707_v59, %v703_v1  ;;  %v9161_v16 = vpack.i.b16 %v10711_v60, %v705_v2  ;;  %v1270_v19 = vunpack.i.h.s16 %v10691_v50 }
  0xa0   : > { %9564 = vmatmul.mubr.bf16.vlgmr.msra.gmra.mxu0 %v840_v54  ;;  %v841_v20 = vcombine.low %v9158_v3, %v732_v7  ;;  %v843_v22 = vcombine.low %v10695_v51, %v9159_v8  ;;  %v858_v29 = vrot.slane %v842_v10, %v10509_v15  ;;  %v9188_v32 = vpack.i.b16 %v10679_v41, %v10666_v17 }
  0xa1   : > { %9596 = vmatpush3.bf16.msra.mxu0 %v10007_v49  ;;  %9588 = vmatmul.mubr.bf16.vlgmr.msra.gmra.mxu1 %v1411_v13  ;;  %v844_v34 = vcombine.low %v9160_v14, %v9161_v16  ;;  %v9189_v38 = vpack.i.b16 %v10682_v42, %v694_v62  ;;  %v9190_v43 = vpack.i.b16 %v10691_v50, %v1268_v11  ;;  %v10010_v49 = vld [vmem:[#allocation7 + $0x30] sm:$0xff]   ;;  %v707_v58 = vunpack.i.h.s16 %v10711_v60 }
  0xa2   : > { %9597 = vmatprep.subr.bf16.mxu0 %v12757_v37  ;;  %v9191_v44 = vpack.i.b16 %v10695_v51, %v1270_v19  ;;  %9624 = vmatpush3.bf16.msra.mxu1 %v10008_v5  ;;  %v851_v53 = vrot.slane %v841_v20, %v10509_v15  ;;  %v865_v54 = vrot.slane %v843_v22, %v10509_v15  ;;  %v10013_v22 = vld [vmem:[#allocation7 + $0x60] sm:$0xff]  }
  0xa3   : > { %v1412_v57 = vcombine.low %v10612_v40, %v9188_v32  ;;  %9625 = vmatprep.subr.bf16.mxu1 %v12757_v37  ;;  %v872_v62 = vrot.slane %v844_v34, %v10509_v15  ;;  %v1413_v63 = vcombine.low %v9189_v38, %v9190_v43  ;;  %v1415_v1 = vcombine.low %v10698_v52, %v10707_v59 }
  0xa4   : > { %v1414_v0 = vcombine.low %v9191_v44, %v10687_v48  ;;  %v873_v2 = vcombine.low %v851_v53, %v858_v29  ;;  %v642_v4 = vcombine.high %v9149_v45, %v9149_v45  ;;  %v10759_v5 = vrot.slane %v9149_v45, %v10509_v15 }
  0xa5   : > { %9598 = vmatpush3.bf16.msra.mxu0 %v10009_v6  ;;  %v1422_v3 = vrot.slane %v1412_v57, %v10509_v15  ;;  %v10012_v6 = vld [vmem:[#allocation7 + $0x28] sm:$0xff]   ;;  %v874_v8 = vcombine.low %v865_v54, %v872_v62  ;;  %v1429_v10 = vrot.slane %v1413_v63, %v10509_v15  ;;  %v1443_v13 = vrot.slane %v1415_v1, %v10509_v15  ;;  %v10015_v1 = vld [vmem:[#allocation7 + $0x58] sm:$0xff]  }
  0xa6   : > { %9599 = vmatprep.subr.bf16.mxu0 %v12757_v37  ;;  %v1436_v11 = vrot.slane %v1414_v0, %v10509_v15  ;;  %9626 = vmatpush3.bf16.msra.mxu1 %v10010_v49  ;;  %v881_v14 = vrot.slane %v873_v2, %v10509_v15  ;;  %v10774_v16 = vrot.slane %v642_v4, %v10509_v15  ;;  %v708_v19 = vunpack.i.h.s16 %v10759_v5  ;;  %v10014_v49 = vld [vmem:[#allocation7 + $0x20] sm:$0xff]  }
  0xa7   : > { %v10779_v20 = vcombine.high %v10759_v5, %v10759_v5  ;;  %v888_v29 = vrot.slane %v874_v8, %v10509_v15  ;;  %v1444_v32 = vcombine.low %v1422_v3, %v1429_v10  ;;  %v9192_v38 = vpack.i.b16 %v10759_v5, %v10711_v60  ;;  %9627 = vmatprep.subr.bf16.mxu1 %v12757_v37 }
  0xa8   : > { %v1445_v34 = vcombine.low %v1436_v11, %v1443_v13  ;;  %v739_v43 = vpack.i.b16 %v708_v19, %v707_v58  ;;  %v9163_v44 = vcombine.high %v10759_v5, %v10774_v16  ;;  %v10789_v45 = vcombine.high %v10774_v16, %v10774_v16  ;;  %v10016_v13 = vld [vmem:[#allocation7 + $0x18] sm:$0xff]  }
  0xa9   : > { %9600 = vmatpush3.bf16.msra.mxu0 %v10011_v61  ;;  %v1282_v47 = vunpack.i.h.s16 %v10774_v16  ;;  %v889_v53 = vcombine.low %v881_v14, %v888_v29  ;;  %v1452_v54 = vrot.slane %v1444_v32, %v10509_v15  ;;  %v1284_v61 = vunpack.i.h.s16 %v10779_v20 }
  0xaa   : > { %9601 = vmatprep.subr.bf16.mxu0 %v12757_v37  ;;  %v1459_v57 = vrot.slane %v1445_v34, %v10509_v15  ;;  %v890_v58 = vcombine.low %v739_v43, %v10774_v16  ;;  %v905_v62 = vrot.slane %v9163_v44, %v10509_v15  ;;  %v9193_v63 = vpack.i.b16 %v10774_v16, %v708_v19 }
  0xab   : > { %v9194_v0 = vpack.i.b16 %v10779_v20, %v1282_v47  ;;  %9628 = vmatpush3.bf16.msra.mxu1 %v10012_v6  ;;  %9567 = vmatprep.mubr.bf16.mxu0 %v889_v53  ;;  %v9195_v3 = vpack.i.b16 %v10789_v45, %v1284_v61  ;;  %v3077_v4 = vshrl.u32 %v10514_v21, 16  ;;  %v3082_v8 = vshll.u32 %v10521_v25, 16  ;;  %v9245_v53 = vld.sshfl [vmem:[%s10492_s24] sm:$0x13 pattern:$0x75316420] }
  0xac   : > { %v1460_v2 = vcombine.low %v1452_v54, %v1459_v57  ;;  %9629 = vmatprep.subr.bf16.mxu1 %v12757_v37  ;;  %v898_v10 = vrot.slane %v890_v58, %v10509_v15  ;;  %v1461_v11 = vcombine.low %v9192_v38, %v9193_v63  ;;  %v3085_v14 = vshrl.u32 %v10521_v25, 16  ;;  %v10017_v38 = vld [vmem:[#allocation7 + $0x50] sm:$0xff]  }
  0xad   : > { %9602 = vmatpush3.bf16.msra.mxu0 %v10013_v22  ;;  %v3090_v6 = vshll.u32 %v10525_v26, 16  ;;  %v1462_v19 = vcombine.low %v9194_v0, %v9195_v3  ;;  %v3084_v29 = vsel %vm10765_vm14, %v3077_v4, %v3082_v8  ;;  %v3093_v21 = vshrl.u32 %v10525_v26, 16  ;;  %v10018_v54 = vld [vmem:[#allocation7 + $0x10] sm:$0xff]  }
  0xae   : > { %9591 = vmatprep.mubr.bf16.mxu1 %v1460_v2  ;;  %9603 = vmatprep.subr.bf16.mxu0 %v12757_v37  ;;  %v3098_v32 = vshll.u32 %v10541_v35, 16  ;;  %v906_v34 = vcombine.low %v898_v10, %v905_v62  ;;  %v1469_v22 = vrot.slane %v1461_v11, %v10509_v15  ;;  %v3102_v43 = vshrl.u32 %v10518_v24, 16  ;;  %v9246_v2 = vld.sshfl [vmem:[%s10492_s24 + $0x4] sm:$0x13 pattern:$0x75316420] }
  0xaf   : > { %9630 = vmatpush3.bf16.msra.mxu1 %v10014_v49  ;;  %v3092_v25 = vsel %vm10765_vm14, %v3085_v14, %v3090_v6  ;;  %v1476_v44 = vrot.slane %v1462_v19, %v10509_v15  ;;  %v3107_v26 = vshll.u32 %v10531_v30, 16  ;;  %v3110_v35 = vshrl.u32 %v10531_v30, 16  ;;  %v9247_v10 = vld.sshfl [vmem:[%s10492_s24 + $0x8] sm:$0x13 pattern:$0x75316420] }
  0xb0   : > { %9631 = vmatprep.subr.bf16.mxu1 %v12757_v37  ;;  %v3100_v47 = vsel %vm10765_vm14, %v3093_v21, %v3098_v32  ;;  %v913_v49 = vrot.slane %v906_v34, %v10509_v15  ;;  %v3115_v57 = vshll.u32 %v10535_v31, 16  ;;  %v3118_v24 = vshrl.u32 %v10535_v31, 16  ;;  %v10020_v19 = vld [vmem:[#allocation7 + $0x8] sm:$0xff]  }
  0xb1   : > { %9604 = vmatpush3.bf16.msra.mxu0 %v10015_v1  ;;  %v3123_v61 = vshll.u32 %v10550_v39, 16  ;;  %v1477_v58 = vcombine.low %v1469_v22, %v1476_v44  ;;  %v3109_v62 = vsel %vm10765_vm14, %v3102_v43, %v3107_v26  ;;  %v3127_v30 = vshrl.u32 %v10528_v28, 16  ;;  %v10019_v28 = vld [vmem:[#allocation7 + $0x48] sm:$0xff]  }
  0xb2   : > { %9605 = vmatprep.subr.bf16.mxu0 %v12757_v37  ;;  %v3132_v63 = vshll.u32 %v10544_v36, 16  ;;  %9568 = vmatmul.mubr.bf16.gmra.mxu0 %v913_v49  ;;  %v3117_v0 = vsel %vm10765_vm14, %v3110_v35, %v3115_v57  ;;  %v3135_v39 = vshrl.u32 %v10544_v36, 16  ;;  %v3140_v1 = vshll.u32 %v10561_v46, 16  ;;  %v10022_v35 = vld [vmem:[#allocation7] sm:$0xff]  }
  0xb3   : > { %9632 = vmatpush3.bf16.msra.mxu1 %v10016_v13  ;;  %v3125_v31 = vsel %vm10765_vm14, %v3118_v24, %v3123_v61  ;;  %v1484_v3 = vrot.slane %v1477_v58, %v10509_v15  ;;  %9611 = vmatprep.mubr.msk.bf16.mxu0 %vm10280_vm15, %v12757_v37  ;;  %v3276_v8 = vcombine.low %v3084_v29, %v3092_v25  ;;  %v3143_v11 = vshrl.u32 %v10561_v46, 16  ;;  %v10021_v46 = vld [vmem:[#allocation7 + $0x40] sm:$0xff]  }
  0xb4   : > { %9633 = vmatprep.subr.bf16.mxu1 %v12757_v37  ;;  %v3134_v4 = vsel %vm10765_vm14, %v3127_v30, %v3132_v63  ;;  %v3142_v36 = vsel %vm10765_vm14, %v3135_v39, %v3140_v1  ;;  %v3277_v13 = vcombine.low %v3100_v47, %v3109_v62  ;;  %v3278_v14 = vcombine.low %v3117_v0, %v3125_v31 }
  0xb5   : > { %9606 = vmatpush3.bf16.msra.mxu0 %v10017_v38  ;;  %v3546_v6 = vcombine.high %v9245_v53, %v9245_v53  ;;  %9592 = vmatmul.mubr.bf16.gmra.mxu1 %v1484_v3  ;;  %v3279_v21 = vcombine.low %v3134_v4, %v3142_v36  ;;  %v3286_v32 = vrot.slane %v3276_v8, %v10509_v15  ;;  %v3148_v29 = vshll.u32 %v10587_v9, 16 }
  0xb6   : > { %9607 = vmatprep.subr.bf16.mxu0 %v12757_v37  ;;  %v3553_v34 = vrot.slane %v9245_v53, %v10509_v15  ;;  %9639 = vmatprep.mubr.msk.bf16.mxu1 %vm10280_vm15, %v12757_v37  ;;  %v3293_v22 = vrot.slane %v3277_v13, %v10509_v15  ;;  %v3300_v38 = vrot.slane %v3278_v14, %v10509_v15  ;;  %v3152_v43 = vshrl.u32 %v10592_v18, 16 }
  0xb7   : > { %9634 = vmatpush3.bf16.msra.mxu1 %v10018_v54  ;;  %v3560_v25 = vrot.slane %v3546_v6, %v10509_v15  ;;  %v3307_v44 = vrot.slane %v3279_v21, %v10509_v15  ;;  %v3569_v26 = vcombine.high %v9246_v2, %v9246_v2  ;;  %v3576_v9 = vrot.slane %v9246_v2, %v10509_v15  ;;  %v10023_v2 = vld [vmem:[#allocation7 + $0xb8] sm:$0xff]   ;;  %v10024_v21 = vld [vmem:[#allocation7 + $0xb0] sm:$0xff]  }
  0xb8   : > { %9635 = vmatprep.subr.bf16.mxu1 %v12757_v37  ;;  %v3561_v47 = vcombine.high %v3553_v34, %v3553_v34  ;;  %v3308_v53 = vcombine.low %v3286_v32, %v3293_v22  ;;  %v3592_v49 = vcombine.high %v9247_v10, %v9247_v10  ;;  %v10863_v54 = vrot.slane %v9247_v10, %v10509_v15 }
  0xb9   : > { %9608 = vmatpush3.bf16.msra.mxu0 %v10019_v28  ;;  %v3723_v57 = vcombine.low %v3553_v34, %v3560_v25  ;;  %v3309_v24 = vcombine.low %v3300_v38, %v3307_v44  ;;  %v3583_v18 = vrot.slane %v3569_v26, %v10509_v15  ;;  %v3584_v61 = vcombine.high %v3576_v9, %v3576_v9  ;;  %v9248_v38 = vld.sshfl [vmem:[%s10492_s24 + $0xc] sm:$0x13 pattern:$0x75316420] }
  0xba   : > { %9609 = vmatprep.subr.bf16.mxu0 %v12757_v37  ;;  %v3724_v58 = vcombine.low %v3561_v47, %v3576_v9  ;;  %v3316_v62 = vrot.slane %v3308_v53, %v10509_v15  ;;  %v3606_v30 = vrot.slane %v3592_v49, %v10509_v15  ;;  %v3150_v3 = vsel %vm10765_vm14, %v3143_v11, %v3148_v29 }
  0xbb   : > { %9636 = vmatpush3.bf16.msra.mxu1 %v10020_v19  ;;  %v3733_v63 = vrot.slane %v3723_v57, %v10509_v15  ;;  %v3323_v0 = vrot.slane %v3309_v24, %v10509_v15  ;;  %v3725_v31 = vcombine.low %v3583_v18, %v3584_v61  ;;  %v3157_v28 = vshll.u32 %v10596_v23, 16  ;;  %v10913_v24 = vld.sshfl [vmem:[%s10492_s24 + $0x14] sm:$0x13 pattern:$0x75316420] }
  0xbc   : > { %9637 = vmatprep.subr.bf16.mxu1 %v12757_v37  ;;  %v3740_v39 = vrot.slane %v3724_v58, %v10509_v15  ;;  %v3726_v1 = vcombine.low %v10863_v54, %v3606_v30  ;;  %v3160_v4 = vshrl.u32 %v10596_v23, 16  ;;  %v3165_v13 = vshll.u32 %v10632_v55, 16 }
  0xbd   : > { %9610 = vmatpush3.bf16.msra.mxu0 %v10021_v46  ;;  %v3324_v8 = vcombine.low %v3316_v62, %v3323_v0  ;;  %v3747_v10 = vrot.slane %v3725_v31, %v10509_v15  ;;  %v3159_v6 = vsel %vm10765_vm14, %v3152_v43, %v3157_v28  ;;  %v3168_v11 = vshrl.u32 %v10632_v55, 16 }
  0xbe   : > { %v3755_v36 = vcombine.low %v3733_v63, %v3740_v39  ;;  %9651 = vmatprep.subr.bf16.mxu0 %v12757_v37  ;;  %v3754_v14 = vrot.slane %v3726_v1, %v10509_v15  ;;  %v3173_v19 = vshll.u32 %v10636_v56, 16  ;;  %v3167_v32 = vsel %vm10765_vm14, %v3160_v4, %v3165_v13 }
  0xbf   : > { %9638 = vmatpush3.bf16.msra.mxu1 %v10022_v35  ;;  %v3177_v34 = vshrl.u32 %v10599_v27, 16  ;;  %v3182_v29 = vshll.u32 %v10604_v33, 16  ;;  %v3185_v56 = vshrl.u32 %v10604_v33, 16  ;;  %v3190_v22 = vshll.u32 %v10612_v40, 16 }
  0xc0   : > { %9612 = vmatmul.mubr.bf16.vlgmr.msra.gmra.mxu0 %v3324_v8  ;;  %v3763_v23 = vrot.slane %v3755_v36, %v10509_v15  ;;  %9679 = vmatprep.subr.mxu1 %v12757_v37  ;;  %v3756_v46 = vcombine.low %v3747_v10, %v3754_v14  ;;  %v3175_v55 = vsel %vm10765_vm14, %v3168_v11, %v3173_v19  ;;  %v3193_v25 = vshrl.u32 %v10612_v40, 16  ;;  %v9249_v35 = vld.sshfl [vmem:[%s10492_s24 + $0x10] sm:$0x13 pattern:$0x75316420]  ;;  %v10026_v36 = vld [vmem:[#allocation7 + $0xa0] sm:$0xff]  }
  0xc1   : > { %9652 = vmatpush3.bf16.msra.mxu0 %v10023_v2  ;;  %9615 = vmatprep.mubr.msk.bf16.mxu0 %vm10280_vm15, %v12757_v37  ;;  %v3184_v27 = vsel %vm10765_vm14, %v3177_v34, %v3182_v29  ;;  %v3198_v43 = vshll.u32 %v10666_v17, 16  ;;  %v3202_v44 = vshrl.u32 %v10679_v41, 16  ;;  %v3192_v33 = vsel %vm10765_vm14, %v3185_v56, %v3190_v22  ;;  %v10025_v41 = vld [vmem:[#allocation7 + $0xa8] sm:$0xff]  }
  0xc2   : > { %9653 = vmatprep.subr.bf16.mxu0 %v12757_v37  ;;  %v3770_v47 = vrot.slane %v3756_v46, %v10509_v15  ;;  %v3207_v26 = vshll.u32 %v10682_v42, 16  ;;  %v3325_v9 = vcombine.low %v3150_v3, %v3159_v6  ;;  %v3326_v49 = vcombine.low %v3167_v32, %v3175_v55 }
  0xc3   : > { %v3200_v53 = vsel %vm10765_vm14, %v3193_v25, %v3198_v43  ;;  %v3327_v57 = vcombine.low %v3184_v27, %v3192_v33  ;;  %v3607_v40 = vcombine.high %v10863_v54, %v10863_v54  ;;  %v3615_v58 = vcombine.high %v9248_v38, %v9248_v38 }
  0xc4   : > { %v3771_v17 = vcombine.low %v3763_v23, %v3770_v47  ;;  %v3209_v18 = vsel %vm10765_vm14, %v3202_v44, %v3207_v26  ;;  %v3335_v61 = vrot.slane %v3325_v9, %v10509_v15  ;;  %v3342_v30 = vrot.slane %v3326_v49, %v10509_v15 }
  0xc5   : > { %9654 = vmatpush3.bf16.msra.mxu0 %v10024_v21  ;;  %v3328_v62 = vcombine.low %v3200_v53, %v3209_v18  ;;  %v3349_v63 = vrot.slane %v3327_v57, %v10509_v15  ;;  %v3622_v0 = vrot.slane %v9248_v38, %v10509_v15  ;;  %v3629_v54 = vrot.slane %v3615_v58, %v10509_v15  ;;  %v10027_v38 = vld [vmem:[#allocation7 + $0x98] sm:$0xff]  }
  0xc6   : > { %9655 = vmatprep.subr.bf16.mxu0 %v12757_v37  ;;  %9640 = vmatmul.mubr.bf16.vlgmr.msra.gmra.mxu1 %v3771_v17  ;;  %v3638_v31 = vcombine.high %v9249_v35, %v9249_v35  ;;  %v3645_v39 = vrot.slane %v9249_v35, %v10509_v15  ;;  %v10928_v1 = vrot.slane %v10913_v24, %v10509_v15  ;;  %v3210_v21 = vshrl.u32 %v10682_v42, 16 }
  0xc7   : > { %v3356_v2 = vrot.slane %v3328_v62, %v10509_v15  ;;  %v3357_v3 = vcombine.low %v3335_v61, %v3342_v30  ;;  %9643 = vmatprep.mubr.msk.bf16.mxu1 %vm10280_vm15, %v12757_v37  ;;  %v3630_v28 = vcombine.high %v3622_v0, %v3622_v0  ;;  %v3772_v4 = vcombine.low %v3607_v40, %v3622_v0  ;;  %v9251_v62 = vld.sshfl [vmem:[%s10492_s24 + $0x18] sm:$0x13 pattern:$0x75316420] }
  0xc8   : > { %v3652_v8 = vrot.slane %v3638_v31, %v10509_v15  ;;  %v3653_v10 = vcombine.high %v3645_v39, %v3645_v39  ;;  %v3215_v32 = vshll.u32 %v10691_v50, 16  ;;  %v3218_v46 = vshrl.u32 %v10691_v50, 16  ;;  %v9252_v0 = vld.sshfl [vmem:[%s10492_s24 + $0x1c] sm:$0x13 pattern:$0x75316420] }
  0xc9   : > { %9656 = vmatpush3.bf16.msra.mxu0 %v10025_v41  ;;  %v3358_v13 = vcombine.low %v3349_v63, %v3356_v2  ;;  %v3365_v14 = vrot.slane %v3357_v3, %v10509_v15  ;;  %v3773_v6 = vcombine.low %v3629_v54, %v3630_v28  ;;  %v3782_v11 = vrot.slane %v3772_v4, %v10509_v15  ;;  %v9261_v3 = vld.sshfl [vmem:[%s10492_s24] sm:$0x32 pattern:$0x75316420] }
  0xca   : > { %9657 = vmatprep.subr.bf16.mxu0 %v12757_v37  ;;  %v3774_v19 = vcombine.low %v3645_v39, %v3652_v8  ;;  %v3775_v23 = vcombine.low %v3653_v10, %v10928_v1  ;;  %v3223_v55 = vshll.u32 %v10695_v51, 16  ;;  %v3217_v27 = vsel %vm10765_vm14, %v3210_v21, %v3215_v32 }
  0xcb   : > { %v3372_v34 = vrot.slane %v3358_v13, %v10509_v15  ;;  %v3789_v29 = vrot.slane %v3773_v6, %v10509_v15  ;;  %v3227_v42 = vshrl.u32 %v10687_v48, 16  ;;  %v3232_v51 = vshll.u32 %v10698_v52, 16 }
  0xcc   : > { %v3796_v56 = vrot.slane %v3774_v19, %v10509_v15  ;;  %v3803_v22 = vrot.slane %v3775_v23, %v10509_v15  ;;  %v3225_v50 = vsel %vm10765_vm14, %v3218_v46, %v3223_v55  ;;  %v3235_v47 = vshrl.u32 %v10698_v52, 16  ;;  %v9262_v19 = vld.sshfl [vmem:[%s10492_s24 + $0x4] sm:$0x32 pattern:$0x75316420] }
  0xcd   : > { %9658 = vmatpush3.bf16.msra.mxu0 %v10026_v36  ;;  %v3373_v25 = vcombine.low %v3365_v14, %v3372_v34  ;;  %v3804_v43 = vcombine.low %v3782_v11, %v3789_v29  ;;  %v3240_v33 = vshll.u32 %v10707_v59, 16  ;;  %v3243_v26 = vshrl.u32 %v10707_v59, 16 }
  0xce   : > { %9659 = vmatprep.subr.bf16.mxu0 %v12757_v37  ;;  %v3805_v44 = vcombine.low %v3796_v56, %v3803_v22  ;;  %v3234_v48 = vsel %vm10765_vm14, %v3227_v42, %v3232_v51  ;;  %v3248_v35 = vshll.u32 %v10711_v60, 16  ;;  %v3252_v53 = vshrl.u32 %v10759_v5, 16  ;;  %v9263_v42 = vld.sshfl [vmem:[%s10492_s24 + $0x8] sm:$0x32 pattern:$0x75316420] }
  0xcf   : > { %9616 = vmatmul.mubr.bf16.gmra.mxu0 %v3373_v25  ;;  %v3812_v9 = vrot.slane %v3804_v43, %v10509_v15  ;;  %v3242_v52 = vsel %vm10765_vm14, %v3235_v47, %v3240_v33  ;;  %v3257_v59 = vshll.u32 %v10774_v16, 16  ;;  %v3260_v57 = vshrl.u32 %v10774_v16, 16  ;;  %v10028_v16 = vld [vmem:[#allocation7 + $0x90] sm:$0xff]  }
  0xd0   : > { %v3819_v49 = vrot.slane %v3805_v44, %v10509_v15  ;;  %9619 = vmatprep.mubr.msk.bf16.mxu0 %vm10280_vm15, %v12757_v37  ;;  %v3250_v60 = vsel %vm10765_vm14, %v3243_v26, %v3248_v35  ;;  %v3265_v5 = vshll.u32 %v10779_v20, 16  ;;  %v3268_v40 = vshrl.u32 %v10779_v20, 16  ;;  %v10030_v44 = vld [vmem:[#allocation7 + $0x80] sm:$0xff]  }
  0xd1   : > { %9660 = vmatpush3.bf16.msra.mxu0 %v10027_v38  ;;  %v3273_v17 = vshll.u32 %v10789_v45, 16  ;;  %v3259_v18 = vsel %vm10765_vm14, %v3252_v53, %v3257_v59  ;;  %v3374_v61 = vcombine.low %v3217_v27, %v3225_v50  ;;  %v3375_v58 = vcombine.low %v3234_v48, %v3242_v52  ;;  %v9264_v26 = vld.sshfl [vmem:[%s10492_s24 + $0xc] sm:$0x32 pattern:$0x75316420] }
  0xd2   : > { %9661 = vmatprep.subr.bf16.mxu0 %v12757_v37  ;;  %v3820_v41 = vcombine.low %v3812_v9, %v3819_v49  ;;  %v3267_v30 = vsel %vm10765_vm14, %v3260_v57, %v3265_v5  ;;  %v3376_v20 = vcombine.low %v3250_v60, %v3259_v18  ;;  %v3661_v45 = vcombine.high %v10913_v24, %v10913_v24 }
  0xd3   : > { %v3275_v63 = vsel %vm10765_vm14, %v3268_v40, %v3273_v17  ;;  %v3384_v31 = vrot.slane %v3374_v61, %v10509_v15  ;;  %v3391_v39 = vrot.slane %v3375_v58, %v10509_v15  ;;  %v3676_v2 = vcombine.high %v10928_v1, %v10928_v1  ;;  %v10029_v1 = vld [vmem:[#allocation7 + $0x88] sm:$0xff]   ;;  %v9265_v58 = vld.sshfl [vmem:[%s10492_s24 + $0x10] sm:$0x32 pattern:$0x75316420] }
  0xd4   : > { %9644 = vmatmul.mubr.bf16.gmra.mxu1 %v3820_v41  ;;  %v3377_v54 = vcombine.low %v3267_v30, %v3275_v63  ;;  %v3398_v28 = vrot.slane %v3376_v20, %v10509_v15  ;;  %v3675_v7 = vrot.slane %v3661_v45, %v10509_v15  ;;  %v3684_v4 = vcombine.high %v9251_v62, %v9251_v62  ;;  %v9266_v20 = vld.sshfl [vmem:[%s10492_s24 + $0x14] sm:$0x32 pattern:$0x75316420] }
  0xd5   : > { %9647 = vmatprep.mubr.msk.bf16.mxu1 %vm10280_vm15, %v12757_v37  ;;  %v3691_v24 = vrot.slane %v9251_v62, %v10509_v15  ;;  %v3406_v10 = vcombine.low %v3384_v31, %v3391_v39  ;;  %v3707_v36 = vcombine.high %v9252_v0, %v9252_v0  ;;  %v3714_v13 = vrot.slane %v9252_v0, %v10509_v15 }
  0xd6   : > { %v3405_v8 = vrot.slane %v3377_v54, %v10509_v15  ;;  %9662 = vmatpush3.bf16.msra.mxu0 %v10028_v16  ;;  %v3698_v14 = vrot.slane %v3684_v4, %v10509_v15  ;;  %v3821_v11 = vcombine.low %v3675_v7, %v3676_v2  ;;  %v4149_v23 = vcombine.high %v9261_v3, %v9261_v3 }
  0xd7   : > { %v3699_v6 = vcombine.high %v3691_v24, %v3691_v24  ;;  %9663 = vmatprep.subr.bf16.mxu0 %v12757_v37  ;;  %v3414_v32 = vrot.slane %v3406_v10, %v10509_v15  ;;  %v3721_v34 = vrot.slane %v3707_v36, %v10509_v15  ;;  %v3722_v29 = vcombine.high %v3714_v13, %v3714_v13  ;;  %v9267_v10 = vld.sshfl [vmem:[%s10492_s24 + $0x18] sm:$0x32 pattern:$0x75316420] }
  0xd8   : > { %v3407_v21 = vcombine.low %v3398_v28, %v3405_v8  ;;  %v3822_v46 = vcombine.low %v3691_v24, %v3698_v14  ;;  %v3831_v56 = vrot.slane %v3821_v11, %v10509_v15  ;;  %v4156_v22 = vrot.slane %v9261_v3, %v10509_v15  ;;  %v9268_v14 = vld.sshfl [vmem:[%s10492_s24 + $0x1c] sm:$0x32 pattern:$0x75316420] }
  0xd9   : > { %v3823_v55 = vcombine.low %v3699_v6, %v3714_v13  ;;  %v3824_v27 = vcombine.low %v3721_v34, %v3722_v29  ;;  %v4163_v25 = vrot.slane %v4149_v23, %v10509_v15  ;;  %v4173_v43 = vcombine.high %v9262_v19, %v9262_v19 }
  0xda   : > { %v3421_v38 = vrot.slane %v3407_v21, %v10509_v15  ;;  %9664 = vmatpush3.bf16.msra.mxu0 %v10029_v1  ;;  %v3838_v50 = vrot.slane %v3822_v46, %v10509_v15  ;;  %v4164_v47 = vcombine.high %v4156_v22, %v4156_v22  ;;  %v4180_v33 = vrot.slane %v9262_v19, %v10509_v15 }
  0xdb   : > { %v3845_v51 = vrot.slane %v3823_v55, %v10509_v15  ;;  %9665 = vmatprep.subr.bf16.mxu0 %v12757_v37  ;;  %v3852_v48 = vrot.slane %v3824_v27, %v10509_v15  ;;  %v4165_v35 = vcombine.high %v4163_v25, %v4163_v25  ;;  %v4187_v53 = vrot.slane %v4173_v43, %v10509_v15 }
  0xdc   : > { %v3422_v9 = vcombine.low %v3414_v32, %v3421_v38  ;;  %v3853_v49 = vcombine.low %v3831_v56, %v3838_v50  ;;  %v4197_v52 = vcombine.high %v9263_v42, %v9263_v42  ;;  %v4204_v59 = vrot.slane %v9263_v42, %v10509_v15 }
  0xdd   : > { %v4334_v57 = vcombine.low %v4163_v25, %v4164_v47  ;;  %v3854_v60 = vcombine.low %v3845_v51, %v3852_v48  ;;  %v4335_v5 = vcombine.low %v4165_v35, %v4187_v53  ;;  %v9269_v40 = vcombine.high %v4180_v33, %v4187_v53 }
  0xde   : > { %9620 = vmatmul.mubr.bf16.gmra.mxu0 %v3422_v9  ;;  %v4221_v17 = vcombine.high %v9264_v26, %v9264_v26  ;;  %v3861_v41 = vrot.slane %v3853_v49, %v10509_v15  ;;  %v4211_v18 = vrot.slane %v4197_v52, %v10509_v15  ;;  %v4212_v61 = vcombine.high %v4204_v59, %v4204_v59 }
  0xdf   : > { %9666 = vmatpush3.bf16.msra.mxu0 %v10030_v44  ;;  %9667 = vmatprep.mubr.msk.bf16.mxu0 %vm10280_vm15, %v12757_v37  ;;  %v3868_v62 = vrot.slane %v3854_v60, %v10509_v15  ;;  %v4344_v16 = vrot.slane %v4334_v57, %v10509_v15  ;;  %v4351_v30 = vrot.slane %v4335_v5, %v10509_v15  ;;  %vm2740_vm14 = vcmask 1046528  }
  0xe0   : > { %v4358_v63 = vrot.slane %v9269_v40, %v10509_v15  ;;  %9714 = vmatprep.subr.mxu0 %v12757_v37  ;;  %v4337_v0 = vcombine.low %v4211_v18, %v4212_v61  ;;  %v4213_v45 = vcombine.high %v4211_v18, %v4211_v18  ;;  %v4228_v54 = vrot.slane %v9264_v26, %v10509_v15 }
  0xe1   : > { %v4235_v31 = vrot.slane %v4221_v17, %v10509_v15  ;;  %v3869_v39 = vcombine.low %v3861_v41, %v3868_v62  ;;  %v4366_v2 = vcombine.low %v4344_v16, %v4351_v30  ;;  %v4245_v3 = vcombine.high %v9265_v58, %v9265_v58  ;;  %v2811_v62 = vld [vmem:[#allocation10 + $0x70] sm:$0xff]  ;;  %v2810_v16 = vld [vmem:[#allocation10 + $0x68] sm:$0xff]  ;;  %v2809_v30 = vld [vmem:[#allocation10 + $0x60] sm:$0xff] }
  0xe2   : > { %v4252_v28 = vrot.slane %v9265_v58, %v10509_v15  ;;  %v4365_v7 = vrot.slane %v4337_v0, %v10509_v15  ;;  %v4269_v4 = vcombine.high %v9266_v20, %v9266_v20  ;;  %v4276_v6 = vrot.slane %v9266_v20, %v10509_v15  ;;  %v2812_v58 = vld [vmem:[#allocation10 + $0x78] sm:$0xff]  ;;  %v2807_v20 = vld [vmem:[#allocation10 + $0x50] sm:$0xff]  ;;  %v2806_v0 = vld [vmem:[#allocation10 + $0x48] sm:$0xff] }
  0xe3   : > { %v4383_v24 = vcombine.low %v4213_v45, %v4235_v31  ;;  %v9270_v8 = vcombine.high %v4228_v54, %v4235_v31  ;;  %9648 = vmatmul.mubr.bf16.gmra.mxu1 %v3869_v39  ;;  %v4374_v36 = vrot.slane %v4366_v2, %v10509_v15  ;;  %v4259_v13 = vrot.slane %v4245_v3, %v10509_v15  ;;  %v2805_v45 = vld [vmem:[#allocation10 + $0x40] sm:$0xff]  ;;  %v2804_v31 = vld [vmem:[#allocation10 + $0x38] sm:$0xff]  ;;  %v2803_v2 = vld [vmem:[#allocation10 + $0x30] sm:$0xff] }
  0xe4   : > { %v4260_v1 = vcombine.high %v4252_v28, %v4252_v28  ;;  %v4367_v11 = vcombine.low %v4358_v63, %v4365_v7  ;;  %v4283_v19 = vrot.slane %v4269_v4, %v10509_v15  ;;  %9711 = vmatprep.mubr.msk.f32.mxu1 %vm10280_vm15, %v12757_v37  ;;  %v4293_v29 = vcombine.high %v9267_v10, %v9267_v10  ;;  %v2808_v63 = vld [vmem:[#allocation10 + $0x58] sm:$0xff]  ;;  %v9204_v54 = vld [vmem:[%s12743_s2] ss:$0 sm:$0xff]  ;;  %v2802_v28 = vld [vmem:[#allocation10 + $0x28] sm:$0xff] }
  0xe5   : > { %v4393_v23 = vrot.slane %v4383_v24, %v10509_v15  ;;  %v4400_v21 = vrot.slane %v9270_v8, %v10509_v15  ;;  %v4261_v32 = vcombine.high %v4259_v13, %v4259_v13  ;;  %v4300_v46 = vrot.slane %v9267_v10, %v10509_v15  ;;  %v2801_v24 = vld [vmem:[#allocation10 + $0x20] sm:$0xff]  ;;  %v2800_v10 = vld [vmem:[#allocation10 + $0x18] sm:$0xff] }
  0xe6   : > { %v4385_v34 = vcombine.low %v4259_v13, %v4260_v1  ;;  %v4381_v55 = vrot.slane %v4367_v11, %v10509_v15  ;;  %v4317_v22 = vcombine.high %v9268_v14, %v9268_v14  ;;  %v4324_v38 = vrot.slane %v9268_v14, %v10509_v15 }
  0xe7   : > { %v4415_v56 = vcombine.low %v4393_v23, %v4400_v21  ;;  %v4386_v27 = vcombine.low %v4261_v32, %v4283_v19  ;;  %v4307_v25 = vrot.slane %v4293_v29, %v10509_v15  ;;  %v4308_v43 = vcombine.high %v4300_v46, %v4300_v46  ;;  %v2798_v29 = vld [vmem:[#allocation10 + $0x8] sm:$0xff] }
  0xe8   : > { %v4407_v42 = vrot.slane %v4385_v34, %v10509_v15  ;;  %v4382_v50 = vcombine.low %v4374_v36, %v4381_v55  ;;  %v4331_v51 = vrot.slane %v4317_v22, %v10509_v15  ;;  %v9271_v44 = vcombine.high %v4276_v6, %v4283_v19  ;;  %v2799_v19 = vld [vmem:[#allocation10 + $0x10] sm:$0xff] }
  0xe9   : > { %v4414_v47 = vrot.slane %v4386_v27, %v10509_v15  ;;  %v4309_v33 = vcombine.high %v4307_v25, %v4307_v25  ;;  %v4433_v26 = vcombine.low %v4307_v25, %v4308_v43  ;;  %v4423_v53 = vrot.slane %v4415_v56, %v10509_v15  ;;  %v2797_v43 = vld [vmem:[#allocation10] sm:$0xff] }
  0xea   : > { %9668 = vmatmul.mubr.bf16.vlgmr.msra.gmra.mxu0 %v4382_v50  ;;  %v9272_v9 = vcombine.high %v4324_v38, %v4331_v51  ;;  %v4442_v48 = vrot.slane %v9271_v44, %v10509_v15  ;;  %v2020_v39 = vrot.slane %v9204_v54, %v10509_v15  ;;  %v2013_v3 = vcombine.high %v9204_v54, %v9204_v54 }
  0xeb   : > { %9671 = vmatprep.mubr.msk.bf16.mxu0 %vm10280_vm15, %v12757_v37  ;;  %v4416_v35 = vcombine.low %v4407_v42, %v4414_v47  ;;  %v4434_v49 = vcombine.low %v4309_v33, %v4331_v51  ;;  %v4449_v52 = vrot.slane %v4433_v26, %v10509_v15  ;;  %9715 = vmatpush3.msra.mxu0 %v2812_v58  ;;  %v10281_v6 = vmov 1983009808  }
  0xec   : > { %v4463_v59 = vrot.slane %v9272_v9, %v10509_v15  ;;  %9716 = vmatprep.subr.mxu0 %v12757_v37  ;;  %v2028_v4 = vcombine.high %v2020_v39, %v2020_v39  ;;  %v2027_v8 = vrot.slane %v2013_v3, %v10509_v15  ;;  %v11077_v1 = vrot.slane %v2020_v39, %v10509_v15 }
  0xed   : > { %v4430_v57 = vrot.slane %v4416_v35, %v10509_v15  ;;  %v4456_v60 = vrot.slane %v4434_v49, %v10509_v15  ;;  %v4464_v5 = vcombine.low %v4442_v48, %v4449_v52  ;;  %9717 = vmatpush3.msra.mxu0 %v2811_v62  ;;  %v3986_v11 = vunpack.c.l.s4 %v10281_v6 }
  0xee   : > { %9718 = vmatprep.subr.mxu0 %v12757_v37  ;;  %v11080_v14 = vrot.slane %v2028_v4, %v10509_v15  ;;  %v2029_v21 = vcombine.high %v2027_v8, %v2027_v8  ;;  %v11084_v32 = vrot.slane %v2027_v8, %v10509_v15  ;;  %v11090_v38 = vcombine.high %v11077_v1, %v11077_v1 }
  0xef   : > { %v4431_v40 = vcombine.low %v4423_v53, %v4430_v57  ;;  %v4465_v17 = vcombine.low %v4456_v60, %v4463_v59  ;;  %v4472_v41 = vrot.slane %v4464_v5, %v10509_v15  ;;  %9719 = vmatpush3.msra.mxu0 %v2810_v16  ;;  %v3987_v25 = vunpack.c.0.s8 %v3986_v11 }
  0xf0   : > { %9720 = vmatprep.subr.mxu0 %v12757_v37  ;;  %v11094_v27 = vcombine.high %v11080_v14, %v11080_v14  ;;  %v11100_v33 = vrot.slane %v2029_v21, %v10509_v15  ;;  %v11104_v26 = vcombine.high %v11084_v32, %v11084_v32 }
  0xf1   : > { %v4479_v18 = vrot.slane %v4465_v17, %v10509_v15  ;;  %9721 = vmatpush3.msra.mxu0 %v2809_v30  ;;  %v11115_v5 = vsub.s32 %v3987_v25, %v10506_v12 }
  0xf2   : > { %9672 = vmatmul.mubr.bf16.gmra.mxu0 %v4431_v40  ;;  %9722 = vmatprep.subr.mxu0 %v12757_v37 }
  0xf3   : > { %9675 = vmatprep.mubr.msk.bf16.mxu0 %vm10280_vm15, %v12757_v37  ;;  %v4480_v61 = vcombine.low %v4472_v41, %v4479_v18  ;;  %9723 = vmatpush3.msra.mxu0 %v2808_v63 }
  0xf4   : > { %9724 = vmatprep.subr.mxu0 %v12757_v37 }
  0xf5   : > { %9725 = vmatpush3.msra.mxu0 %v2807_v20 }
  0xf6   : > { %9726 = vmatprep.subr.mxu0 %v12757_v37 }
  0xf7   : > { %9727 = vmatpush3.msra.mxu0 %v2806_v0 }
  0xf8   : > { %9728 = vmatprep.subr.mxu0 %v12757_v37 }
  0xf9   : > { %9729 = vmatpush3.msra.mxu0 %v2805_v45 }
  0xfa   : > { %9676 = vmatmul.mubr.bf16.gmra.mxu0 %v4480_v61  ;;  %9730 = vmatprep.subr.mxu0 %v12757_v37 }
  0xfb   : > { %9746 = vmatprep.mubr.msk.f32.mxu0 %vm10280_vm15, %v12757_v37  ;;  %9731 = vmatpush3.msra.mxu0 %v2804_v31 }
  0xfc   : > { %9732 = vmatprep.subr.mxu0 %v12757_v37 }
  0xfd   : > { %9733 = vmatpush3.msra.mxu0 %v2803_v2 }
  0xfe   : > { %9734 = vmatprep.subr.mxu0 %v12757_v37 }
  0xff   : > { %9735 = vmatpush3.msra.mxu0 %v2802_v28 }
 0x100   : > { %9736 = vmatprep.subr.mxu0 %v12757_v37 }
 0x101   : > { %9737 = vmatpush3.msra.mxu0 %v2801_v24 }
 0x102   : > { %9738 = vmatprep.subr.mxu0 %v12757_v37 }
 0x103   : > { %9739 = vmatpush3.msra.mxu0 %v2800_v10 }
 0x104   : > { %9740 = vmatprep.subr.mxu0 %v12757_v37 }
 0x105   : > { %9741 = vmatpush3.msra.mxu0 %v2799_v19 }
 0x106   : > { %9742 = vmatprep.subr.mxu0 %v12757_v37 }
 0x107   : > { %9743 = vmatpush3.msra.mxu0 %v2798_v29 }
 0x108   : > { %9744 = vmatprep.subr.mxu0 %v12757_v37 }
 0x109   : > { %9745 = vmatpush3.msra.mxu0 %v2797_v43 }
 0x10a   : > { %9777 = vmatprep.subr.bf16.mxu0 %v12757_v37 }
 0x160   : > { %v9565_v7 = vpop.f32.mrf.mxu0 }
 0x161   : > { %v9589_v13 = vpop.f32.mrf.mxu1 }
 0x162   : > { %v1000_v36 = vpop.f32.mrf.mxu0  ;;  %v1580_v23 = vadd.f32 %v9589_v13, %v9565_v7 }
 0x163   : > { %v1571_v34 = vpop.f32.mrf.mxu1 }
 0x164   : > { %v1706_v46 = vcombine.high %v1580_v23, %v1580_v23  ;;  %v1713_v55 = vrot.slane %v1580_v23, %v10509_v15  ;;  %v1572_v56 = vadd.f32 %v1571_v34, %v1000_v36  ;;  %v9566_v22 = vpop.f32.mrf.mxu0 }
 0x165   : > { %v9590_v42 = vpop.f32.mrf.mxu1 }
 0x166   : > { %v1720_v50 = vrot.slane %v1706_v46, %v10509_v15  ;;  %v1721_v51 = vcombine.high %v1713_v55, %v1713_v55  ;;  %v1729_v44 = vrot.slane %v1713_v55, %v10509_v15  ;;  %v1608_v47 = vcombine.high %v1572_v56, %v1572_v56  ;;  %v11128_v45 = vpop.f32.mrf.mxu0 }
 0x167   : > { %v1615_v9 = vrot.slane %v1572_v56, %v10509_v15  ;;  %v11107_v48 = vadd.f32 %v9590_v42, %v9566_v22  ;;  %v11135_v13 = vpop.f32.mrf.mxu1 }
 0x168   : > { %v1722_v35 = vcombine.high %v1720_v50, %v1720_v50  ;;  %v1736_v53 = vrot.slane %v1720_v50, %v10509_v15  ;;  %v1743_v49 = vrot.slane %v1721_v51, %v10509_v15  ;;  %v1751_v52 = vcombine.high %v1729_v44, %v1729_v44 }
 0x169   : > { %v2084_v59 = vadd.f32 %v11090_v38, %v1729_v44  ;;  %v1622_v57 = vrot.slane %v1608_v47, %v10509_v15  ;;  %v1623_v60 = vcombine.high %v1615_v9, %v1615_v9  ;;  %v1631_v2 = vrot.slane %v1615_v9, %v10509_v15 }
 0x16a   : > { %v1750_v40 = vrot.slane %v1722_v35, %v10509_v15  ;;  %v1752_v17 = vcombine.high %v1736_v53, %v1736_v53  ;;  %v1753_v41 = vcombine.high %v1743_v49, %v1743_v49  ;;  %v2085_v18 = vadd.f32 %v11094_v27, %v1743_v49 }
 0x16b   : > { %v2086_v61 = vadd.f32 %v11084_v32, %v1751_v52  ;;  %v2088_v58 = vadd.f32 %v11104_v26, %v1736_v53  ;;  %vm2140_vm0 = vcmp.gt.f32.partialorder %v2084_v59, 0.0  ;;  %v2196_v62 = vmul.f32 0.01, %v2084_v59 }
 0x16c   : > { %v1754_v16 = vcombine.high %v1750_v40, %v1750_v40  ;;  %v2087_v30 = vadd.f32 %v11100_v33, %v1753_v41  ;;  %v2089_v12 = vadd.f32 %v11077_v1, %v1750_v40  ;;  %v2090_v63 = vadd.f32 %v11080_v14, %v1752_v17 }
 0x16d   : > { %vm2141_vm1 = vcmp.gt.f32.partialorder %v2085_v18, 0.0  ;;  %vm2142_vm2 = vcmp.gt.f32.partialorder %v2086_v61, 0.0  ;;  %vm2144_vm3 = vcmp.gt.f32.partialorder %v2088_v58, 0.0  ;;  %v2197_v20 = vmul.f32 0.01, %v2085_v18 }
 0x16e   : > { %v11126_v0 = vadd.f32 %v11090_v38, %v1754_v16  ;;  %vm2143_vm4 = vcmp.gt.f32.partialorder %v2087_v30, 0.0  ;;  %vm2145_vm5 = vcmp.gt.f32.partialorder %v2089_v12, 0.0  ;;  %vm2146_vm6 = vcmp.gt.f32.partialorder %v2090_v63, 0.0 }
 0x16f   : > { %v2198_v54 = vmul.f32 0.01, %v2086_v61  ;;  %v2199_v31 = vmul.f32 0.01, %v2087_v30  ;;  %v2200_v39 = vmul.f32 0.01, %v2088_v58  ;;  %v2252_v7 = vsel %vm2140_vm0, %v2084_v59, %v2196_v62 }
 0x170   : > { %v2201_v3 = vmul.f32 0.01, %v2089_v12  ;;  %v2202_v28 = vmul.f32 0.01, %v2090_v63  ;;  %v2253_v4 = vsel %vm2141_vm1, %v2085_v18, %v2197_v20  ;;  %v11138_v6 = vmul.f32 0.01, %v11126_v0 }
 0x171   : > { %v2254_v24 = vsel %vm2142_vm2, %v2086_v61, %v2198_v54  ;;  %v2255_v8 = vsel %vm2143_vm4, %v2087_v30, %v2199_v31  ;;  %v2256_v10 = vsel %vm2144_vm3, %v2088_v58, %v2200_v39  ;;  %v2445_v36 = vcombine.low %v2252_v7, %v2253_v4 }
 0x172   : > { %v11141_v11 = vsel %vm2145_vm5, %v2089_v12, %v2201_v3  ;;  %v11144_v19 = vsel %vm2146_vm6, %v2090_v63, %v2202_v28  ;;  %v2446_v23 = vcombine.low %v2254_v24, %v2255_v8  ;;  %v11146_v21 = vpop.f32.mrf.mxu0  ;;  %v2474_v29 = vrot.slane %v2256_v10, %v10509_v15 }
 0x173   : > { %v11149_v34 = vrot.slane %v2445_v36, %v10509_v15  ;;  %v1624_v46 = vcombine.high %v1622_v57, %v1622_v57  ;;  %v1638_v55 = vrot.slane %v1622_v57, %v10509_v15  ;;  %v1645_v22 = vrot.slane %v1623_v60, %v10509_v15 }
 0x174   : > { %v2467_v56 = vrot.slane %v2446_v23, %v10509_v15  ;;  %v1653_v42 = vcombine.high %v1631_v2, %v1631_v2  ;;  %v2068_v25 = vadd.f32 %v11077_v1, %v1631_v2  ;;  %v11156_v43 = vpop.f32.mrf.mxu0  ;;  %v2492_v50 = vcombine.low %v11141_v11, %v11144_v19 }
 0x175   : > { %v1652_v51 = vrot.slane %v1624_v46, %v10509_v15  ;;  %v1654_v44 = vcombine.high %v1638_v55, %v1638_v55  ;;  %v2072_v47 = vadd.f32 %v11084_v32, %v1638_v55  ;;  %v11162_v9 = vpop.f32.mrf.mxu1  ;;  %v1655_v35 = vcombine.high %v1645_v22, %v1645_v22 }
 0x176   : > { %v2069_v53 = vadd.f32 %v11080_v14, %v1645_v22  ;;  %v2070_v49 = vadd.f32 %v11090_v38, %v1653_v42  ;;  %v1755_v52 = vcombine.high %v11107_v48, %v11107_v48  ;;  %v9570_v59 = vpop.f32.mrf.mxu0  ;;  %v11168_v57 = vcombine.low %v2467_v56, %v2474_v29 }
 0x177   : > { %v1656_v60 = vcombine.high %v1652_v51, %v1652_v51  ;;  %v2073_v40 = vadd.f32 %v11100_v33, %v1652_v51  ;;  %v2074_v17 = vadd.f32 %v11104_v26, %v1654_v44  ;;  %v11172_v41 = vpop.f32.mrf.mxu1  ;;  %v2071_v18 = vadd.f32 %v11094_v27, %v1655_v35 }
 0x178   : > { %vm2124_vm7 = vcmp.gt.f32.partialorder %v2068_v25, 0.0  ;;  %vm2125_vm8 = vcmp.gt.f32.partialorder %v2069_v53, 0.0  ;;  %vm2126_vm9 = vcmp.gt.f32.partialorder %v2070_v49, 0.0  ;;  %vm2128_vm10 = vcmp.gt.f32.partialorder %v2072_v47, 0.0 }
 0x179   : > { %v11176_v61 = vadd.f32 %v11077_v1, %v1656_v60  ;;  %vm2129_vm11 = vcmp.gt.f32.partialorder %v2073_v40, 0.0  ;;  %vm2130_vm12 = vcmp.gt.f32.partialorder %v2074_v17, 0.0  ;;  %v9594_v58 = vpop.f32.mrf.mxu1  ;;  %vm2127_vm13 = vcmp.gt.f32.partialorder %v2071_v18, 0.0 }
 0x17a   : > { %v2180_v62 = vmul.f32 0.01, %v2068_v25  ;;  %v2181_v16 = vmul.f32 0.01, %v2069_v53  ;;  %v1762_v30 = vrot.slane %v11107_v48, %v10509_v15  ;;  %v2182_v12 = vmul.f32 0.01, %v2070_v49  ;;  %v11188_v48 = vpop.f32.mrf.mxu0 }
 0x17b   : > { %v2183_v63 = vmul.f32 0.01, %v2071_v18  ;;  %v2184_v20 = vmul.f32 0.01, %v2072_v47  ;;  %v1769_v54 = vrot.slane %v1755_v52, %v10509_v15  ;;  %v2185_v31 = vmul.f32 0.01, %v2073_v40 }
 0x17c   : > { %v2186_v39 = vmul.f32 0.01, %v2074_v17  ;;  %v11182_v2 = vmul.f32 0.01, %v11176_v61  ;;  %v2236_v3 = vsel %vm2124_vm7, %v2068_v25, %v2180_v62  ;;  %v2237_v28 = vsel %vm2125_vm8, %v2069_v53, %v2181_v16 }
 0x17d   : > { %v2238_v7 = vsel %vm2126_vm9, %v2070_v49, %v2182_v12  ;;  %v2239_v4 = vsel %vm2127_vm13, %v2071_v18, %v2183_v63  ;;  %v2240_v24 = vsel %vm2128_vm10, %v2072_v47, %v2184_v20  ;;  %v2241_v8 = vsel %vm2129_vm11, %v2073_v40, %v2185_v31 }
 0x17e   : > { %v2242_v10 = vsel %vm2130_vm12, %v2074_v17, %v2186_v39  ;;  %v2348_v36 = vcombine.low %v2236_v3, %v2237_v28  ;;  %v2349_v23 = vcombine.low %v2238_v7, %v2239_v4  ;;  %v2350_v29 = vcombine.low %v2240_v24, %v2241_v8 }
 0x17f   : > { %v2378_v46 = vrot.slane %v2242_v10, %v10509_v15  ;;  %v1770_v55 = vcombine.high %v1762_v30, %v1762_v30  ;;  %v1771_v56 = vcombine.high %v1769_v54, %v1769_v54  ;;  %v1778_v51 = vrot.slane %v1762_v30, %v10509_v15 }
 0x180   : > { %v11193_v22 = vpop.f32.mrf.mxu0  ;;  %v2357_v42 = vrot.slane %v2348_v36, %v10509_v15  ;;  %v2364_v25 = vrot.slane %v2349_v23, %v10509_v15  ;;  %v1785_v44 = vrot.slane %v1769_v54, %v10509_v15  ;;  %v2371_v47 = vrot.slane %v2350_v29, %v10509_v15  ;;  %v11211_v54 = vpop.f32.mrf.mxu1 }
 0x181   : > { %v1792_v35 = vrot.slane %v1770_v55, %v10509_v15  ;;  %v1799_v53 = vrot.slane %v1771_v56, %v10509_v15  ;;  %vm2147_vm0 = vcmp.gt.f32.partialorder %v11126_v0, 0.0  ;;  %v1800_v59 = vcombine.high %v1778_v51, %v1778_v51 }
 0x182   : > { %v9613_v49 = vpop.f32.mrf.mxu0  ;;  %v2379_v52 = vcombine.low %v2357_v42, %v2364_v25  ;;  %v1801_v60 = vcombine.high %v1785_v44, %v1785_v44  ;;  %v2092_v40 = vadd.f32 %v11094_v27, %v1778_v51  ;;  %v2380_v17 = vcombine.low %v2371_v47, %v2378_v46 }
 0x183   : > { %v1802_v18 = vcombine.high %v1792_v35, %v1792_v35  ;;  %v1803_v58 = vcombine.high %v1799_v53, %v1799_v53  ;;  %v2093_v62 = vadd.f32 %v11084_v32, %v1792_v35  ;;  %v2094_v12 = vadd.f32 %v11100_v33, %v1800_v59 }
 0x184   : > { %v11205_v16 = vpop.f32.mrf.mxu0  ;;  %v2387_v30 = vrot.slane %v2379_v52, %v10509_v15  ;;  %v2096_v63 = vadd.f32 %v11077_v1, %v1785_v44  ;;  %v2097_v20 = vadd.f32 %v11080_v14, %v1799_v53  ;;  %v2394_v31 = vrot.slane %v2380_v17, %v10509_v15 }
 0x185   : > { %v2095_v39 = vadd.f32 %v11104_v26, %v1802_v18  ;;  %v2098_v3 = vadd.f32 %v11090_v38, %v1801_v60  ;;  %v2099_v28 = vadd.f32 %v11094_v27, %v1803_v58  ;;  %vm2148_vm1 = vcmp.gt.f32.partialorder %v2092_v40, 0.0 }
 0x186   : > { %v9614_v7 = vpop.f32.mrf.mxu0  ;;  %vm2149_vm2 = vcmp.gt.f32.partialorder %v2093_v62, 0.0  ;;  %vm2150_vm3 = vcmp.gt.f32.partialorder %v2094_v12, 0.0  ;;  %vm2152_vm4 = vcmp.gt.f32.partialorder %v2096_v63, 0.0  ;;  %v11217_v4 = vpop.f32.mrf.mxu1  ;;  %v2395_v24 = vcombine.low %v2387_v30, %v2394_v31 }
 0x187   : > { %vm2151_vm5 = vcmp.gt.f32.partialorder %v2095_v39, 0.0  ;;  %vm2153_vm6 = vcmp.gt.f32.partialorder %v2097_v20, 0.0  ;;  %vm2154_vm7 = vcmp.gt.f32.partialorder %v2098_v3, 0.0  ;;  %vm2155_vm8 = vcmp.gt.f32.partialorder %v2099_v28, 0.0 }
 0x188   : > { %v2204_v8 = vmul.f32 0.01, %v2092_v40  ;;  %v2205_v10 = vmul.f32 0.01, %v2093_v62  ;;  %v2259_v36 = vsel %vm2147_vm0, %v11126_v0, %v11138_v6  ;;  %v9641_v23 = vpop.f32.mrf.mxu1  ;;  %v2741_v29 = vsel %vm2740_vm14, %v2395_v24, -inf }
 0x189   : > { %v2206_v46 = vmul.f32 0.01, %v2094_v12  ;;  %v2207_v55 = vmul.f32 0.01, %v2095_v39  ;;  %v2501_v56 = vrot.slane %v2492_v50, %v10509_v15  ;;  %v2742_v42 = vrot.slane %v2741_v29, 4 }
 0x18a   : > { %v2208_v25 = vmul.f32 0.01, %v2096_v63  ;;  %v2209_v51 = vmul.f32 0.01, %v2097_v20  ;;  %v2260_v44 = vsel %vm2148_vm1, %v2092_v40, %v2204_v8  ;;  %v11229_v47 = vpop.f32.mrf.mxu1  ;;  %v2210_v35 = vmul.f32 0.01, %v2098_v3 }
 0x18b   : > { %v2211_v53 = vmul.f32 0.01, %v2099_v28  ;;  %v2261_v0 = vsel %vm2149_vm2, %v2093_v62, %v2205_v10  ;;  %v2262_v6 = vsel %vm2150_vm3, %v2094_v12, %v2206_v46  ;;  %v2743_v49 = vmax.f32 %v2741_v29, %v2742_v42 }
 0x18c   : > { %v2263_v52 = vsel %vm2151_vm5, %v2095_v39, %v2207_v55  ;;  %v2264_v59 = vsel %vm2152_vm4, %v2096_v63, %v2208_v25  ;;  %v2265_v11 = vsel %vm2153_vm6, %v2097_v20, %v2209_v51  ;;  %v9642_v19 = vpop.f32.mrf.mxu1  ;;  %v2266_v50 = vsel %vm2154_vm7, %v2098_v3, %v2210_v35 }
 0x18d   : > { %v2267_v60 = vsel %vm2155_vm8, %v2099_v28, %v2211_v53  ;;  %v2493_v40 = vcombine.low %v2259_v36, %v2260_v44  ;;  %v2494_v17 = vcombine.low %v2261_v0, %v2262_v6  ;;  %v2744_v18 = vrot.slane %v2743_v49, 2  ;;  %v5098_v44 = vld [vmem:[#allocation10 + $0xf8] sm:$0xff] }
 0x18e   : > { %v2522_v58 = vrot.slane %v2263_v52, %v10509_v15  ;;  %v2540_v62 = vcombine.low %v2264_v59, %v2265_v11  ;;  %v2541_v30 = vcombine.low %v2266_v50, %v2267_v60  ;;  %v1575_v63 = vadd.f32 %v11135_v13, %v11128_v45  ;;  %9680 = vmatpush3.msra.mxu1 %v5098_v44  ;;  %v5093_v44 = vld [vmem:[#allocation10 + $0xd0] sm:$0xff] }
 0x18f   : > { %v2508_v12 = vrot.slane %v2493_v40, %v10509_v15  ;;  %v2515_v31 = vrot.slane %v2494_v17, %v10509_v15  ;;  %vm2131_vm9 = vcmp.gt.f32.partialorder %v11176_v61, 0.0  ;;  %v11244_v20 = vpop.f32.mrf.mxu0  ;;  %v2490_v39 = vrot.slane %v11168_v57, %v10509_v15  ;;  %9681 = vmatprep.subr.mxu1 %v12757_v37  ;;  %v5096_v17 = vld [vmem:[#allocation10 + $0xe8] sm:$0xff] }
 0x190   : > { %v11248_v3 = vmax.f32 %v2743_v49, %v2744_v18  ;;  %v2549_v28 = vrot.slane %v2540_v62, %v10509_v15  ;;  %v2556_v7 = vrot.slane %v2541_v30, %v10509_v15  ;;  %v1657_v10 = vcombine.high %v1575_v63, %v1575_v63  ;;  %v5097_v49 = vld [vmem:[#allocation10 + $0xf0] sm:$0xff] }
 0x191   : > { %v2523_v24 = vcombine.low %v2501_v56, %v2508_v12  ;;  %v2524_v8 = vcombine.low %v2515_v31, %v2522_v58  ;;  %v1664_v36 = vrot.slane %v1575_v63, %v10509_v15  ;;  %v9617_v23 = vpop.f32.mrf.mxu0  ;;  %v11255_v13 = vsel %vm2131_vm9, %v11176_v61, %v11182_v2  ;;  %9682 = vmatpush3.msra.mxu1 %v5097_v49 }
 0x192   : > { %v2571_v45 = vcombine.low %v2549_v28, %v2556_v7  ;;  %v1596_v29 = vadd.f32 %v11162_v9, %v11146_v21  ;;  %v11261_v46 = vadd.f32 %v11172_v41, %v11156_v43  ;;  %v1671_v42 = vrot.slane %v1657_v10, %v10509_v15  ;;  %9683 = vmatprep.subr.mxu1 %v12757_v37  ;;  %v5094_v23 = vld [vmem:[#allocation10 + $0xd8] sm:$0xff] }
 0x193   : > { %v2531_v55 = vrot.slane %v2523_v24, %v10509_v15  ;;  %v2538_v56 = vrot.slane %v2524_v8, %v10509_v15  ;;  %v1672_v25 = vcombine.high %v1664_v36, %v1664_v36  ;;  %v11266_v51 = vpop.f32.mrf.mxu0  ;;  %v1680_v61 = vrot.slane %v1664_v36, %v10509_v15  ;;  %9684 = vmatpush3.msra.mxu1 %v5096_v17  ;;  %v5095_v24 = vld [vmem:[#allocation10 + $0xe0] sm:$0xff] }
 0x194   : > { %v1902_v2 = vcombine.high %v1596_v29, %v1596_v29  ;;  %v11270_v35 = vrot.slane %v1596_v29, %v10509_v15  ;;  %v11274_v21 = vadd.f32 %v11211_v54, %v11188_v48  ;;  %v11276_v43 = vpop.f32.mrf.mxu1  ;;  %v1673_v41 = vcombine.high %v1671_v42, %v1671_v42  ;;  %9685 = vmatprep.subr.mxu1 %v12757_v37 }
 0x195   : > { %v2539_v9 = vcombine.low %v2531_v55, %v2538_v56  ;;  %v1687_v53 = vrot.slane %v1671_v42, %v10509_v15  ;;  %v1694_v0 = vrot.slane %v1672_v25, %v10509_v15  ;;  %v9618_v6 = vpop.f32.mrf.mxu0  ;;  %v11282_v52 = vrot.slane %v2571_v45, %v10509_v15  ;;  %9686 = vmatpush3.msra.mxu1 %v5095_v24 }
 0x196   : > { %v1702_v59 = vcombine.high %v1680_v61, %v1680_v61  ;;  %v2076_v48 = vadd.f32 %v11080_v14, %v1680_v61  ;;  %v11286_v54 = vrot.slane %v1902_v2, %v10509_v15  ;;  %v9645_v11 = vpop.f32.mrf.mxu1  ;;  %v1701_v50 = vrot.slane %v1673_v41, %v10509_v15  ;;  %9687 = vmatprep.subr.mxu1 %v12757_v37 }
 0x197   : > { %v11289_v19 = vsel %vm2740_vm14, %v2539_v9, -inf  ;;  %v1703_v60 = vcombine.high %v1687_v53, %v1687_v53  ;;  %v1704_v40 = vcombine.high %v1694_v0, %v1694_v0  ;;  %v2077_v18 = vadd.f32 %v11090_v38, %v1694_v0  ;;  %9688 = vmatpush3.msra.mxu1 %v5094_v23 }
 0x198   : > { %v2078_v58 = vadd.f32 %v11094_v27, %v1702_v59  ;;  %v2080_v62 = vadd.f32 %v11100_v33, %v1687_v53  ;;  %v1917_v30 = vcombine.high %v11270_v35, %v11270_v35  ;;  %v11298_v12 = vpop.f32.mrf.mxu1  ;;  %v1705_v31 = vcombine.high %v1701_v50, %v1701_v50  ;;  %9689 = vmatprep.subr.mxu1 %v12757_v37 }
 0x199   : > { %v2079_v63 = vadd.f32 %v11084_v32, %v1704_v40  ;;  %v2081_v28 = vadd.f32 %v11104_v26, %v1701_v50  ;;  %v2082_v7 = vadd.f32 %v11077_v1, %v1703_v60  ;;  %v2763_v8 = vrot.slane %v11289_v19, 4  ;;  %9690 = vmatpush3.msra.mxu1 %v5093_v44 }
 0x19a   : > { %vm2132_vm10 = vcmp.gt.f32.partialorder %v2076_v48, 0.0  ;;  %vm2133_vm11 = vcmp.gt.f32.partialorder %v2077_v18, 0.0  ;;  %vm2134_vm12 = vcmp.gt.f32.partialorder %v2078_v58, 0.0  ;;  %v9646_v10 = vpop.f32.mrf.mxu1  ;;  %v2083_v36 = vadd.f32 %v11080_v14, %v1705_v31  ;;  %9691 = vmatprep.subr.mxu1 %v12757_v37 }
 0x19b   : > { %vm2135_vm13 = vcmp.gt.f32.partialorder %v2079_v63, 0.0  ;;  %vm2136_vm0 = vcmp.gt.f32.partialorder %v2080_v62, 0.0  ;;  %vm2137_vm1 = vcmp.gt.f32.partialorder %v2081_v28, 0.0  ;;  %vm2138_vm2 = vcmp.gt.f32.partialorder %v2082_v7, 0.0 }
 0x19c   : > { %v2188_v45 = vmul.f32 0.01, %v2076_v48  ;;  %v2189_v29 = vmul.f32 0.01, %v2077_v18  ;;  %v1918_v55 = vcombine.high %v11286_v54, %v11286_v54  ;;  %vm2139_vm3 = vcmp.gt.f32.partialorder %v2083_v36, 0.0 }
 0x19d   : > { %v2190_v56 = vmul.f32 0.01, %v2078_v58  ;;  %v2191_v42 = vmul.f32 0.01, %v2079_v63  ;;  %v1925_v25 = vrot.slane %v11270_v35, %v10509_v15  ;;  %v2192_v61 = vmul.f32 0.01, %v2080_v62 }
 0x19e   : > { %v2193_v2 = vmul.f32 0.01, %v2081_v28  ;;  %v2194_v9 = vmul.f32 0.01, %v2082_v7  ;;  %v2244_v41 = vsel %vm2132_vm10, %v2076_v48, %v2188_v45  ;;  %v11313_v53 = vpop.f32.mrf.mxu0  ;;  %v2195_v0 = vmul.f32 0.01, %v2083_v36 }
 0x19f   : > { %v2245_v6 = vsel %vm2133_vm11, %v2077_v18, %v2189_v29  ;;  %v2246_v49 = vsel %vm2134_vm12, %v2078_v58, %v2190_v56  ;;  %v2247_v59 = vsel %vm2135_vm13, %v2079_v63, %v2191_v42  ;;  %v5092_v35 = vld [vmem:[#allocation10 + $0xc8] sm:$0xff]  ;;  %v2248_v11 = vsel %vm2136_vm0, %v2080_v62, %v2192_v61  ;;  %v5091_v63 = vld [vmem:[#allocation10 + $0xc0] sm:$0xff]  ;;  %v5090_v29 = vld [vmem:[#allocation10 + $0xb8] sm:$0xff] }
 0x1a0   : > { %v2249_v50 = vsel %vm2137_vm1, %v2081_v28, %v2193_v2  ;;  %v2250_v60 = vsel %vm2138_vm2, %v2082_v7, %v2194_v9  ;;  %v2396_v48 = vcombine.low %v11255_v13, %v2244_v41  ;;  %v9621_v40 = vpop.f32.mrf.mxu0  ;;  %9692 = vmatpush3.msra.mxu1 %v5092_v35  ;;  %v2251_v17 = vsel %vm2139_vm3, %v2083_v36, %v2195_v0 }
 0x1a1   : > { %v2397_v18 = vcombine.low %v2245_v6, %v2246_v49  ;;  %v2398_v31 = vcombine.low %v2247_v59, %v2248_v11  ;;  %v2426_v58 = vrot.slane %v2249_v50, %v10509_v15  ;;  %9693 = vmatprep.subr.mxu1 %v12757_v37  ;;  %v2444_v62 = vcombine.low %v2250_v60, %v2251_v17  ;;  %v5088_v6 = vld [vmem:[#allocation10 + $0xa8] sm:$0xff]  ;;  %v5087_v17 = vld [vmem:[#allocation10 + $0xa0] sm:$0xff] }
 0x1a2   : > { %v2405_v24 = vrot.slane %v2396_v48, %v10509_v15  ;;  %v1932_v28 = vrot.slane %v11286_v54, %v10509_v15  ;;  %v1939_v7 = vrot.slane %v1917_v30, %v10509_v15  ;;  %v11330_v13 = vpop.f32.mrf.mxu0  ;;  %9694 = vmatpush3.msra.mxu1 %v5091_v63  ;;  %v1946_v23 = vrot.slane %v1918_v55, %v10509_v15  ;;  %v5089_v55 = vld [vmem:[#allocation10 + $0xb0] sm:$0xff] }
 0x1a3   : > { %v2412_v10 = vrot.slane %v2397_v18, %v10509_v15  ;;  %v2419_v36 = vrot.slane %v2398_v31, %v10509_v15  ;;  %v1947_v45 = vcombine.high %v1925_v25, %v1925_v25  ;;  %9695 = vmatprep.subr.mxu1 %v12757_v37  ;;  %v2453_v56 = vrot.slane %v2444_v62, %v10509_v15  ;;  %v11338_v30 = vpop.f32.mrf.mxu1  ;;  %v5085_v62 = vld [vmem:[#allocation10 + $0x90] sm:$0xff] }
 0x1a4   : > { %v1948_v42 = vcombine.high %v1932_v28, %v1932_v28  ;;  %v1949_v44 = vcombine.high %v1939_v7, %v1939_v7  ;;  %v2116_v54 = vadd.f32 %v11104_v26, %v1925_v25  ;;  %v9622_v61 = vpop.f32.mrf.mxu0  ;;  %9696 = vmatpush3.msra.mxu1 %v5090_v29  ;;  %v1950_v41 = vcombine.high %v1946_v23, %v1946_v23 }
 0x1a5   : > { %v2427_v2 = vcombine.low %v2405_v24, %v2412_v10  ;;  %v2428_v9 = vcombine.low %v2419_v36, %v2426_v58  ;;  %v2117_v0 = vadd.f32 %v11077_v1, %v1939_v7  ;;  %9697 = vmatprep.subr.mxu1 %v12757_v37  ;;  %v2475_v49 = vcombine.low %v2453_v56, %v11149_v34  ;;  %v9649_v11 = vpop.f32.mrf.mxu1  ;;  %v5086_v24 = vld [vmem:[#allocation10 + $0x98] sm:$0xff] }
 0x1a6   : > { %v2118_v59 = vadd.f32 %v11080_v14, %v1947_v45  ;;  %v2119_v35 = vadd.f32 %v11090_v38, %v1949_v44  ;;  %v2120_v25 = vadd.f32 %v11094_v27, %v1932_v28  ;;  %9698 = vmatpush3.msra.mxu1 %v5089_v55  ;;  %v2121_v48 = vadd.f32 %v11084_v32, %v1946_v23 }
 0x1a7   : > { %v2435_v50 = vrot.slane %v2427_v2, %v10509_v15  ;;  %v2442_v60 = vrot.slane %v2428_v9, %v10509_v15  ;;  %v2122_v40 = vadd.f32 %v11100_v33, %v1948_v42  ;;  %9699 = vmatprep.subr.mxu1 %v12757_v37  ;;  %v11354_v34 = vmax.f32 %v11289_v19, %v2763_v8  ;;  %v11358_v58 = vpop.f32.mrf.mxu1  ;;  %v5084_v2 = vld [vmem:[#allocation10 + $0x88] sm:$0xff] }
 0x1a8   : > { %v2483_v18 = vrot.slane %v2475_v49, %v10509_v15  ;;  %v2123_v31 = vadd.f32 %v11104_v26, %v1950_v41  ;;  %vm2172_vm4 = vcmp.gt.f32.partialorder %v2116_v54, 0.0  ;;  %9700 = vmatpush3.msra.mxu1 %v5088_v6  ;;  %vm2173_vm5 = vcmp.gt.f32.partialorder %v2117_v0, 0.0 }
 0x1a9   : > { %v2443_v63 = vcombine.low %v2435_v50, %v2442_v60  ;;  %vm2174_vm6 = vcmp.gt.f32.partialorder %v2118_v59, 0.0  ;;  %vm2175_vm7 = vcmp.gt.f32.partialorder %v2119_v35, 0.0  ;;  %9701 = vmatprep.subr.mxu1 %v12757_v37  ;;  %vm2176_vm8 = vcmp.gt.f32.partialorder %v2120_v25, 0.0  ;;  %v9650_v8 = vpop.f32.mrf.mxu1 }
 0x1aa   : > { %v2491_v19 = vcombine.low %v2483_v18, %v2490_v39  ;;  %vm2177_vm9 = vcmp.gt.f32.partialorder %v2121_v48, 0.0  ;;  %vm2178_vm10 = vcmp.gt.f32.partialorder %v2122_v40, 0.0  ;;  %9702 = vmatpush3.msra.mxu1 %v5087_v17  ;;  %vm2179_vm11 = vcmp.gt.f32.partialorder %v2123_v31, 0.0  ;;  %v11365_v36 = vpop.f32.mrf.mxu0  ;;  %v5083_v17 = vld [vmem:[#allocation10 + $0x80] sm:$0xff] }
 0x1ab   : > { %v2748_v28 = vsel %vm2740_vm14, %v2443_v63, -inf  ;;  %v2228_v7 = vmul.f32 0.01, %v2116_v54  ;;  %v2229_v10 = vmul.f32 0.01, %v2117_v0  ;;  %9703 = vmatprep.subr.mxu1 %v12757_v37  ;;  %v1804_v57 = vcombine.high %v11261_v46, %v11261_v46 }
 0x1ac   : > { %v2749_v23 = vrot.slane %v2748_v28, 4  ;;  %v2230_v45 = vmul.f32 0.01, %v2118_v59  ;;  %v2231_v29 = vmul.f32 0.01, %v2119_v35  ;;  %9704 = vmatpush3.msra.mxu1 %v5086_v24  ;;  %v11371_v39 = vsel %vm2740_vm14, %v2491_v19, -inf  ;;  %v9669_v61 = vpop.f32.mrf.mxu0 }
 0x1ad   : > { %v2232_v56 = vmul.f32 0.01, %v2120_v25  ;;  %v2233_v42 = vmul.f32 0.01, %v2121_v48  ;;  %v11374_v44 = vsel %vm2172_vm4, %v2116_v54, %v2228_v7  ;;  %9705 = vmatprep.subr.mxu1 %v12757_v37  ;;  %v2234_v41 = vmul.f32 0.01, %v2122_v40 }
 0x1ae   : > { %v2750_v9 = vmax.f32 %v2748_v28, %v2749_v23  ;;  %v2235_v55 = vmul.f32 0.01, %v2123_v31  ;;  %v2285_v6 = vsel %vm2173_vm5, %v2117_v0, %v2229_v10  ;;  %9706 = vmatpush3.msra.mxu1 %v5085_v62  ;;  %v2286_v49 = vsel %vm2174_vm6, %v2118_v59, %v2230_v45  ;;  %v11382_v54 = vpop.f32.mrf.mxu0 }
 0x1af   : > { %v2287_v11 = vsel %vm2175_vm7, %v2119_v35, %v2231_v29  ;;  %v2288_v50 = vsel %vm2176_vm8, %v2120_v25, %v2232_v56  ;;  %v2289_v60 = vsel %vm2177_vm9, %v2121_v48, %v2233_v42  ;;  %9707 = vmatprep.subr.mxu1 %v12757_v37  ;;  %v2290_v24 = vsel %vm2178_vm10, %v2122_v40, %v2234_v41 }
 0x1b0   : > { %v2751_v18 = vrot.slane %v2750_v9, 2  ;;  %v11388_v0 = vsel %vm2179_vm11, %v2123_v31, %v2235_v55  ;;  %9708 = vmatpush3.msra.mxu1 %v5084_v2  ;;  %v2684_v35 = vcombine.low %v2285_v6, %v2286_v49  ;;  %v2685_v25 = vcombine.low %v2287_v11, %v2288_v50  ;;  %v9670_v19 = vpop.f32.mrf.mxu0 }
 0x1b1   : > { %v2686_v48 = vcombine.low %v2289_v60, %v2290_v24  ;;  %9709 = vmatprep.subr.mxu1 %v12757_v37  ;;  %v1811_v62 = vrot.slane %v11261_v46, %v10509_v15  ;;  %v1818_v40 = vrot.slane %v1804_v57, %v10509_v15  ;;  %v1853_v31 = vcombine.high %v11274_v21, %v11274_v21 }
 0x1b2   : > { %9710 = vmatpush3.msra.mxu1 %v5083_v17  ;;  %v11400_v28 = vmax.f32 %v2750_v9, %v2751_v18  ;;  %v11403_v7 = vrot.slane %v2684_v35, %v10509_v15  ;;  %v11406_v10 = vrot.slane %v2685_v25, %v10509_v15  ;;  %v1860_v23 = vrot.slane %v11274_v21, %v10509_v15  ;;  %v11410_v45 = vpop.f32.mrf.mxu0 }
 0x1b3   : > { %12796 = vst [vmem:[#allocation16_spill] sm:$0xff] %v11410_v45  ;;  %9749 = vmatprep.subr.bf16.mxu1 %v12757_v37  ;;  %v1819_v46 = vcombine.high %v1811_v62, %v1811_v62  ;;  %v1820_v29 = vcombine.high %v1818_v40, %v1818_v40  ;;  %v1827_v57 = vrot.slane %v1811_v62, %v10509_v15 }
 0x1b4   : > { %v1834_v56 = vrot.slane %v1818_v40, %v10509_v15  ;;  %v11416_v42 = vrot.slane %v2686_v48, %v10509_v15  ;;  %v1867_v2 = vrot.slane %v1853_v31, %v10509_v15  ;;  %v1868_v9 = vcombine.high %v1860_v23, %v1860_v23  ;;  %v9673_v21 = vpop.f32.mrf.mxu0 }
 0x1b5   : > { %v1841_v41 = vrot.slane %v1819_v46, %v10509_v15  ;;  %v1848_v55 = vrot.slane %v1820_v29, %v10509_v15  ;;  %v1849_v6 = vcombine.high %v1827_v57, %v1827_v57  ;;  %v2100_v11 = vadd.f32 %v11084_v32, %v1827_v57 }
 0x1b6   : > { %v1850_v49 = vcombine.high %v1834_v56, %v1834_v56  ;;  %v2104_v50 = vadd.f32 %v11080_v14, %v1834_v56  ;;  %v1869_v60 = vcombine.high %v1867_v2, %v1867_v2  ;;  %v1876_v17 = vrot.slane %v1860_v23, %v10509_v15  ;;  %v11426_v18 = vpop.f32.mrf.mxu0 }
 0x1b7   : > { %12797 = vst [vmem:[#allocation17_spill] sm:$0xff] %v11426_v18  ;;  %v1851_v24 = vcombine.high %v1841_v41, %v1841_v41  ;;  %v1852_v35 = vcombine.high %v1848_v55, %v1848_v55  ;;  %v2101_v25 = vadd.f32 %v11100_v33, %v1841_v41  ;;  %v2102_v48 = vadd.f32 %v11104_v26, %v1849_v6 }
 0x1b8   : > { %v2105_v19 = vadd.f32 %v11090_v38, %v1848_v55  ;;  %v2106_v62 = vadd.f32 %v11094_v27, %v1850_v49  ;;  %vm2156_vm12 = vcmp.gt.f32.partialorder %v2100_v11, 0.0  ;;  %vm2160_vm13 = vcmp.gt.f32.partialorder %v2104_v50, 0.0  ;;  %v9674_v40 = vpop.f32.mrf.mxu0 }
 0x1b9   : > { %v2103_v31 = vadd.f32 %v11077_v1, %v1851_v24  ;;  %v11434_v46 = vadd.f32 %v11084_v32, %v1852_v35  ;;  %vm2157_vm0 = vcmp.gt.f32.partialorder %v2101_v25, 0.0  ;;  %vm2158_vm1 = vcmp.gt.f32.partialorder %v2102_v48, 0.0 }
 0x1ba   : > { %vm2161_vm2 = vcmp.gt.f32.partialorder %v2105_v19, 0.0  ;;  %vm2162_vm3 = vcmp.gt.f32.partialorder %v2106_v62, 0.0  ;;  %v2212_v23 = vmul.f32 0.01, %v2100_v11  ;;  %v2213_v29 = vmul.f32 0.01, %v2101_v25  ;;  %v11436_v57 = vpop.f32.mrf.mxu0 }
 0x1bb   : > { %12798 = vst [vmem:[#allocation18_spill] sm:$0xff] %v11436_v57  ;;  %vm2159_vm4 = vcmp.gt.f32.partialorder %v2103_v31, 0.0  ;;  %v2214_v56 = vmul.f32 0.01, %v2102_v48  ;;  %v2215_v21 = vmul.f32 0.01, %v2103_v31  ;;  %v1883_v41 = vrot.slane %v1867_v2, %v10509_v15 }
 0x1bc   : > { %v2216_v55 = vmul.f32 0.01, %v2104_v50  ;;  %v2217_v6 = vmul.f32 0.01, %v2105_v19  ;;  %v2218_v49 = vmul.f32 0.01, %v2106_v62  ;;  %v2268_v24 = vsel %vm2156_vm12, %v2100_v11, %v2212_v23  ;;  %v9677_v35 = vpop.f32.mrf.mxu0 }
 0x1bd   : > { %v2219_v40 = vmul.f32 0.01, %v11434_v46  ;;  %v2269_v37 = vsel %vm2157_vm0, %v2101_v25, %v2213_v29  ;;  %v2270_v63 = vsel %vm2158_vm1, %v2102_v48, %v2214_v56  ;;  %v2271_v61 = vsel %vm2159_vm4, %v2103_v31, %v2215_v21 }
 0x1be   : > { %v2272_v8 = vsel %vm2160_vm13, %v2104_v50, %v2216_v55  ;;  %v2273_v59 = vsel %vm2161_vm2, %v2105_v19, %v2217_v6  ;;  %v2274_v57 = vsel %vm2162_vm3, %v2106_v62, %v2218_v49  ;;  %v2542_v2 = vcombine.low %v2268_v24, %v2269_v37  ;;  %v11446_v18 = vpop.f32.mrf.mxu0 }
 0x1bf   : > { %v2570_v45 = vrot.slane %v2270_v63, %v10509_v15  ;;  %v2588_v11 = vcombine.low %v2271_v61, %v2272_v8  ;;  %v2589_v23 = vcombine.low %v2273_v59, %v2274_v57  ;;  %v1890_v35 = vrot.slane %v1868_v9, %v10509_v15 }
 0x1c0   : > { %v2563_v25 = vrot.slane %v2542_v2, %v10509_v15  ;;  %v1897_v48 = vrot.slane %v1869_v60, %v10509_v15  ;;  %v1898_v31 = vcombine.high %v1876_v17, %v1876_v17  ;;  %v1899_v29 = vcombine.high %v1883_v41, %v1883_v41  ;;  %v9678_v50 = vpop.f32.mrf.mxu0 }
 0x1c1   : > { %v2597_v19 = vrot.slane %v2588_v11, %v10509_v15  ;;  %v2604_v62 = vrot.slane %v2589_v23, %v10509_v15  ;;  %v1900_v37 = vcombine.high %v1890_v35, %v1890_v35  ;;  %v2108_v56 = vadd.f32 %v11100_v33, %v1876_v17 }
 0x1c2   : > { %v2572_v21 = vcombine.low %v2563_v25, %v2570_v45  ;;  %v1901_v63 = vcombine.high %v1897_v48, %v1897_v48  ;;  %v2109_v59 = vadd.f32 %v11104_v26, %v1890_v35  ;;  %v2110_v8 = vadd.f32 %v11077_v1, %v1898_v31 }
 0x1c3   : > { %v2619_v61 = vcombine.low %v2597_v19, %v2604_v62  ;;  %v2111_v9 = vadd.f32 %v11080_v14, %v1900_v37  ;;  %v2112_v60 = vadd.f32 %v11090_v38, %v1883_v41  ;;  %v2113_v57 = vadd.f32 %v11094_v27, %v1897_v48 }
 0x1c4   : > { %v2586_v55 = vrot.slane %v2572_v21, %v10509_v15  ;;  %v2114_v6 = vadd.f32 %v11084_v32, %v1899_v29  ;;  %v2115_v49 = vadd.f32 %v11100_v33, %v1901_v63  ;;  %vm2163_vm5 = vcmp.gt.f32.partialorder %v11434_v46, 0.0 }
 0x1c5   : > { %v2627_v45 = vrot.slane %v2619_v61, %v10509_v15  ;;  %vm2164_vm6 = vcmp.gt.f32.partialorder %v2108_v56, 0.0  ;;  %vm2165_vm7 = vcmp.gt.f32.partialorder %v2109_v59, 0.0  ;;  %vm2166_vm8 = vcmp.gt.f32.partialorder %v2110_v8, 0.0 }
 0x1c6   : > { %v11466_v1 = vcombine.low %v11282_v52, %v2586_v55  ;;  %vm2167_vm9 = vcmp.gt.f32.partialorder %v2111_v9, 0.0  ;;  %vm2168_vm10 = vcmp.gt.f32.partialorder %v2112_v60, 0.0  ;;  %vm2169_vm11 = vcmp.gt.f32.partialorder %v2113_v57, 0.0 }
 0x1c7   : > { %vm2170_vm12 = vcmp.gt.f32.partialorder %v2114_v6, 0.0  ;;  %vm2171_vm13 = vcmp.gt.f32.partialorder %v2115_v49, 0.0  ;;  %v2220_v14 = vmul.f32 0.01, %v2108_v56  ;;  %v2221_v38 = vmul.f32 0.01, %v2109_v59 }
 0x1c8   : > { %v2222_v32 = vmul.f32 0.01, %v2110_v8  ;;  %v2223_v27 = vmul.f32 0.01, %v2111_v9  ;;  %v2224_v33 = vmul.f32 0.01, %v2112_v60  ;;  %v2275_v26 = vsel %vm2163_vm5, %v11434_v46, %v2219_v40 }
 0x1c9   : > { %v2225_v17 = vmul.f32 0.01, %v2113_v57  ;;  %v2226_v41 = vmul.f32 0.01, %v2114_v6  ;;  %v2227_v24 = vmul.f32 0.01, %v2115_v49  ;;  %v2276_v52 = vsel %vm2164_vm6, %v2108_v56, %v2220_v14 }
 0x1ca   : > { %v2277_v2 = vsel %vm2165_vm7, %v2109_v59, %v2221_v38  ;;  %v2278_v11 = vsel %vm2166_vm8, %v2110_v8, %v2222_v32  ;;  %v2279_v23 = vsel %vm2167_vm9, %v2111_v9, %v2223_v27  ;;  %v2280_v35 = vsel %vm2168_vm10, %v2112_v60, %v2224_v33 }
 0x1cb   : > { %v2281_v25 = vsel %vm2169_vm11, %v2113_v57, %v2225_v17  ;;  %v2282_v48 = vsel %vm2170_vm12, %v2114_v6, %v2226_v41  ;;  %v2283_v31 = vsel %vm2171_vm13, %v2115_v49, %v2227_v24  ;;  %v2590_v46 = vcombine.low %v2275_v26, %v2276_v52 }
 0x1cc   : > { %v2618_v40 = vrot.slane %v2277_v2, %v10509_v15  ;;  %v2636_v29 = vcombine.low %v2278_v11, %v2279_v23  ;;  %v2637_v50 = vcombine.low %v2280_v35, %v2281_v25  ;;  %v2638_v19 = vcombine.low %v2282_v48, %v2283_v31 }
 0x1cd   : > { %v2611_v62 = vrot.slane %v2590_v46, %v10509_v15  ;;  %v3956_v37 = vadd.f32 %v11217_v4, %v11193_v22  ;;  %v3959_v56 = vadd.f32 %v11229_v47, %v11205_v16  ;;  %v3964_v21 = vadd.f32 %v11276_v43, %v11244_v20 }
 0x1ce   : > { %v2645_v63 = vrot.slane %v2636_v29, %v10509_v15  ;;  %v2652_v59 = vrot.slane %v2637_v50, %v10509_v15  ;;  %v2659_v8 = vrot.slane %v2638_v19, %v10509_v15  ;;  %v3967_v61 = vadd.f32 %v11298_v12, %v11266_v51 }
 0x1cf   : > { %v2620_v9 = vcombine.low %v2611_v62, %v2618_v40  ;;  %v3984_v60 = vcombine.high %v3956_v37, %v3956_v37  ;;  %v11493_v57 = vrot.slane %v3956_v37, %v11115_v5  ;;  %v4001_v22 = vcombine.high %v3959_v56, %v3959_v56 }
 0x1d0   : > { %v2667_v4 = vcombine.low %v2645_v63, %v2652_v59  ;;  %v12799_v16 = vrot.slane %v11374_v44, %v10509_v15  ;;  %v11499_v20 = vrot.slane %v3959_v56, %v11115_v5  ;;  %v4018_v43 = vcombine.high %v3964_v21, %v3964_v21 }
 0x1d1   : > { %v12800_v55 = vrot.slane %v11388_v0, %v10509_v15  ;;  %v2634_v12 = vrot.slane %v2620_v9, %v10509_v15  ;;  %v11507_v6 = vrot.slane %v3984_v60, %v11115_v5  ;;  %v11510_v49 = vrot.slane %v4001_v22, %v11115_v5 }
 0x1d2   : > { %v2668_v47 = vcombine.low %v2659_v8, %v12799_v16  ;;  %v2675_v44 = vrot.slane %v2667_v4, %v10509_v15  ;;  %v3999_v14 = vcombine.high %v11493_v57, %v11493_v57  ;;  %v11516_v38 = vrot.slane %v3964_v21, %v11115_v5 }
 0x1d3   : > { %v2716_v51 = vcombine.low %v11416_v42, %v12800_v55  ;;  %v11519_v0 = vrot.slane %v4018_v43, %v11115_v5  ;;  %v2635_v42 = vcombine.low %v2627_v45, %v2634_v12  ;;  %v4000_v32 = vcombine.high %v11507_v6, %v11507_v6 }
 0x1d4   : > { %v4016_v27 = vcombine.high %v11499_v20, %v11499_v20  ;;  %v4035_v33 = vcombine.high %v3967_v61, %v3967_v61  ;;  %v4017_v26 = vcombine.high %v11510_v49, %v11510_v49  ;;  %v4033_v17 = vcombine.high %v11516_v38, %v11516_v38 }
 0x1d5   : > { %v11530_v41 = vrot.slane %v3967_v61, %v11115_v5  ;;  %v3972_v24 = vadd.f32 %v11338_v30, %v11313_v53  ;;  %v3975_v52 = vadd.f32 %v11358_v58, %v11330_v13  ;;  %v2682_v2 = vrot.slane %v2668_v47, %v10509_v15 }
 0x1d6   : > { %v11535_v45 = vrot.slane %v4035_v33, %v11115_v5  ;;  %v12801_v11 = vcombine.low %v11403_v7, %v11406_v10  ;;  %v4034_v35 = vcombine.high %v11519_v0, %v11519_v0  ;;  %v2730_v53 = vrot.slane %v2716_v51, %v10509_v15 }
 0x1d7   : > { %v4052_v25 = vcombine.high %v3972_v24, %v3972_v24  ;;  %v11547_v48 = vrot.slane %v3972_v24, %v11115_v5  ;;  %v4050_v30 = vcombine.high %v11530_v41, %v11530_v41  ;;  %v4069_v13 = vcombine.high %v3975_v52, %v3975_v52 }
 0x1d8   : > { %v2723_v23 = vrot.slane %v12801_v11, %v10509_v15  ;;  %v11553_v58 = vrot.slane %v3975_v52, %v11115_v5  ;;  %v2683_v31 = vcombine.low %v2675_v44, %v2682_v2  ;;  %vm5107_vm0 = vcmask 1041409  }
 0x1d9   : > { %v4051_v7 = vcombine.high %v11535_v45, %v11535_v45  ;;  %v11558_v10 = vrot.slane %v4052_v25, %v11115_v5  ;;  %v2746_v40 = vrot.slane %v11248_v3, 1  ;;  %v4067_v29 = vcombine.high %v11547_v48, %v11547_v48 }
 0x1da   : > { %v2731_v46 = vcombine.low %v2723_v23, %v2730_v53  ;;  %v11564_v50 = vrot.slane %v4069_v13, %v11115_v5  ;;  %v2753_v19 = vrot.slane %v11400_v28, 1  ;;  %v12802_v62 = vrot.slane %v11371_v39, 4  ;;  %v9281_v53 = vld [vmem:[%s12745_s4] ss:$0 sm:$0xff] }
 0x1db   : > { %v4068_v56 = vcombine.high %v11558_v10, %v11558_v10  ;;  %v4084_v21 = vcombine.high %v11553_v58, %v11553_v58  ;;  %v2765_v63 = vrot.slane %v11354_v34, 2  ;;  %v2769_v59 = vsel %vm2740_vm14, %v11466_v1, -inf }
 0x1dc   : > { %v2757_v37 = vmax.f32 %v11371_v39, %v12802_v62  ;;  %v2747_v8 = vmax.f32 %v11248_v3, %v2746_v40  ;;  %v2754_v61 = vmax.f32 %v11400_v28, %v2753_v19  ;;  %v2770_v60 = vrot.slane %v2769_v59, 4 }
 0x1dd   : > { %v2766_v22 = vmax.f32 %v11354_v34, %v2765_v63  ;;  %v2776_v39 = vsel %vm2740_vm14, %v2635_v42, -inf  ;;  %v2783_v4 = vsel %vm2740_vm14, %v2683_v31, -inf  ;;  %v2790_v16 = vsel %vm2740_vm14, %v2731_v46, -inf }
 0x1de   : > { %v2758_v9 = vrot.slane %v2757_v37, 2  ;;  %v2771_v43 = vmax.f32 %v2769_v59, %v2770_v60  ;;  %v2777_v55 = vrot.slane %v2776_v39, 4  ;;  %v2784_v51 = vrot.slane %v2783_v4, 4 }
 0x1df   : > { %v2767_v12 = vrot.slane %v2766_v22, 1  ;;  %v2791_v1 = vrot.slane %v2790_v16, 4  ;;  %vm5109_vm1 = vcmask 1042434   ;;  %vm5111_vm2 = vcmask 1043459  }
 0x1e0   : > { %v2759_v47 = vmax.f32 %v2757_v37, %v2758_v9  ;;  %v2772_v28 = vrot.slane %v2771_v43, 2  ;;  %v2778_v44 = vmax.f32 %v2776_v39, %v2777_v55  ;;  %v2785_v33 = vmax.f32 %v2783_v4, %v2784_v51 }
 0x1e1   : > { %v2768_v24 = vmax.f32 %v2766_v22, %v2767_v12  ;;  %v2792_v34 = vmax.f32 %v2790_v16, %v2791_v1  ;;  %vm5113_vm3 = vcmask 1044484   ;;  %vm5115_vm4 = vcmask 1045509  }
 0x1e2   : > { %v2760_v3 = vrot.slane %v2759_v47, 1  ;;  %v2773_v52 = vmax.f32 %v2771_v43, %v2772_v28  ;;  %v2779_v2 = vrot.slane %v2778_v44, 2  ;;  %v2786_v11 = vrot.slane %v2785_v33, 2 }
 0x1e3   : > { %v2793_v23 = vrot.slane %v2792_v34, 2  ;;  %vm5117_vm14 = vcmask 1046534   ;;  %vm5119_vm5 = vcmask 1047559   ;;  %v5200_v25 = vsel %vm5107_vm0, %v2754_v61, %v2747_v8 }
 0x1e4   : > { %v2761_v42 = vmax.f32 %v2759_v47, %v2760_v3  ;;  %v2774_v13 = vrot.slane %v2773_v52, 1  ;;  %v2780_v31 = vmax.f32 %v2778_v44, %v2779_v2  ;;  %v2787_v46 = vmax.f32 %v2785_v33, %v2786_v11 }
 0x1e5   : > { %v2794_v19 = vmax.f32 %v2792_v34, %v2793_v23  ;;  %v4595_v37 = vcombine.high %v11365_v36, %v11365_v36  ;;  %v4602_v63 = vrot.slane %v11365_v36, %v11115_v5  ;;  %v4751_v9 = vcombine.high %v9281_v53, %v9281_v53 }
 0x1e6   : > { %v5201_v40 = vsel %vm5109_vm1, %v2761_v42, %v5200_v25  ;;  %v2775_v59 = vmax.f32 %v2773_v52, %v2774_v13  ;;  %v2781_v8 = vrot.slane %v2780_v31, 1  ;;  %v2788_v61 = vrot.slane %v2787_v46, 1 }
 0x1e7   : > { %v5202_v62 = vsel %vm5111_vm2, %v2768_v24, %v5201_v40  ;;  %v2795_v60 = vrot.slane %v2794_v19, 1  ;;  %v4609_v22 = vrot.slane %v4595_v37, %v11115_v5  ;;  %v4610_v39 = vcombine.high %v4602_v63, %v4602_v63  ;;  %v10031_v24 = vld [vmem:[#allocation8 + $0x38] sm:$0xff]  }
 0x1e8   : > { %v4721_v4 = vadd.f32 %v4602_v63, %v11493_v57  ;;  %v2782_v16 = vmax.f32 %v2780_v31, %v2781_v8  ;;  %v2789_v47 = vmax.f32 %v2787_v46, %v2788_v61  ;;  %v5203_v43 = vsel %vm5113_vm3, %v2775_v59, %v5202_v62 }
 0x1e9   : > { %v11597_v55 = vrot.slane %v9281_v53, %v11115_v5  ;;  %v2796_v51 = vmax.f32 %v2794_v19, %v2795_v60  ;;  %v4611_v12 = vcombine.high %v4609_v22, %v4609_v22  ;;  %v4722_v36 = vadd.f32 %v4610_v39, %v3999_v14 }
 0x1ea   : > { %v4723_v1 = vadd.f32 %v4609_v22, %v11507_v6  ;;  %v5204_v3 = vsel %vm5115_vm4, %v2782_v16, %v5203_v43  ;;  %v11605_v28 = vrot.slane %v4751_v9, %v11115_v5  ;;  %v4085_v34 = vcombine.high %v11564_v50, %v11564_v50  ;;  %v12804_v16 = vld [vmem:[#allocation16_spill] sm:$0xff]  ;;  %v10035_v43 = vld [vmem:[#allocation8 + $0x28] sm:$0xff]  }
 0x1eb   : > { %v11609_v44 = vcombine.high %v11597_v55, %v11597_v55  ;;  %v4770_v33 = vadd.f32 %v11597_v55, %v4721_v4  ;;  %v5205_v57 = vsel %vm5117_vm14, %v2789_v47, %v5204_v3  ;;  %v4724_v14 = vadd.f32 %v4611_v12, %v4000_v32  ;;  %v10033_v32 = vld [vmem:[#allocation8 + $0x30] sm:$0xff]  }
 0x1ec   : > { %v4612_v42 = vcombine.high %v11382_v54, %v11382_v54  ;;  %v5206_v52 = vsel %vm5119_vm5, %v2796_v51, %v5205_v57  ;;  %v4772_v11 = vadd.f32 %v11605_v28, %v4723_v1  ;;  %vm5026_vm7 = vcmask 1045504  }
 0x1ed   : > { %v4771_v2 = vadd.f32 %v11609_v44, %v4722_v36  ;;  %vm4794_vm6 = vcmp.gt.f32.partialorder %v4770_v33, 0.0  ;;  %9747 = vmatmul.mubr.f32.vlgmr.msra.gmra.mxu0 %v5206_v52  ;;  %v4773_v23 = vadd.f32 %v11597_v55, %v4724_v14  ;;  %v4818_v25 = vmul.f32 0.01, %v4770_v33  ;;  %v10037_v14 = vld [vmem:[#allocation8 + $0x20] sm:$0xff]  }
 0x1ee   : > { %v4619_v53 = vrot.slane %v11382_v54, %v11115_v5  ;;  %v4626_v6 = vrot.slane %v4612_v42, %v11115_v5  ;;  %vm4796_vm9 = vcmp.gt.f32.partialorder %v4772_v11, 0.0  ;;  %v4820_v31 = vmul.f32 0.01, %v4772_v11  ;;  %9778 = vmatpush3.bf16.msra.mxu0 %v10031_v24 }
 0x1ef   : > { %vm4795_vm8 = vcmp.gt.f32.partialorder %v4771_v2, 0.0  ;;  %v4819_v13 = vmul.f32 0.01, %v4771_v2  ;;  %v12803_v46 = vmov 0.0   ;;  %vm4797_vm10 = vcmp.gt.f32.partialorder %v4773_v23, 0.0 }
 0x1f0   : > { %9793 = vmatprep.mubr.msk.bf16.mxu0 %vm10280_vm15, %v12803_v46  ;;  %v4821_v40 = vmul.f32 0.01, %v4773_v23  ;;  %v4842_v19 = vsel %vm4794_vm6, %v4770_v33, %v4818_v25  ;;  %v4627_v62 = vcombine.high %v4619_v53, %v4619_v53  ;;  %9779 = vmatprep.subr.bf16.mxu0 %v12803_v46  ;;  %v4844_v54 = vsel %vm4796_vm9, %v4772_v11, %v4820_v31 }
 0x1f1   : > { %v4843_v37 = vsel %vm4795_vm8, %v4771_v2, %v4819_v13  ;;  %v4628_v63 = vcombine.high %v4626_v6, %v4626_v6  ;;  %v4725_v59 = vadd.f32 %v4619_v53, %v11499_v20  ;;  %v4904_v61 = vrot.slane %v4844_v54, %v11115_v5  ;;  %v12805_v54 = vld [vmem:[#allocation17_spill] sm:$0xff] }
 0x1f2   : > { %v4890_v8 = vcombine.low %v4842_v19, %v4843_v37  ;;  %v4726_v9 = vadd.f32 %v4627_v62, %v4016_v27  ;;  %v4727_v60 = vadd.f32 %v4626_v6, %v11510_v49  ;;  %v4845_v4 = vsel %vm4797_vm10, %v4773_v23, %v4821_v40  ;;  %9780 = vmatpush3.bf16.msra.mxu0 %v10033_v32 }
 0x1f3   : > { %v4728_v22 = vadd.f32 %v4628_v63, %v4017_v26  ;;  %v4774_v39 = vadd.f32 %v11609_v44, %v4725_v59  ;;  %v4629_v47 = vcombine.high %v12804_v16, %v12804_v16  ;;  %v4636_v27 = vrot.slane %v12804_v16, %v11115_v5  ;;  %9781 = vmatprep.subr.bf16.mxu0 %v12803_v46  ;;  %v10039_v59 = vld [vmem:[#allocation8 + $0x18] sm:$0xff]  }
 0x1f4   : > { %v4897_v51 = vrot.slane %v4890_v8, %v11115_v5  ;;  %v4775_v12 = vadd.f32 %v11605_v28, %v4726_v9  ;;  %v4776_v20 = vadd.f32 %v11597_v55, %v4727_v60  ;;  %v4646_v63 = vcombine.high %v12805_v54, %v12805_v54 }
 0x1f5   : > { %v4777_v49 = vadd.f32 %v11609_v44, %v4728_v22  ;;  %vm4798_vm11 = vcmp.gt.f32.partialorder %v4774_v39, 0.0  ;;  %v4822_v26 = vmul.f32 0.01, %v4774_v39  ;;  %v4643_v36 = vrot.slane %v4629_v47, %v11115_v5 }
 0x1f6   : > { %v4905_v1 = vcombine.low %v4897_v51, %v4904_v61  ;;  %vm4799_vm12 = vcmp.gt.f32.partialorder %v4775_v12, 0.0  ;;  %vm4800_vm13 = vcmp.gt.f32.partialorder %v4776_v20, 0.0  ;;  %v4823_v3 = vmul.f32 0.01, %v4775_v12  ;;  %9782 = vmatpush3.bf16.msra.mxu0 %v10035_v43  ;;  %v10041_v43 = vld [vmem:[#allocation8 + $0x10] sm:$0xff]  }
 0x1f7   : > { %vm4801_vm6 = vcmp.gt.f32.partialorder %v4777_v49, 0.0  ;;  %v4824_v33 = vmul.f32 0.01, %v4776_v20  ;;  %v4825_v24 = vmul.f32 0.01, %v4777_v49  ;;  %v4846_v57 = vsel %vm4798_vm11, %v4774_v39, %v4822_v26  ;;  %9783 = vmatprep.subr.bf16.mxu0 %v12803_v46 }
 0x1f8   : > { %v5027_v42 = vsel %vm5026_vm7, %v4905_v1, -inf  ;;  %v4847_v52 = vsel %vm4799_vm12, %v4775_v12, %v4823_v3  ;;  %v4906_v2 = vcombine.low %v4845_v4, %v4846_v57  ;;  %v4644_v11 = vcombine.high %v4636_v27, %v4636_v27 }
 0x1f9   : > { %v5028_v23 = vrot.slane %v5027_v42, 4  ;;  %v4848_v25 = vsel %vm4800_vm13, %v4776_v20, %v4824_v33  ;;  %v4849_v53 = vsel %vm4801_vm6, %v4777_v49, %v4825_v24  ;;  %v4920_v6 = vrot.slane %v4847_v52, %v11115_v5 }
 0x1fa   : > { %v4913_v32 = vrot.slane %v4906_v2, %v11115_v5  ;;  %v4922_v13 = vcombine.low %v4848_v25, %v4849_v53  ;;  %v4645_v31 = vcombine.high %v4643_v36, %v4643_v36  ;;  %v4729_v40 = vadd.f32 %v4636_v27, %v11516_v38  ;;  %9784 = vmatpush3.bf16.msra.mxu0 %v10037_v14  ;;  %v10043_v2 = vld [vmem:[#allocation8 + $0x8] sm:$0xff]  }
 0x1fb   : > { %v5029_v19 = vmax.f32 %v5027_v42, %v5028_v23  ;;  %v4730_v62 = vadd.f32 %v4644_v11, %v4033_v17  ;;  %v4731_v37 = vadd.f32 %v4643_v36, %v11519_v0  ;;  %9785 = vmatprep.subr.bf16.mxu0 %v12803_v46  ;;  %v4653_v39 = vrot.slane %v12805_v54, %v11115_v5 }
 0x1fc   : > { %v4921_v8 = vcombine.low %v4913_v32, %v4920_v6  ;;  %v4732_v61 = vadd.f32 %v4645_v31, %v4034_v35  ;;  %v4778_v9 = vadd.f32 %v11605_v28, %v4729_v40  ;;  %v4929_v60 = vrot.slane %v4922_v13, %v11115_v5 }
 0x1fd   : > { %v5030_v38 = vrot.slane %v5029_v19, 2  ;;  %v4779_v17 = vadd.f32 %v11597_v55, %v4730_v62  ;;  %v4780_v22 = vadd.f32 %v11609_v44, %v4731_v37  ;;  %v4660_v33 = vrot.slane %v4646_v63, %v11115_v5 }
 0x1fe   : > { %v5034_v4 = vsel %vm5026_vm7, %v4921_v8, -inf  ;;  %v4781_v16 = vadd.f32 %v11605_v28, %v4732_v61  ;;  %vm4802_vm8 = vcmp.gt.f32.partialorder %v4778_v9, 0.0  ;;  %v4826_v0 = vmul.f32 0.01, %v4778_v9  ;;  %9786 = vmatpush3.bf16.msra.mxu0 %v10039_v59  ;;  %v12806_v8 = vld [vmem:[#allocation18_spill] sm:$0xff] }
 0x1ff   : > { %v5031_v35 = vmax.f32 %v5029_v19, %v5030_v38  ;;  %v5035_v47 = vrot.slane %v5034_v4, 4  ;;  %vm4803_vm9 = vcmp.gt.f32.partialorder %v4779_v17, 0.0  ;;  %vm4804_vm10 = vcmp.gt.f32.partialorder %v4780_v22, 0.0  ;;  %9787 = vmatprep.subr.bf16.mxu0 %v12803_v46 }
 0x200   : > { %vm4805_vm11 = vcmp.gt.f32.partialorder %v4781_v16, 0.0  ;;  %v4827_v51 = vmul.f32 0.01, %v4779_v17  ;;  %v4828_v12 = vmul.f32 0.01, %v4780_v22  ;;  %v4850_v20 = vsel %vm4802_vm8, %v4778_v9, %v4826_v0 }
 0x201   : > { %v5032_v27 = vrot.slane %v5031_v35, 1  ;;  %v5036_v49 = vmax.f32 %v5034_v4, %v5035_v47  ;;  %v4829_v26 = vmul.f32 0.01, %v4781_v16  ;;  %v4936_v36 = vrot.slane %v4850_v20, %v11115_v5 }
 0x202   : > { %v4851_v1 = vsel %vm4803_vm9, %v4779_v17, %v4827_v51  ;;  %v4852_v3 = vsel %vm4804_vm10, %v4780_v22, %v4828_v12  ;;  %v4661_v24 = vcombine.high %v4653_v39, %v4653_v39  ;;  %9788 = vmatpush3.bf16.msra.mxu0 %v10041_v43  ;;  %v4662_v25 = vcombine.high %v4660_v33, %v4660_v33 }
 0x203   : > { %v11677_v57 = vmax.f32 %v5031_v35, %v5032_v27  ;;  %v5037_v14 = vrot.slane %v5036_v49, 2  ;;  %v4853_v42 = vsel %vm4805_vm11, %v4781_v16, %v4829_v26  ;;  %v4937_v52 = vcombine.low %v4929_v60, %v4936_v36  ;;  %9789 = vmatprep.subr.bf16.mxu0 %v12803_v46 }
 0x204   : > { %v4938_v11 = vcombine.low %v4851_v1, %v4852_v3  ;;  %v4952_v23 = vrot.slane %v4853_v42, %v11115_v5  ;;  %v4733_v53 = vadd.f32 %v4653_v39, %v11530_v41  ;;  %v4734_v13 = vadd.f32 %v4661_v24, %v4050_v30  ;;  %v10045_v30 = vld [vmem:[#allocation8] sm:$0xff]  }
 0x205   : > { %v5038_v6 = vmax.f32 %v5036_v49, %v5037_v14  ;;  %v5041_v32 = vsel %vm5026_vm7, %v4937_v52, -inf  ;;  %v4735_v31 = vadd.f32 %v4660_v33, %v11535_v45  ;;  %v4736_v62 = vadd.f32 %v4662_v25, %v4051_v7 }
 0x206   : > { %v4945_v40 = vrot.slane %v4938_v11, %v11115_v5  ;;  %v5042_v19 = vrot.slane %v5041_v32, 4  ;;  %v4782_v37 = vadd.f32 %v11597_v55, %v4733_v53  ;;  %v4783_v63 = vadd.f32 %v11609_v44, %v4734_v13  ;;  %9790 = vmatpush3.bf16.msra.mxu0 %v10043_v2 }
 0x207   : > { %v5039_v54 = vrot.slane %v5038_v6, 1  ;;  %v4784_v59 = vadd.f32 %v11605_v28, %v4735_v31  ;;  %v4663_v41 = vcombine.high %v12806_v8, %v12806_v8  ;;  %v4785_v60 = vadd.f32 %v11597_v55, %v4736_v62  ;;  %9791 = vmatprep.subr.bf16.mxu0 %v12803_v46 }
 0x208   : > { %v4953_v61 = vcombine.low %v4945_v40, %v4952_v23  ;;  %v5043_v9 = vmax.f32 %v5041_v32, %v5042_v19  ;;  %vm4806_vm12 = vcmp.gt.f32.partialorder %v4782_v37, 0.0  ;;  %vm4807_vm13 = vcmp.gt.f32.partialorder %v4783_v63, 0.0 }
 0x209   : > { %v11698_v45 = vmax.f32 %v5038_v6, %v5039_v54  ;;  %vm4808_vm6 = vcmp.gt.f32.partialorder %v4784_v59, 0.0  ;;  %v4830_v7 = vmul.f32 0.01, %v4782_v37  ;;  %vm4809_vm8 = vcmp.gt.f32.partialorder %v4785_v60, 0.0 }
 0x20a   : > { %v5044_v38 = vrot.slane %v5043_v9, 2  ;;  %v5048_v17 = vsel %vm5026_vm7, %v4953_v61, -inf  ;;  %v4831_v22 = vmul.f32 0.01, %v4783_v63  ;;  %v4832_v4 = vmul.f32 0.01, %v4784_v59  ;;  %9792 = vmatpush3.bf16.msra.mxu0 %v10045_v30 }
 0x20b   : > { %v5049_v39 = vrot.slane %v5048_v17, 4  ;;  %v4833_v16 = vmul.f32 0.01, %v4785_v60  ;;  %v4854_v0 = vsel %vm4806_vm12, %v4782_v37, %v4830_v7  ;;  %v4670_v43 = vrot.slane %v12806_v8, %v11115_v5  ;;  %9833 = vmatprep.subr.bf16.mxu0 %v12803_v46 }
 0x20c   : > { %v5045_v35 = vmax.f32 %v5043_v9, %v5044_v38  ;;  %v4855_v47 = vsel %vm4807_vm13, %v4783_v63, %v4831_v22  ;;  %v4677_v51 = vrot.slane %v4663_v41, %v11115_v5  ;;  %v4856_v20 = vsel %vm4808_vm6, %v4784_v59, %v4832_v4 }
 0x20d   : > { %v5050_v12 = vmax.f32 %v5048_v17, %v5049_v39  ;;  %v4954_v27 = vcombine.low %v4854_v0, %v4855_v47  ;;  %v4857_v49 = vsel %vm4809_vm8, %v4785_v60, %v4833_v16  ;;  %v4968_v36 = vrot.slane %v4856_v20, %v11115_v5 }
 0x20e   : > { %v5046_v26 = vrot.slane %v5045_v35, 1  ;;  %v4678_v1 = vcombine.high %v4670_v43, %v4670_v43  ;;  %v4679_v3 = vcombine.high %v4677_v51, %v4677_v51  ;;  %v4737_v14 = vadd.f32 %v4670_v43, %v11547_v48 }
 0x20f   : > { %v5051_v33 = vrot.slane %v5050_v12, 2  ;;  %v4961_v24 = vrot.slane %v4954_v27, %v11115_v5  ;;  %v4739_v42 = vadd.f32 %v4677_v51, %v11558_v10  ;;  %v4680_v23 = vcombine.high %v11446_v18, %v11446_v18 }
 0x210   : > { %v11710_v52 = vmax.f32 %v5045_v35, %v5046_v26  ;;  %v4738_v2 = vadd.f32 %v4678_v1, %v4067_v29  ;;  %v4740_v11 = vadd.f32 %v4679_v3, %v4068_v56  ;;  %v4786_v53 = vadd.f32 %v11609_v44, %v4737_v14 }
 0x211   : > { %v4969_v25 = vcombine.low %v4961_v24, %v4968_v36  ;;  %v4788_v6 = vadd.f32 %v11597_v55, %v4739_v42  ;;  %v4687_v32 = vrot.slane %v11446_v18, %v11115_v5  ;;  %v4694_v29 = vrot.slane %v4680_v23, %v11115_v5  ;;  %v9306_v24 = vld.sshfl [vmem:[%s10492_s24] sm:$0x13 pattern:$0x75316420] }
 0x212   : > { %v4787_v13 = vadd.f32 %v11605_v28, %v4738_v2  ;;  %v4789_v48 = vadd.f32 %v11609_v44, %v4740_v11  ;;  %v5052_v31 = vmax.f32 %v5050_v12, %v5051_v33  ;;  %vm4810_vm9 = vcmp.gt.f32.partialorder %v4786_v53, 0.0  ;;  %v9307_v23 = vld.sshfl [vmem:[%s10492_s24 + $0x4] sm:$0x13 pattern:$0x75316420] }
 0x213   : > { %v5055_v10 = vsel %vm5026_vm7, %v4969_v25, -inf  ;;  %vm4812_vm10 = vcmp.gt.f32.partialorder %v4788_v6, 0.0  ;;  %v4834_v56 = vmul.f32 0.01, %v4786_v53  ;;  %v4836_v62 = vmul.f32 0.01, %v4788_v6 }
 0x214   : > { %v5056_v40 = vrot.slane %v5055_v10, 4  ;;  %vm4811_vm11 = vcmp.gt.f32.partialorder %v4787_v13, 0.0  ;;  %vm4813_vm12 = vcmp.gt.f32.partialorder %v4789_v48, 0.0  ;;  %v4835_v19 = vmul.f32 0.01, %v4787_v13 }
 0x215   : > { %v4837_v37 = vmul.f32 0.01, %v4789_v48  ;;  %v4858_v54 = vsel %vm4810_vm9, %v4786_v53, %v4834_v56  ;;  %v4695_v18 = vcombine.high %v4687_v32, %v4687_v32  ;;  %v4696_v41 = vcombine.high %v4694_v29, %v4694_v29  ;;  %v11760_v56 = vld.sshfl [vmem:[%s10492_s24 + $0xc] sm:$0x13 pattern:$0x75316420] }
 0x216   : > { %v5057_v63 = vmax.f32 %v5055_v10, %v5056_v40  ;;  %v4859_v59 = vsel %vm4811_vm11, %v4787_v13, %v4835_v19  ;;  %v4970_v8 = vcombine.low %v4857_v49, %v4858_v54  ;;  %v4860_v30 = vsel %vm4812_vm10, %v4788_v6, %v4836_v62 }
 0x217   : > { %v4861_v61 = vsel %vm4813_vm12, %v4789_v48, %v4837_v37  ;;  %v4984_v9 = vrot.slane %v4859_v59, %v11115_v5  ;;  %v4741_v60 = vadd.f32 %v4687_v32, %v11553_v58  ;;  %v4742_v22 = vadd.f32 %v4695_v18, %v4084_v21 }
 0x218   : > { %v5058_v7 = vrot.slane %v5057_v63, 2  ;;  %v4977_v38 = vrot.slane %v4970_v8, %v11115_v5  ;;  %v4986_v17 = vcombine.low %v4860_v30, %v4861_v61  ;;  %v4743_v39 = vadd.f32 %v4694_v29, %v11564_v50 }
 0x219   : > { %v4744_v4 = vadd.f32 %v4696_v41, %v4085_v34  ;;  %v4790_v16 = vadd.f32 %v11605_v28, %v4741_v60  ;;  %v5053_v0 = vrot.slane %v5052_v31, 1  ;;  %v4791_v47 = vadd.f32 %v11597_v55, %v4742_v22 }
 0x21a   : > { %v4985_v35 = vcombine.low %v4977_v38, %v4984_v9  ;;  %v4993_v43 = vrot.slane %v4986_v17, %v11115_v5  ;;  %v5059_v51 = vmax.f32 %v5057_v63, %v5058_v7  ;;  %v4792_v12 = vadd.f32 %v11609_v44, %v4743_v39 }
 0x21b   : > { %v4793_v58 = vadd.f32 %v11605_v28, %v4744_v4  ;;  %vm4814_vm13 = vcmp.gt.f32.partialorder %v4790_v16, 0.0  ;;  %v4838_v21 = vmul.f32 0.01, %v4790_v16  ;;  %vm4815_vm6 = vcmp.gt.f32.partialorder %v4791_v47, 0.0 }
 0x21c   : > { %v5062_v20 = vsel %vm5026_vm7, %v4985_v35, -inf  ;;  %v4839_v50 = vmul.f32 0.01, %v4791_v47  ;;  %v5054_v34 = vmax.f32 %v5052_v31, %v5053_v0  ;;  %vm4816_vm8 = vcmp.gt.f32.partialorder %v4792_v12, 0.0 }
 0x21d   : > { %v5063_v27 = vrot.slane %v5062_v20, 4  ;;  %vm4817_vm9 = vcmp.gt.f32.partialorder %v4793_v58, 0.0  ;;  %v4840_v55 = vmul.f32 0.01, %v4792_v12  ;;  %v4841_v49 = vmul.f32 0.01, %v4793_v58 }
 0x21e   : > { %v4862_v26 = vsel %vm4814_vm13, %v4790_v16, %v4838_v21  ;;  %v4863_v36 = vsel %vm4815_vm6, %v4791_v47, %v4839_v50  ;;  %v5060_v1 = vrot.slane %v5059_v51, 1  ;;  %v5108_v33 = vsel %vm5107_vm0, %v11698_v45, %v11677_v57  ;;  %v9308_v57 = vld.sshfl [vmem:[%s10492_s24 + $0x8] sm:$0x13 pattern:$0x75316420] }
 0x21f   : > { %v5064_v44 = vmax.f32 %v5062_v20, %v5063_v27  ;;  %v4864_v28 = vsel %vm4816_vm8, %v4792_v12, %v4840_v55  ;;  %v5000_v3 = vrot.slane %v4862_v26, %v11115_v5  ;;  %v4865_v14 = vsel %vm4817_vm9, %v4793_v58, %v4841_v49 }
 0x220   : > { %v5002_v42 = vcombine.low %v4863_v36, %v4864_v28  ;;  %v5061_v2 = vmax.f32 %v5059_v51, %v5060_v1  ;;  %v5110_v11 = vsel %vm5109_vm1, %v11710_v52, %v5108_v33  ;;  %v5016_v53 = vrot.slane %v4865_v14, %v11115_v5 }
 0x221   : > { %v5001_v25 = vcombine.low %v4993_v43, %v5000_v3  ;;  %v5065_v6 = vrot.slane %v5064_v44, 2  ;;  %v5112_v32 = vsel %vm5111_vm2, %v5054_v34, %v5110_v11  ;;  %v5822_v45 = vcombine.high %v9306_v24, %v9306_v24 }
 0x222   : > { %v5009_v13 = vrot.slane %v5002_v42, %v11115_v5  ;;  %v5114_v48 = vsel %vm5113_vm3, %v5061_v2, %v5112_v32  ;;  %v5829_v29 = vrot.slane %v9306_v24, %v10509_v15  ;;  %v5845_v52 = vcombine.high %v9307_v23, %v9307_v23 }
 0x223   : > { %v5069_v31 = vsel %vm5026_vm7, %v5001_v25, -inf  ;;  %v5066_v10 = vmax.f32 %v5064_v44, %v5065_v6  ;;  %v5852_v40 = vrot.slane %v9307_v23, %v10509_v15  ;;  %v5836_v37 = vrot.slane %v5822_v45, %v10509_v15 }
 0x224   : > { %v5070_v19 = vrot.slane %v5069_v31, 4  ;;  %v5017_v62 = vcombine.low %v5009_v13, %v5016_v53  ;;  %v5837_v54 = vcombine.high %v5829_v29, %v5829_v29  ;;  %v11765_v18 = vrot.slane %v5845_v52, %v10509_v15 }
 0x225   : > { %v5067_v5 = vrot.slane %v5066_v10, 1  ;;  %v11767_v63 = vcombine.high %v5852_v40, %v5852_v40  ;;  %v5868_v59 = vcombine.high %v9308_v57, %v9308_v57  ;;  %v5875_v30 = vrot.slane %v9308_v57, %v10509_v15 }
 0x226   : > { %v5071_v8 = vmax.f32 %v5069_v31, %v5070_v19  ;;  %v5076_v41 = vsel %vm5026_vm7, %v5017_v62, -inf  ;;  %v11773_v61 = vrot.slane %v11760_v56, %v10509_v15  ;;  %v6005_v38 = vunpack.i.h.s16 %v5852_v40  ;;  %v9286_v19 = vld.sshfl [vmem:[%s10492_s24 + $0x10] sm:$0x13 pattern:$0x75316420] }
 0x227   : > { %v5068_v9 = vmax.f32 %v5066_v10, %v5067_v5  ;;  %v5077_v60 = vrot.slane %v5076_v41, 4  ;;  %v5882_v7 = vrot.slane %v5868_v59, %v10509_v15  ;;  %v5883_v22 = vcombine.high %v5875_v30, %v5875_v30  ;;  %v9287_v5 = vld.sshfl [vmem:[%s10492_s24 + $0x14] sm:$0x13 pattern:$0x75316420] }
 0x228   : > { %v5072_v17 = vrot.slane %v5071_v8, 2  ;;  %v6007_v39 = vunpack.i.h.s16 %v11765_v18  ;;  %v9314_v4 = vpack.i.b16 %v5852_v40, %v5837_v54  ;;  %v9315_v35 = vpack.i.b16 %v11765_v18, %v6005_v38 }
 0x229   : > { %v5078_v16 = vmax.f32 %v5076_v41, %v5077_v60  ;;  %v5116_v0 = vsel %vm5115_vm4, %v5068_v9, %v5114_v48  ;;  %v6059_v47 = vcombine.low %v5829_v29, %v5836_v37  ;;  %v9317_v12 = vpack.i.b16 %v11773_v61, %v5883_v22  ;;  %v10032_v48 = vld [vmem:[#allocation8 + $0x78] sm:$0xff]  }
 0x22a   : > { %v5073_v43 = vmax.f32 %v5071_v8, %v5072_v17  ;;  %v9316_v51 = vpack.i.b16 %v11767_v63, %v6007_v39  ;;  %v5518_v58 = vunpack.i.h.s16 %v5829_v29  ;;  %v6060_v20 = vcombine.low %v9314_v4, %v9315_v35  ;;  %v9288_v60 = vld.sshfl [vmem:[%s10492_s24 + $0x18] sm:$0x13 pattern:$0x75316420]  ;;  %v10049_v4 = vld [vmem:[#allocation8 + $0xf0] sm:$0xff]  }
 0x22b   : > { %v5079_v21 = vrot.slane %v5078_v16, 2  ;;  %v6069_v50 = vrot.slane %v6059_v47, %v10509_v15  ;;  %v5520_v34 = vunpack.i.h.s16 %v5836_v37  ;;  %v6062_v49 = vcombine.low %v5882_v7, %v9317_v12 }
 0x22c   : > { %v5074_v27 = vrot.slane %v5073_v43, 1  ;;  %v6061_v55 = vcombine.low %v9316_v51, %v5875_v30  ;;  %v5522_v26 = vunpack.i.h.s16 %v5837_v54  ;;  %v6076_v1 = vrot.slane %v6060_v20, %v10509_v15 }
 0x22d   : > { %v5080_v36 = vmax.f32 %v5078_v16, %v5079_v21  ;;  %v5528_v44 = vunpack.i.h.s16 %v5875_v30  ;;  %v5530_v28 = vunpack.i.h.s16 %v5882_v7  ;;  %v6090_v24 = vrot.slane %v6062_v49, %v10509_v15 }
 0x22e   : > { %v5075_v3 = vmax.f32 %v5073_v43, %v5074_v27  ;;  %v6083_v33 = vrot.slane %v6061_v55, %v10509_v15  ;;  %v5532_v14 = vunpack.i.h.s16 %v5883_v22  ;;  %v6091_v2 = vcombine.low %v6069_v50, %v6076_v1 }
 0x22f   : > { %v5081_v42 = vrot.slane %v5080_v36, 1  ;;  %v5533_v11 = vunpack.i.h.s16 %v11773_v61  ;;  %v9290_v23 = vpack.i.b16 %v5836_v37, %v5518_v58  ;;  %v9291_v6 = vpack.i.b16 %v5837_v54, %v5520_v34  ;;  %v10047_v37 = vld [vmem:[#allocation8 + $0xf8] sm:$0xff]   ;;  %v10036_v58 = vld [vmem:[#allocation8 + $0x68] sm:$0xff]  }
 0x230   : > { %v5118_v25 = vsel %vm5117_vm14, %v5075_v3, %v5116_v0  ;;  %v6092_v53 = vcombine.low %v6083_v33, %v6090_v24  ;;  %v5560_v32 = vpack.i.b16 %v6005_v38, %v5522_v26  ;;  %v6099_v57 = vrot.slane %v6091_v2, %v10509_v15 }
 0x231   : > { %v5082_v13 = vmax.f32 %v5080_v36, %v5081_v42  ;;  %v9292_v45 = vpack.i.b16 %v5882_v7, %v5528_v44  ;;  %v9293_v29 = vpack.i.b16 %v5883_v22, %v5530_v28  ;;  %v5565_v10 = vpack.i.b16 %v5533_v11, %v5532_v14  ;;  %v10034_v7 = vld [vmem:[#allocation8 + $0x70] sm:$0xff]   ;;  %v10051_v36 = vld [vmem:[#allocation8 + $0xe8] sm:$0xff]   ;;  %v10038_v42 = vld [vmem:[#allocation8 + $0x60] sm:$0xff]  }
 0x232   : > { %v6106_v31 = vrot.slane %v6092_v53, %v10509_v15  ;;  %v5578_v52 = vcombine.low %v9290_v23, %v9291_v6  ;;  %v5579_v40 = vcombine.low %v5560_v32, %v11765_v18  ;;  %v5410_v59 = vcombine.high %v11760_v56, %v11760_v56 }
 0x233   : > { %v5120_v62 = vsel %vm5119_vm5, %v5082_v13, %v5118_v25  ;;  %v5580_v54 = vcombine.low %v11767_v63, %v9292_v45  ;;  %v5425_v8 = vcombine.high %v11773_v61, %v11773_v61  ;;  %v5581_v30 = vcombine.low %v9293_v29, %v5565_v10 }
 0x234   : > { %9712 = vmatmul.mubr.f32.vlgmr.msra.gmra.mxu1 %v5120_v62  ;;  %v6107_v41 = vcombine.low %v6099_v57, %v6106_v31  ;;  %v5588_v9 = vrot.slane %v5578_v52, %v10509_v15  ;;  %v5595_v18 = vrot.slane %v5579_v40, %v10509_v15  ;;  %v5424_v56 = vrot.slane %v5410_v59, %v10509_v15  ;;  %v10053_v57 = vld [vmem:[#allocation8 + $0xe0] sm:$0xff]   ;;  %v9289_v52 = vld.sshfl [vmem:[%s10492_s24 + $0x1c] sm:$0x13 pattern:$0x75316420] }
 0x235   : > { %9750 = vmatpush3.bf16.msra.mxu1 %v10032_v48  ;;  %9765 = vmatprep.mubr.msk.bf16.mxu1 %vm10280_vm15, %v12803_v46  ;;  %v5602_v63 = vrot.slane %v5580_v54, %v10509_v15  ;;  %v5433_v38 = vcombine.high %v9286_v19, %v9286_v19  ;;  %v5609_v17 = vrot.slane %v5581_v30, %v10509_v15  ;;  %v10040_v62 = vld [vmem:[#allocation8 + $0x58] sm:$0xff]   ;;  %vm8834_vm8 = vcmask 1044480  }
 0x236   : > { %9751 = vmatprep.subr.bf16.mxu1 %v12803_v46  ;;  %9794 = vmatmul.mubr.bf16.vlgmr.msra.gmra.mxu0 %v6107_v41  ;;  %v5610_v22 = vcombine.low %v5588_v9, %v5595_v18  ;;  %v5440_v39 = vrot.slane %v9286_v19, %v10509_v15  ;;  %v5456_v0 = vcombine.high %v9287_v5, %v9287_v5  ;;  %v6017_v14 = vunpack.i.h.s16 %v5424_v56 }
 0x237   : > { %9834 = vmatpush3.bf16.msra.mxu0 %v10047_v37  ;;  %v5447_v16 = vrot.slane %v5433_v38, %v10509_v15  ;;  %v5463_v35 = vrot.slane %v9287_v5, %v10509_v15  ;;  %v5479_v47 = vcombine.high %v9288_v60, %v9288_v60  ;;  %v5611_v43 = vcombine.low %v5602_v63, %v5609_v17  ;;  %v10055_v63 = vld [vmem:[#allocation8 + $0xd8] sm:$0xff]  }
 0x238   : > { %9835 = vmatprep.subr.bf16.mxu0 %v12803_v46  ;;  %v5448_v51 = vcombine.high %v5440_v39, %v5440_v39  ;;  %v5486_v12 = vrot.slane %v9288_v60, %v10509_v15  ;;  %v11815_v21 = vrot.slane %v5610_v22, %v10509_v15  ;;  %v5470_v20 = vrot.slane %v5456_v0, %v10509_v15 }
 0x239   : > { %9752 = vmatpush3.bf16.msra.mxu1 %v10034_v7  ;;  %v11819_v50 = vrot.slane %v5479_v47, %v10509_v15  ;;  %v5538_v34 = vunpack.i.h.s16 %v5440_v39  ;;  %9797 = vmatprep.mubr.msk.bf16.mxu0 %vm10280_vm15, %v12803_v46  ;;  %v5471_v27 = vcombine.high %v5463_v35, %v5463_v35  ;;  %v5540_v55 = vunpack.i.h.s16 %v5447_v16 }
 0x23a   : > { %9753 = vmatprep.subr.bf16.mxu1 %v12803_v46  ;;  %v5542_v49 = vunpack.i.h.s16 %v5448_v51  ;;  %v5543_v26 = vunpack.i.h.s16 %v5463_v35  ;;  %v5548_v1 = vunpack.i.h.s16 %v5486_v12  ;;  %v5627_v28 = vcombine.low %v5424_v56, %v5425_v8 }
 0x23b   : > { %9836 = vmatpush3.bf16.msra.mxu0 %v10049_v4  ;;  %v9294_v44 = vpack.i.b16 %v5447_v16, %v5538_v34  ;;  %v11825_v3 = vrot.slane %v5611_v43, %v10509_v15  ;;  %v9295_v33 = vpack.i.b16 %v5448_v51, %v5540_v55  ;;  %v6027_v25 = vunpack.i.h.s16 %v5470_v20  ;;  %v10042_v4 = vld [vmem:[#allocation8 + $0x50] sm:$0xff]   ;;  %v9362_v43 = vld.sshfl [vmem:[%s10492_s24] sm:$0x32 pattern:$0x75316420] }
 0x23c   : > { %9837 = vmatprep.subr.bf16.mxu0 %v12803_v46  ;;  %v5570_v24 = vpack.i.b16 %v5543_v26, %v5542_v49  ;;  %v9296_v2 = vpack.i.b16 %v11819_v50, %v5548_v1  ;;  %v5637_v23 = vrot.slane %v5627_v28, %v10509_v15  ;;  %v9318_v53 = vpack.i.b16 %v5424_v56, %v5533_v11 }
 0x23d   : > { %9754 = vmatpush3.bf16.msra.mxu1 %v10036_v58  ;;  %v5628_v6 = vcombine.low %v9294_v44, %v9295_v33  ;;  %v9319_v13 = vpack.i.b16 %v5425_v8, %v6017_v14  ;;  %v9320_v48 = vpack.i.b16 %v5463_v35, %v5448_v51  ;;  %v9321_v29 = vpack.i.b16 %v5470_v20, %v5543_v26  ;;  %v9363_v26 = vld.sshfl [vmem:[%s10492_s24 + $0x4] sm:$0x32 pattern:$0x75316420]  ;;  %v10044_v14 = vld [vmem:[#allocation8 + $0x48] sm:$0xff]  }
 0x23e   : > { %9755 = vmatprep.subr.bf16.mxu1 %v12803_v46  ;;  %v5629_v32 = vcombine.low %v5570_v24, %v5470_v20  ;;  %v5630_v45 = vcombine.low %v5471_v27, %v9296_v2  ;;  %v9322_v31 = vpack.i.b16 %v5471_v27, %v6027_v25  ;;  %v6109_v10 = vcombine.low %v5440_v39, %v5447_v16  ;;  %v9364_v33 = vld.sshfl [vmem:[%s10492_s24 + $0x8] sm:$0x32 pattern:$0x75316420] }
 0x23f   : > { %9838 = vmatpush3.bf16.msra.mxu0 %v10051_v36  ;;  %v5644_v40 = vrot.slane %v5628_v6, %v10509_v15  ;;  %v6108_v11 = vcombine.low %v9318_v53, %v9319_v13  ;;  %v5494_v19 = vcombine.high %v5486_v12, %v5486_v12  ;;  %v6110_v54 = vcombine.low %v9320_v48, %v9321_v29  ;;  %v10057_v36 = vld [vmem:[#allocation8 + $0xd0] sm:$0xff]  }
 0x240   : > { %9839 = vmatprep.subr.bf16.mxu0 %v12803_v46  ;;  %v5651_v61 = vrot.slane %v5629_v32, %v10509_v15  ;;  %v5658_v37 = vrot.slane %v5630_v45, %v10509_v15  ;;  %v6111_v5 = vcombine.low %v9322_v31, %v5486_v12  ;;  %v6125_v59 = vrot.slane %v6109_v10, %v10509_v15  ;;  %v11877_v45 = vld.sshfl [vmem:[%s10492_s24 + $0xc] sm:$0x32 pattern:$0x75316420] }
 0x241   : > { %9756 = vmatpush3.bf16.msra.mxu1 %v10038_v42  ;;  %v5659_v8 = vcombine.low %v5637_v23, %v5644_v40  ;;  %v6118_v41 = vrot.slane %v6108_v11, %v10509_v15  ;;  %v5502_v30 = vcombine.high %v9289_v52, %v9289_v52  ;;  %v5509_v9 = vrot.slane %v9289_v52, %v10509_v15  ;;  %v10059_v10 = vld [vmem:[#allocation8 + $0xc8] sm:$0xff]  }
 0x242   : > { %9757 = vmatprep.subr.bf16.mxu1 %v12803_v46  ;;  %v5660_v18 = vcombine.low %v5651_v61, %v5658_v37  ;;  %v6132_v60 = vrot.slane %v6110_v54, %v10509_v15  ;;  %v6139_v7 = vrot.slane %v6111_v5, %v10509_v15  ;;  %v5550_v56 = vunpack.i.h.s16 %v11819_v50  ;;  %v10046_v61 = vld [vmem:[#allocation8 + $0x40] sm:$0xff]  }
 0x243   : > { %9840 = vmatpush3.bf16.msra.mxu0 %v10053_v57  ;;  %v5626_v38 = vcombine.low %v11815_v21, %v11825_v3  ;;  %v6140_v17 = vcombine.low %v6118_v41, %v6125_v59  ;;  %v5516_v22 = vrot.slane %v5502_v30, %v10509_v15  ;;  %v5517_v39 = vcombine.high %v5509_v9, %v5509_v9  ;;  %v9366_v21 = vld.sshfl [vmem:[%s10492_s24 + $0x10] sm:$0x32 pattern:$0x75316420] }
 0x244   : > { %9841 = vmatprep.subr.bf16.mxu0 %v12803_v46  ;;  %v11850_v16 = vrot.slane %v5659_v8, %v10509_v15  ;;  %v6141_v0 = vcombine.low %v6132_v60, %v6139_v7  ;;  %v5552_v35 = vunpack.i.h.s16 %v5494_v19  ;;  %v5553_v47 = vunpack.i.h.s16 %v5509_v9  ;;  %v10061_v7 = vld [vmem:[#allocation8 + $0xc0] sm:$0xff]  }
 0x245   : > { %9758 = vmatpush3.bf16.msra.mxu1 %v10040_v62  ;;  %v6148_v51 = vrot.slane %v6140_v17, %v10509_v15  ;;  %v9297_v12 = vpack.i.b16 %v5494_v19, %v5550_v56  ;;  %v5677_v58 = vcombine.low %v5516_v22, %v5517_v39  ;;  %v6037_v20 = vunpack.i.h.s16 %v5516_v22 }
 0x246   : > { %9759 = vmatprep.subr.bf16.mxu1 %v12803_v46  ;;  %v11856_v34 = vrot.slane %v5660_v18, %v10509_v15  ;;  %v6155_v27 = vrot.slane %v6141_v0, %v10509_v15  ;;  %v5575_v55 = vpack.i.b16 %v5553_v47, %v5552_v35  ;;  %v9323_v49 = vpack.i.b16 %v5509_v9, %v5494_v19 }
 0x247   : > { %9842 = vmatpush3.bf16.msra.mxu0 %v10055_v63  ;;  %v11862_v1 = vrot.slane %v5677_v58, %v10509_v15  ;;  %v9324_v44 = vpack.i.b16 %v5516_v22, %v5553_v47  ;;  %v9325_v28 = vpack.i.b16 %v5517_v39, %v6037_v20  ;;  %v7460_v24 = vcombine.high %v9362_v43, %v9362_v43  ;;  %v10048_v22 = vld [vmem:[#allocation8 + $0xb8] sm:$0xff]  }
 0x248   : > { %9843 = vmatprep.subr.bf16.mxu0 %v12803_v46  ;;  %v6156_v42 = vcombine.low %v6148_v51, %v6155_v27  ;;  %v5676_v2 = vcombine.low %v9297_v12, %v5575_v55  ;;  %v6157_v23 = vcombine.low %v11819_v50, %v9323_v49  ;;  %v7467_v25 = vrot.slane %v9362_v43, %v10509_v15 }
 0x249   : > { %9760 = vmatpush3.bf16.msra.mxu1 %v10042_v4  ;;  %v6158_v53 = vcombine.low %v9324_v44, %v9325_v28  ;;  %v11869_v6 = vrot.slane %v7460_v24, %v10509_v15  ;;  %v7484_v32 = vcombine.high %v9363_v26, %v9363_v26  ;;  %v7491_v13 = vrot.slane %v9363_v26, %v10509_v15  ;;  %v10050_v44 = vld [vmem:[#allocation8 + $0xb0] sm:$0xff]  }
 0x24a   : > { %9761 = vmatprep.subr.bf16.mxu1 %v12803_v46  ;;  %9798 = vmatmul.mubr.bf16.gmra.mxu0 %v6156_v42  ;;  %v11873_v48 = vrot.slane %v5676_v2, %v10509_v15  ;;  %v6165_v57 = vrot.slane %v6157_v23, %v10509_v15  ;;  %v11879_v50 = vcombine.high %v7467_v25, %v7467_v25  ;;  %v9367_v25 = vld.sshfl [vmem:[%s10492_s24 + $0x14] sm:$0x32 pattern:$0x75316420] }
 0x24b   : > { %v7508_v29 = vcombine.high %v9364_v33, %v9364_v33  ;;  %9844 = vmatpush3.bf16.msra.mxu0 %v10057_v36  ;;  %9801 = vmatprep.mubr.msk.bf16.mxu0 %vm10280_vm15, %v12803_v46  ;;  %v6172_v31 = vrot.slane %v6158_v53, %v10509_v15  ;;  %v7476_v52 = vcombine.high %v11869_v6, %v11869_v6  ;;  %v7645_v62 = vunpack.i.h.s16 %v11869_v6 }
 0x24c   : > { %v7498_v40 = vrot.slane %v7484_v32, %v10509_v15  ;;  %v5692_v11 = vcombine.low %v11873_v48, %v11862_v1  ;;  %9845 = vmatprep.subr.bf16.mxu0 %v12803_v46  ;;  %v7515_v19 = vrot.slane %v9364_v33, %v10509_v15  ;;  %v7647_v37 = vunpack.i.h.s16 %v11879_v50 }
 0x24d   : > { %9762 = vmatpush3.bf16.msra.mxu1 %v10044_v14  ;;  %v6173_v54 = vcombine.low %v6165_v57, %v6172_v31  ;;  %v7499_v5 = vcombine.high %v7491_v13, %v7491_v13  ;;  %v11895_v59 = vrot.slane %v7508_v29, %v10509_v15  ;;  %v7532_v8 = vcombine.high %v11877_v45, %v11877_v45  ;;  %v9368_v13 = vld.sshfl [vmem:[%s10492_s24 + $0x18] sm:$0x32 pattern:$0x75316420]  ;;  %v10052_v29 = vld [vmem:[#allocation8 + $0xa8] sm:$0xff]  }
 0x24e   : > { %9763 = vmatprep.subr.bf16.mxu1 %v12803_v46  ;;  %v7500_v41 = vcombine.high %v7498_v40, %v7498_v40  ;;  %v7523_v30 = vcombine.high %v7515_v19, %v7515_v19  ;;  %v7649_v9 = vunpack.i.h.s16 %v7476_v52  ;;  %v7650_v18 = vunpack.i.h.s16 %v7498_v40 }
 0x24f   : > { %v6180_v60 = vrot.slane %v6173_v54, %v10509_v15  ;;  %9846 = vmatpush3.bf16.msra.mxu0 %v10059_v10  ;;  %v7524_v63 = vcombine.high %v11895_v59, %v11895_v59  ;;  %v11903_v56 = vrot.slane %v7532_v8, %v10509_v15  ;;  %v7655_v17 = vunpack.i.h.s16 %v11895_v59 }
 0x250   : > { %9847 = vmatprep.subr.bf16.mxu0 %v12803_v46  ;;  %v7657_v39 = vunpack.i.h.s16 %v7523_v30  ;;  %v9370_v4 = vpack.i.b16 %v11879_v50, %v7645_v62  ;;  %v9371_v0 = vpack.i.b16 %v7476_v52, %v7647_v37  ;;  %v7687_v35 = vpack.i.b16 %v7650_v18, %v7649_v9 }
 0x251   : > { %9764 = vmatpush3.bf16.msra.mxu1 %v10046_v61  ;;  %v7659_v47 = vunpack.i.h.s16 %v7524_v63  ;;  %v7660_v43 = vunpack.i.h.s16 %v11903_v56  ;;  %v9372_v51 = vpack.i.b16 %v7523_v30, %v7655_v17  ;;  %v6810_v12 = vunpack.i.h.s16 %v7499_v5 }
 0x252   : > { %9805 = vmatprep.subr.bf16.mxu1 %v12803_v46  ;;  %9802 = vmatmul.mubr.bf16.gmra.mxu0 %v6180_v60  ;;  %v9373_v58 = vpack.i.b16 %v7524_v63, %v7657_v39  ;;  %v7705_v20 = vcombine.low %v9370_v4, %v9371_v0  ;;  %v7706_v27 = vcombine.low %v7687_v35, %v7499_v5 }
 0x253   : > { %v9342_v55 = vpack.i.b16 %v7498_v40, %v7476_v52  ;;  %9848 = vmatpush3.bf16.msra.mxu0 %v10061_v7  ;;  %v7692_v49 = vpack.i.b16 %v7660_v43, %v7659_v47  ;;  %v7707_v26 = vcombine.low %v7500_v41, %v9372_v51  ;;  %v9343_v36 = vpack.i.b16 %v7499_v5, %v7650_v18  ;;  %v10054_v5 = vld [vmem:[#allocation8 + $0xa0] sm:$0xff]   ;;  %v10056_v47 = vld [vmem:[#allocation8 + $0x98] sm:$0xff]  }
 0x254   : > { %9766 = vmatmul.mubr.bf16.vlgmr.msra.gmra.mxu1 %v5626_v38  ;;  %v7715_v28 = vrot.slane %v7705_v20, %v10509_v15  ;;  %v7722_v33 = vrot.slane %v7706_v27, %v10509_v15  ;;  %v9344_v24 = vpack.i.b16 %v7500_v41, %v6810_v12  ;;  %9849 = vmatprep.mubr.msk.bf16.mxu0 %vm10280_vm15, %v12803_v46 }
 0x255   : > { %9806 = vmatpush3.bf16.msra.mxu1 %v10048_v22  ;;  %9769 = vmatprep.mubr.msk.bf16.mxu1 %vm10280_vm15, %v12803_v46  ;;  %v7708_v3 = vcombine.low %v9373_v58, %v7692_v49  ;;  %v7729_v38 = vrot.slane %v7707_v26, %v10509_v15  ;;  %v9345_v14 = vpack.i.b16 %v11903_v56, %v7524_v63 }
 0x256   : > { %9807 = vmatprep.subr.bf16.mxu1 %v12803_v46  ;;  %v7737_v42 = vcombine.low %v7715_v28, %v7722_v33  ;;  %v6862_v2 = vcombine.low %v11869_v6, %v11879_v50  ;;  %v6863_v23 = vcombine.low %v9342_v55, %v9343_v36  ;;  %v5675_v53 = vcombine.low %v11850_v16, %v11856_v34 }
 0x257   : > { %v7736_v32 = vrot.slane %v7708_v3, %v10509_v15  ;;  %v7556_v57 = vcombine.high %v9366_v21, %v9366_v21  ;;  %v5699_v31 = vrot.slane %v5692_v11, %v10509_v15  ;;  %v6864_v6 = vcombine.low %v9344_v24, %v11895_v59 }
 0x258   : > { %v7745_v10 = vrot.slane %v7737_v42, %v10509_v15  ;;  %v6865_v50 = vcombine.low %v7523_v30, %v9345_v14  ;;  %v6872_v16 = vrot.slane %v6862_v2, %v10509_v15  ;;  %v7563_v34 = vrot.slane %v9366_v21, %v10509_v15  ;;  %v9369_v14 = vld.sshfl [vmem:[%s10492_s24 + $0x1c] sm:$0x32 pattern:$0x75316420]  ;;  %v10058_v42 = vld [vmem:[#allocation8 + $0x90] sm:$0xff]  }
 0x259   : > { %9808 = vmatpush3.bf16.msra.mxu1 %v10050_v44  ;;  %v7738_v52 = vcombine.low %v7729_v38, %v7736_v32  ;;  %v11942_v40 = vrot.slane %v7556_v57, %v10509_v15  ;;  %v6879_v61 = vrot.slane %v6863_v23, %v10509_v15  ;;  %v7580_v19 = vcombine.high %v9367_v25, %v9367_v25 }
 0x25a   : > { %9809 = vmatprep.subr.bf16.mxu1 %v12803_v46  ;;  %v7587_v1 = vrot.slane %v9367_v25, %v10509_v15  ;;  %v7604_v48 = vcombine.high %v9368_v13, %v9368_v13  ;;  %v7539_v62 = vrot.slane %v11877_v45, %v10509_v15  ;;  %v11949_v37 = vcombine.high %v7563_v34, %v7563_v34 }
 0x25b   : > { %v7752_v11 = vrot.slane %v7738_v52, %v10509_v15  ;;  %v7572_v54 = vcombine.high %v11942_v40, %v11942_v40  ;;  %v6886_v59 = vrot.slane %v6864_v6, %v10509_v15  ;;  %v7594_v8 = vrot.slane %v7580_v19, %v10509_v15 }
 0x25c   : > { %9770 = vmatmul.mubr.bf16.gmra.mxu1 %v5675_v53  ;;  %v7595_v41 = vcombine.high %v7587_v1, %v7587_v1  ;;  %v7665_v30 = vunpack.i.h.s16 %v11942_v40  ;;  %v6893_v9 = vrot.slane %v6865_v50, %v10509_v15  ;;  %v7611_v18 = vrot.slane %v9368_v13, %v10509_v15 }
 0x25d   : > { %9810 = vmatpush3.bf16.msra.mxu1 %v10052_v29  ;;  %9773 = vmatprep.mubr.msk.bf16.mxu1 %vm10280_vm15, %v12803_v46  ;;  %v7753_v45 = vcombine.low %v7745_v10, %v7752_v11  ;;  %v7618_v60 = vrot.slane %v7604_v48, %v10509_v15  ;;  %v11962_v7 = vcombine.low %v6872_v16, %v6879_v61  ;;  %v7667_v63 = vunpack.i.h.s16 %v11949_v37  ;;  %v10060_v16 = vld [vmem:[#allocation8 + $0x88] sm:$0xff]  }
 0x25e   : > { %9811 = vmatprep.subr.bf16.mxu1 %v12803_v46  ;;  %v7669_v17 = vunpack.i.h.s16 %v7572_v54  ;;  %v7670_v22 = vunpack.i.h.s16 %v7594_v8  ;;  %v7596_v39 = vcombine.high %v7594_v8, %v7594_v8  ;;  %v11965_v4 = vcombine.high %v7611_v18, %v7611_v18 }
 0x25f   : > { %9850 = vmatmul.mubr.bf16.vlgmr.msra.gmra.mxu0 %v7753_v45  ;;  %v7675_v0 = vunpack.i.h.s16 %v7618_v60  ;;  %v9374_v35 = vpack.i.b16 %v11949_v37, %v7665_v30  ;;  %v9375_v51 = vpack.i.b16 %v7572_v54, %v7667_v63  ;;  %v9378_v58 = vcombine.high %v7539_v62, %v11903_v56 }
 0x260   : > { %9853 = vmatprep.mubr.msk.bf16.mxu0 %vm10280_vm15, %v12803_v46  ;;  %v7697_v12 = vpack.i.b16 %v7670_v22, %v7669_v17  ;;  %v6830_v20 = vunpack.i.h.s16 %v7595_v41  ;;  %v6704_v55 = vcombine.high %v7539_v62, %v7539_v62  ;;  %v6705_v49 = vcombine.high %v11903_v56, %v11903_v56 }
 0x261   : > { %9812 = vmatpush3.bf16.msra.mxu1 %v10054_v5  ;;  %v9376_v27 = vpack.i.b16 %v11965_v4, %v7675_v0  ;;  %v9348_v26 = vpack.i.b16 %v7594_v8, %v7572_v54  ;;  %v7755_v36 = vcombine.low %v9374_v35, %v9375_v51  ;;  %v7764_v28 = vrot.slane %v9378_v58, %v10509_v15 }
 0x262   : > { %9813 = vmatprep.subr.bf16.mxu1 %v12803_v46  ;;  %v7756_v44 = vcombine.low %v7697_v12, %v7595_v41  ;;  %v9349_v33 = vpack.i.b16 %v7595_v41, %v7670_v22  ;;  %v6820_v21 = vunpack.i.h.s16 %v6704_v55  ;;  %v9346_v3 = vpack.i.b16 %v6704_v55, %v7660_v43 }
 0x263   : > { %v7757_v24 = vcombine.low %v7596_v39, %v9376_v27  ;;  %v9350_v38 = vpack.i.b16 %v7596_v39, %v6830_v20  ;;  %v6895_v2 = vcombine.low %v6886_v59, %v6893_v9  ;;  %v7771_v23 = vrot.slane %v7755_v36, %v10509_v15  ;;  %v10062_v9 = vld [vmem:[#allocation8 + $0x80] sm:$0xff]  }
 0x264   : > { %9774 = vmatmul.mubr.bf16.gmra.mxu1 %v5699_v31  ;;  %v7778_v25 = vrot.slane %v7756_v44, %v10509_v15  ;;  %v9347_v32 = vpack.i.b16 %v6705_v49, %v6820_v21  ;;  %v6913_v13 = vcombine.low %v9348_v26, %v9349_v33  ;;  %v7620_v57 = vcombine.high %v7618_v60, %v7618_v60 }
 0x265   : > { %9814 = vmatpush3.bf16.msra.mxu1 %v10056_v47  ;;  %9821 = vmatprep.mubr.msk.bf16.mxu1 %vm10280_vm15, %v12803_v46  ;;  %v7785_v53 = vrot.slane %v7757_v24, %v10509_v15  ;;  %v6914_v56 = vcombine.low %v9350_v38, %v7618_v60  ;;  %v7786_v43 = vcombine.low %v7764_v28, %v7771_v23  ;;  %v7677_v31 = vunpack.i.h.s16 %v11965_v4 }
 0x266   : > { %9815 = vmatprep.subr.bf16.mxu1 %v12803_v46  ;;  %v7628_v29 = vcombine.high %v9369_v14, %v9369_v14  ;;  %v6902_v10 = vrot.slane %v11962_v7, %v10509_v15  ;;  %v6911_v50 = vcombine.low %v9346_v3, %v9347_v32  ;;  %v6912_v52 = vcombine.low %v11942_v40, %v11949_v37 }
 0x267   : > { %v7787_v6 = vcombine.low %v7778_v25, %v7785_v53  ;;  %v7794_v34 = vrot.slane %v7786_v43, %v10509_v15  ;;  %v7635_v61 = vrot.slane %v9369_v14, %v10509_v15  ;;  %v7679_v1 = vunpack.i.h.s16 %v7620_v57 }
 0x268   : > { %v7642_v19 = vrot.slane %v7628_v29, %v10509_v15  ;;  %v6909_v48 = vrot.slane %v6895_v2, %v10509_v15  ;;  %v6935_v62 = vrot.slane %v6913_v13, %v10509_v15  ;;  %v6942_v54 = vrot.slane %v6914_v56, %v10509_v15  ;;  %v9388_v13 = vld [vmem:[%s12747_s6] ss:$0 sm:$0xff] }
 0x269   : > { %9816 = vmatpush3.bf16.msra.mxu1 %v10058_v42  ;;  %v7801_v11 = vrot.slane %v7787_v6, %v10509_v15  ;;  %v9377_v37 = vpack.i.b16 %v7620_v57, %v7677_v31  ;;  %v6800_v59 = vcombine.high %v7635_v61, %v7635_v61  ;;  %v6921_v41 = vrot.slane %v6911_v50, %v10509_v15  ;;  %v8906_v6 = vld [vmem:[#allocation10 + $0x178] sm:$0xff] }
 0x26a   : > { %9817 = vmatprep.subr.bf16.mxu1 %v12803_v46  ;;  %v7680_v40 = vunpack.i.h.s16 %v7642_v19  ;;  %v9379_v5 = vcombine.high %v7635_v61, %v7642_v19  ;;  %v6928_v30 = vrot.slane %v6912_v52, %v10509_v15  ;;  %v6801_v45 = vcombine.high %v7642_v19, %v7642_v19  ;;  %v8905_v61 = vld [vmem:[#allocation10 + $0x170] sm:$0xff] }
 0x26b   : > { %v7802_v8 = vcombine.low %v7794_v34, %v7801_v11  ;;  %v6840_v60 = vunpack.i.h.s16 %v6800_v59  ;;  %v6910_v7 = vcombine.low %v6902_v10, %v6909_v48  ;;  %v6944_v63 = vcombine.low %v6935_v62, %v6942_v54 }
 0x26c   : > { %v7702_v18 = vpack.i.b16 %v7680_v40, %v7679_v1  ;;  %v7818_v22 = vrot.slane %v9379_v5, %v10509_v15  ;;  %v6943_v39 = vcombine.low %v6921_v41, %v6928_v30  ;;  %v9351_v0 = vpack.i.b16 %v7642_v19, %v7620_v57 }
 0x26d   : > { %9818 = vmatpush3.bf16.msra.mxu1 %v10060_v16  ;;  %9854 = vmatmul.mubr.bf16.gmra.mxu0 %v7802_v8  ;;  %v9352_v35 = vpack.i.b16 %v6800_v59, %v7680_v40  ;;  %v9353_v47 = vpack.i.b16 %v6801_v45, %v6840_v60  ;;  %v6958_v20 = vrot.slane %v6944_v63, %v10509_v15  ;;  %v8904_v40 = vld [vmem:[#allocation10 + $0x168] sm:$0xff]  ;;  %v8903_v8 = vld [vmem:[#allocation10 + $0x160] sm:$0xff] }
 0x26e   : > { %9819 = vmatprep.subr.bf16.mxu1 %v12803_v46  ;;  %9857 = vmatprep.mubr.msk.bf16.mxu0 %vm10280_vm15, %v12803_v46  ;;  %v7803_v17 = vcombine.low %v9377_v37, %v7702_v18  ;;  %v6951_v58 = vrot.slane %v6943_v39, %v10509_v15  ;;  %v6960_v27 = vcombine.low %v11965_v4, %v9351_v0 }
 0x26f   : > { %v6961_v55 = vcombine.low %v9352_v35, %v9353_v47  ;;  %v8277_v57 = vrot.slane %v9388_v13, %v10509_v15  ;;  %v8270_v10 = vcombine.high %v9388_v13, %v9388_v13 }
 0x270   : > { %v7811_v51 = vrot.slane %v7803_v17, %v10509_v15  ;;  %v6959_v26 = vcombine.low %v6951_v58, %v6958_v20  ;;  %v6968_v36 = vrot.slane %v6960_v27, %v10509_v15  ;;  %v8902_v17 = vld [vmem:[#allocation10 + $0x158] sm:$0xff]  ;;  %v8901_v27 = vld [vmem:[#allocation10 + $0x150] sm:$0xff] }
 0x271   : > { %9820 = vmatpush3.bf16.msra.mxu1 %v10062_v9  ;;  %v6975_v44 = vrot.slane %v6961_v55, %v10509_v15  ;;  %v8285_v1 = vcombine.high %v8277_v57, %v8277_v57  ;;  %v8284_v54 = vrot.slane %v8270_v10, %v10509_v15  ;;  %v12039_v9 = vrot.slane %v8277_v57, %v10509_v15  ;;  %v8898_v10 = vld [vmem:[#allocation10 + $0x138] sm:$0xff] }
 0x272   : > { %9861 = vmatprep.subr.mxu1 %v12803_v46  ;;  %v7819_v12 = vcombine.low %v7811_v51, %v7818_v22 }
 0x273   : > { %v6976_v28 = vcombine.low %v6968_v36, %v6975_v44  ;;  %v12042_v18 = vrot.slane %v8285_v1, %v10509_v15  ;;  %v12048_v63 = vrot.slane %v8284_v54, %v10509_v15  ;;  %v12071_v44 = vcombine.high %v12039_v9, %v12039_v9 }
 0x274   : > { %9822 = vmatmul.mubr.bf16.vlgmr.msra.gmra.mxu1 %v6910_v7  ;;  %v7826_v49 = vrot.slane %v7819_v12, %v10509_v15 }
 0x275   : > { %9825 = vmatprep.mubr.msk.bf16.mxu1 %vm10280_vm15, %v12803_v46  ;;  %v6983_v33 = vrot.slane %v6976_v28, %v10509_v15  ;;  %9862 = vmatpush3.msra.mxu1 %v8906_v6  ;;  %v12075_v28 = vcombine.high %v12042_v18, %v12042_v18 }
 0x276   : > { %9858 = vmatmul.mubr.bf16.gmra.mxu0 %v7826_v49  ;;  %9863 = vmatprep.subr.mxu1 %v12803_v46 }
 0x277   : > { %9864 = vmatpush3.msra.mxu1 %v8905_v61 }
 0x278   : > { %9865 = vmatprep.subr.mxu1 %v12803_v46 }
 0x279   : > { %9866 = vmatpush3.msra.mxu1 %v8904_v40 }
 0x27a   : > { %9867 = vmatprep.subr.mxu1 %v12803_v46 }
 0x27b   : > { %9868 = vmatpush3.msra.mxu1 %v8903_v8 }
 0x27c   : > { %9826 = vmatmul.mubr.bf16.gmra.mxu1 %v6959_v26  ;;  %9869 = vmatprep.subr.mxu1 %v12803_v46 }
 0x27d   : > { %9829 = vmatprep.mubr.msk.bf16.mxu1 %vm10280_vm15, %v12803_v46  ;;  %9870 = vmatpush3.msra.mxu1 %v8902_v17 }
 0x27e   : > { %9871 = vmatprep.subr.mxu1 %v12803_v46 }
 0x27f   : > { %9872 = vmatpush3.msra.mxu1 %v8901_v27 }
 0x280   : > { %9873 = vmatprep.subr.mxu1 %v12803_v46 }
 0x284   : > { %9830 = vmatmul.mubr.bf16.gmra.mxu1 %v6983_v33  ;;  %v8900_v33 = vld [vmem:[#allocation10 + $0x148] sm:$0xff] }
 0x285   : > { %9893 = vmatprep.mubr.msk.f32.mxu1 %vm10280_vm15, %v12803_v46  ;;  %9874 = vmatpush3.msra.mxu1 %v8900_v33 }
 0x286   : > { %9875 = vmatprep.subr.mxu1 %v12803_v46 }
 0x2ad   : > { %v12019_v4 = vpop.f32.mrf.mxu0 }
 0x2ae   : > { %12807 = vst [vmem:[#allocation16_spill] sm:$0xff] %v12019_v4 }
 0x2af   : > { %v9748_v24 = vpop.f32.mrf.mxu0 }
 0x2f4   : > { %v12021_v21 = vpop.f32.mrf.mxu1 }
 0x2f5   : > { %12808 = vst [vmem:[#allocation17_spill] sm:$0xff] %v12021_v21 }
 0x2f6   : > { %v9713_v3 = vpop.f32.mrf.mxu1  ;;  %v6266_v38 = vpop.f32.mrf.mxu0 }
 0x2f8   : > { %v9795_v14 = vpop.f32.mrf.mxu0 }
 0x2fa   : > { %v6269_v42 = vpop.f32.mrf.mxu0 }
 0x2fc   : > { %v9796_v2 = vpop.f32.mrf.mxu0 }
 0x30a   : > { %v6274_v23 = vpop.f32.mrf.mxu0 }
 0x30c   : > { %v9799_v25 = vpop.f32.mrf.mxu0 }
 0x30e   : > { %v12023_v53 = vpop.f32.mrf.mxu0 }
 0x310   : > { %v9800_v32 = vpop.f32.mrf.mxu0 }
 0x312   : > { %v12028_v56 = vpop.f32.mrf.mxu0 }
 0x314   : > { %v5785_v43 = vpop.f32.mrf.mxu1  ;;  %v9803_v31 = vpop.f32.mrf.mxu0 }
 0x315   : > { %v6267_v29 = vadd.f32 %v6266_v38, %v5785_v43 }
 0x316   : > { %v9767_v50 = vpop.f32.mrf.mxu1  ;;  %v6285_v34 = vpop.f32.mrf.mxu0 }
 0x317   : > { %v6293_v52 = vcombine.high %v6267_v29, %v6267_v29  ;;  %v6300_v16 = vrot.slane %v6267_v29, %v10509_v15 }
 0x318   : > { %v5788_v19 = vpop.f32.mrf.mxu1  ;;  %v9804_v62 = vpop.f32.mrf.mxu0 }
 0x319   : > { %v6307_v48 = vrot.slane %v6293_v52, %v10509_v15  ;;  %v6270_v11 = vadd.f32 %v6269_v42, %v5788_v19  ;;  %v6308_v37 = vcombine.high %v6300_v16, %v6300_v16  ;;  %v12045_v60 = vrot.slane %v6300_v16, %v10509_v15  ;;  %v8899_v42 = vld [vmem:[#allocation10 + $0x140] sm:$0xff]  ;;  %v8897_v62 = vld [vmem:[#allocation10 + $0x130] sm:$0xff] }
 0x31a   : > { %v9768_v5 = vpop.f32.mrf.mxu1  ;;  %9876 = vmatpush3.msra.mxu1 %v8899_v42 }
 0x31b   : > { %v6309_v59 = vcombine.high %v6307_v48, %v6307_v48  ;;  %v6342_v41 = vcombine.high %v6270_v11, %v6270_v11  ;;  %v6349_v30 = vrot.slane %v6270_v11, %v10509_v15  ;;  %v12052_v22 = vrot.slane %v6307_v48, %v10509_v15  ;;  %9877 = vmatprep.subr.mxu1 %v12803_v46 }
 0x31c   : > { %v5793_v45 = vpop.f32.mrf.mxu1  ;;  %v12055_v39 = vrot.slane %v6308_v37, %v10509_v15  ;;  %v6338_v2 = vcombine.high %v12045_v60, %v12045_v60  ;;  %9878 = vmatpush3.msra.mxu1 %v8898_v10  ;;  %v8894_v10 = vld [vmem:[#allocation10 + $0x118] sm:$0xff] }
 0x31d   : > { %v6275_v7 = vadd.f32 %v6274_v23, %v5793_v45  ;;  %v6356_v0 = vrot.slane %v6342_v41, %v10509_v15  ;;  %v6357_v35 = vcombine.high %v6349_v30, %v6349_v30  ;;  %v12059_v51 = vrot.slane %v6309_v59, %v10509_v15  ;;  %9879 = vmatprep.subr.mxu1 %v12803_v46 }
 0x31e   : > { %v9771_v47 = vpop.f32.mrf.mxu1  ;;  %v12062_v12 = vrot.slane %v6349_v30, %v10509_v15  ;;  %v6340_v25 = vcombine.high %v12055_v39, %v12055_v39  ;;  %9880 = vmatpush3.msra.mxu1 %v8897_v62 }
 0x31f   : > { %v6391_v58 = vcombine.high %v6275_v7, %v6275_v7  ;;  %v6398_v20 = vrot.slane %v6275_v7, %v10509_v15  ;;  %v6358_v55 = vcombine.high %v6356_v0, %v6356_v0  ;;  %v12067_v49 = vrot.slane %v6356_v0, %v10509_v15  ;;  %v7912_v36 = vpop.f32.mrf.mxu0  ;;  %v8896_v7 = vld [vmem:[#allocation10 + $0x128] sm:$0xff]  ;;  %9881 = vmatprep.subr.mxu1 %v12803_v46 }
 0x320   : > { %v5796_v26 = vpop.f32.mrf.mxu1  ;;  %v12078_v24 = vrot.slane %v6357_v35, %v10509_v15  ;;  %v7939_v13 = vcombine.high %v7912_v36, %v7912_v36  ;;  %v7946_v5 = vrot.slane %v7912_v36, %v10509_v15  ;;  %v8895_v36 = vld [vmem:[#allocation10 + $0x120] sm:$0xff]  ;;  %9882 = vmatpush3.msra.mxu1 %v8896_v7 }
 0x321   : > { %v6405_v3 = vrot.slane %v6391_v58, %v10509_v15  ;;  %v6406_v38 = vcombine.high %v6398_v20, %v6398_v20  ;;  %v6278_v14 = vadd.f32 %v12023_v53, %v5796_v26  ;;  %v9851_v43 = vpop.f32.mrf.mxu0  ;;  %v12094_v31 = vrot.slane %v6398_v20, %v10509_v15  ;;  %9883 = vmatprep.subr.mxu1 %v12803_v46 }
 0x322   : > { %v9772_v32 = vpop.f32.mrf.mxu1  ;;  %v12098_v6 = vrot.slane %v6358_v55, %v10509_v15  ;;  %v7953_v59 = vrot.slane %v7939_v13, %v10509_v15  ;;  %9884 = vmatpush3.msra.mxu1 %v8895_v36  ;;  %v8892_v36 = vld [vmem:[#allocation10 + $0x108] sm:$0xff] }
 0x323   : > { %v6407_v29 = vcombine.high %v6405_v3, %v6405_v3  ;;  %v6440_v52 = vcombine.high %v6278_v14, %v6278_v14  ;;  %v6447_v16 = vrot.slane %v6278_v14, %v10509_v15  ;;  %v12103_v61 = vpop.f32.mrf.mxu0  ;;  %v12108_v1 = vrot.slane %v6405_v3, %v10509_v15  ;;  %9885 = vmatprep.subr.mxu1 %v12803_v46 }
 0x324   : > { %v5801_v34 = vpop.f32.mrf.mxu1  ;;  %v12111_v48 = vrot.slane %v6406_v38, %v10509_v15  ;;  %v7954_v14 = vcombine.high %v7946_v5, %v7946_v5  ;;  %v7955_v42 = vcombine.high %v7953_v59, %v7953_v59  ;;  %9886 = vmatpush3.msra.mxu1 %v8894_v10 }
 0x325   : > { %v6283_v11 = vadd.f32 %v12028_v56, %v5801_v34  ;;  %v6454_v54 = vrot.slane %v6440_v52, %v10509_v15  ;;  %v6455_v40 = vcombine.high %v6447_v16, %v6447_v16  ;;  %v9852_v8 = vpop.f32.mrf.mxu0  ;;  %v12119_v41 = vrot.slane %v6407_v29, %v10509_v15  ;;  %9887 = vmatprep.subr.mxu1 %v12803_v46 }
 0x326   : > { %v9775_v37 = vpop.f32.mrf.mxu1  ;;  %v12128_v35 = vrot.slane %v6447_v16, %v10509_v15  ;;  %v12160_v34 = vrot.slane %v7946_v5, %v10509_v15  ;;  %v8893_v5 = vld [vmem:[#allocation10 + $0x110] sm:$0xff] }
 0x327   : > { %v6489_v56 = vcombine.high %v6283_v11, %v6283_v11  ;;  %v6496_v45 = vrot.slane %v6283_v11, %v10509_v15  ;;  %v6456_v0 = vcombine.high %v6454_v54, %v6454_v54  ;;  %v12131_v47 = vrot.slane %v6454_v54, %v10509_v15  ;;  %9888 = vmatpush3.msra.mxu1 %v8893_v5 }
 0x328   : > { %v5804_v58 = vpop.f32.mrf.mxu1  ;;  %v12134_v20 = vrot.slane %v6455_v40, %v10509_v15  ;;  %v12163_v11 = vrot.slane %v7953_v59, %v10509_v15  ;;  %v12178_v59 = vrot.slane %v7954_v14, %v10509_v15  ;;  %9889 = vmatprep.subr.mxu1 %v12803_v46 }
 0x329   : > { %v6503_v27 = vrot.slane %v6489_v56, %v10509_v15  ;;  %v6504_v55 = vcombine.high %v6496_v45, %v6496_v45  ;;  %v12138_v26 = vrot.slane %v6496_v45, %v10509_v15  ;;  %v12144_v3 = vrot.slane %v6456_v0, %v10509_v15  ;;  %9890 = vmatpush3.msra.mxu1 %v8892_v36 }
 0x32a   : > { %v9776_v38 = vpop.f32.mrf.mxu1  ;;  %v12181_v56 = vrot.slane %v7955_v42, %v10509_v15  ;;  %v7988_v45 = vcombine.high %v12103_v61, %v12103_v61  ;;  %v7995_v58 = vrot.slane %v12103_v61, %v10509_v15  ;;  %9891 = vmatprep.subr.mxu1 %v12803_v46 }
 0x32b   : > { %v6505_v43 = vcombine.high %v6503_v27, %v6503_v27  ;;  %v12151_v29 = vrot.slane %v6503_v27, %v10509_v15  ;;  %v12157_v16 = vrot.slane %v6504_v55, %v10509_v15  ;;  %v8891_v38 = vld [vmem:[#allocation10 + $0x100] sm:$0xff] }
 0x32c   : > { %v8003_v61 = vcombine.high %v7995_v58, %v7995_v58  ;;  %v12199_v0 = vrot.slane %v7995_v58, %v10509_v15  ;;  %9892 = vmatpush3.msra.mxu1 %v8891_v38 }
 0x32d   : > { %v12175_v8 = vrot.slane %v6505_v43, %v10509_v15  ;;  %v7920_v7 = vpop.f32.mrf.mxu0  ;;  %v8002_v43 = vrot.slane %v7988_v45, %v10509_v15 }
 0x32e   : > { %v8037_v27 = vcombine.high %v7920_v7, %v7920_v7  ;;  %v8044_v55 = vrot.slane %v7920_v7, %v10509_v15 }
 0x32f   : > { %12809 = vst [vmem:[#allocation18_spill] sm:$0xff] %v12175_v8  ;;  %v9855_v10 = vpop.f32.mrf.mxu0  ;;  %v8004_v54 = vcombine.high %v8002_v43, %v8002_v43  ;;  %v12206_v62 = vrot.slane %v8002_v43, %v10509_v15 }
 0x330   : > { %v8051_v7 = vrot.slane %v8037_v27, %v10509_v15  ;;  %v8052_v37 = vcombine.high %v8044_v55, %v8044_v55  ;;  %v12209_v45 = vrot.slane %v8044_v55, %v10509_v15  ;;  %v12214_v27 = vrot.slane %v8003_v61, %v10509_v15 }
 0x331   : > { %v7923_v5 = vpop.f32.mrf.mxu0  ;;  %v12223_v55 = vrot.slane %v8004_v54, %v10509_v15 }
 0x332   : > { %v8053_v10 = vcombine.high %v8051_v7, %v8051_v7  ;;  %v12217_v52 = vrot.slane %v8051_v7, %v10509_v15  ;;  %v12228_v33 = vrot.slane %v8052_v37, %v10509_v15  ;;  %v8086_v38 = vcombine.high %v7923_v5, %v7923_v5 }
 0x333   : > { %v9856_v61 = vpop.f32.mrf.mxu0  ;;  %v12253_v37 = vrot.slane %v7923_v5, %v10509_v15 }
 0x334   : > { %v7069_v13 = vpop.f32.mrf.mxu1  ;;  %v12234_v43 = vrot.slane %v8053_v10, %v10509_v15 }
 0x335   : > { %v7096_v32 = vcombine.high %v7069_v13, %v7069_v13  ;;  %v7103_v7 = vrot.slane %v7069_v13, %v10509_v15 }
 0x336   : > { %v9823_v36 = vpop.f32.mrf.mxu1  ;;  %v12246_v46 = vpop.f32.mrf.mxu0 }
 0x337   : > { %v7110_v61 = vrot.slane %v7096_v32, %v10509_v15  ;;  %v7111_v13 = vcombine.high %v7103_v7, %v7103_v7  ;;  %v7119_v17 = vrot.slane %v7103_v7, %v10509_v15  ;;  %v12256_v32 = vrot.slane %v8086_v38, %v10509_v15 }
 0x338   : > { %v7072_v50 = vpop.f32.mrf.mxu1  ;;  %v9859_v53 = vpop.f32.mrf.mxu0  ;;  %v12265_v5 = vrot.slane %v12246_v46, %v10509_v15 }
 0x339   : > { %v7112_v30 = vcombine.high %v7110_v61, %v7110_v61  ;;  %v7126_v7 = vrot.slane %v7110_v61, %v10509_v15  ;;  %v7133_v10 = vrot.slane %v7111_v13, %v10509_v15  ;;  %v7141_v19 = vcombine.high %v7119_v17, %v7119_v17 }
 0x33a   : > { %v7381_v58 = vadd.f32 %v7119_v17, %v12045_v60  ;;  %v7145_v42 = vcombine.high %v7072_v50, %v7072_v50  ;;  %v9824_v54 = vpop.f32.mrf.mxu1  ;;  %v7931_v13 = vpop.f32.mrf.mxu0  ;;  %v7152_v36 = vrot.slane %v7072_v50, %v10509_v15 }
 0x33b   : > { %v7140_v38 = vrot.slane %v7112_v30, %v10509_v15  ;;  %v7142_v40 = vcombine.high %v7126_v7, %v7126_v7  ;;  %v7143_v57 = vcombine.high %v7133_v10, %v7133_v10  ;;  %v7382_v61 = vadd.f32 %v7133_v10, %v12055_v39 }
 0x33c   : > { %v7383_v53 = vadd.f32 %v7141_v19, %v6338_v2  ;;  %v7385_v17 = vadd.f32 %v7126_v7, %v12052_v22  ;;  %v8224_v54 = vadd.f32 %v12160_v34, %v7381_v58  ;;  %v12275_v14 = vpop.f32.mrf.mxu1  ;;  %v12810_v13 = vcombine.high %v12052_v22, %v12052_v22  ;;  %v9860_v2 = vpop.f32.mrf.mxu0 }
 0x33d   : > { %v7144_v23 = vcombine.high %v7140_v38, %v7140_v38  ;;  %v7384_v30 = vadd.f32 %v7143_v57, %v6340_v25  ;;  %v7386_v10 = vadd.f32 %v7140_v38, %v12059_v51  ;;  %v8225_v19 = vadd.f32 %v12178_v59, %v7382_v61 }
 0x33e   : > { %v7387_v60 = vadd.f32 %v7142_v40, %v12810_v13  ;;  %v12811_v58 = vcombine.high %v12160_v34, %v12160_v34  ;;  %v8228_v7 = vadd.f32 %v12163_v11, %v7385_v17  ;;  %v8314_v4 = vadd.f32 %v12039_v9, %v8224_v54  ;;  %v9827_v21 = vpop.f32.mrf.mxu1 }
 0x33f   : > { %v12812_v39 = vcombine.high %v12059_v51, %v12059_v51  ;;  %v12813_v22 = vcombine.high %v12178_v59, %v12178_v59  ;;  %v8229_v40 = vadd.f32 %v12181_v56, %v7386_v10  ;;  %v12814_v38 = vcombine.high %v12163_v11, %v12163_v11 }
 0x340   : > { %v8226_v50 = vadd.f32 %v12811_v58, %v7383_v53  ;;  %v8315_v61 = vadd.f32 %v12042_v18, %v8225_v19  ;;  %v8318_v21 = vadd.f32 %v12048_v63, %v8228_v7  ;;  %v7159_v17 = vrot.slane %v7145_v42, %v10509_v15  ;;  %v12304_v51 = vpop.f32.mrf.mxu1 }
 0x341   : > { %v7388_v25 = vadd.f32 %v7144_v23, %v12812_v39  ;;  %v8227_v57 = vadd.f32 %v12813_v22, %v7384_v30  ;;  %v8230_v34 = vadd.f32 %v12814_v38, %v7387_v60  ;;  %v12815_v23 = vcombine.high %v12181_v56, %v12181_v56 }
 0x342   : > { %v8316_v53 = vadd.f32 %v12071_v44, %v8226_v50  ;;  %v8319_v30 = vadd.f32 %v12039_v9, %v8229_v40  ;;  %vm8354_vm15 = vcmp.gt.f32.partialorder %v8314_v4, 0.0  ;;  %vm8355_vm7 = vcmp.gt.f32.partialorder %v8315_v61, 0.0  ;;  %v9828_v13 = vpop.f32.mrf.mxu1 }
 0x343   : > { %v8231_v59 = vadd.f32 %v12815_v23, %v7388_v25  ;;  %v8317_v54 = vadd.f32 %v12075_v28, %v8227_v57  ;;  %v8320_v11 = vadd.f32 %v12042_v18, %v8230_v34  ;;  %v8394_v10 = vmul.f32 0.01, %v8314_v4 }
 0x344   : > { %vm8356_vm10 = vcmp.gt.f32.partialorder %v8316_v53, 0.0  ;;  %vm8358_vm12 = vcmp.gt.f32.partialorder %v8318_v21, 0.0  ;;  %vm8359_vm13 = vcmp.gt.f32.partialorder %v8319_v30, 0.0  ;;  %v8395_v56 = vmul.f32 0.01, %v8315_v61  ;;  %v12315_v19 = vpop.f32.mrf.mxu1 }
 0x345   : > { %vm8357_vm11 = vcmp.gt.f32.partialorder %v8317_v54, 0.0  ;;  %vm8360_vm6 = vcmp.gt.f32.partialorder %v8320_v11, 0.0  ;;  %v12313_v42 = vadd.f32 %v12071_v44, %v8231_v59  ;;  %v8396_v60 = vmul.f32 0.01, %v8316_v53 }
 0x346   : > { %v8397_v2 = vmul.f32 0.01, %v8317_v54  ;;  %v8398_v58 = vmul.f32 0.01, %v8318_v21  ;;  %v8399_v50 = vmul.f32 0.01, %v8319_v30  ;;  %v7160_v39 = vcombine.high %v7152_v36, %v7152_v36  ;;  %v9831_v38 = vpop.f32.mrf.mxu1 }
 0x347   : > { %v8400_v7 = vmul.f32 0.01, %v8320_v11  ;;  %v8434_v25 = vsel %vm8354_vm15, %v8314_v4, %v8394_v10  ;;  %v8435_v22 = vsel %vm8355_vm7, %v8315_v61, %v8395_v56  ;;  %v8436_v57 = vsel %vm8356_vm10, %v8316_v53, %v8396_v60 }
 0x348   : > { %v8437_v40 = vsel %vm8357_vm11, %v8317_v54, %v8397_v2  ;;  %v8438_v34 = vsel %vm8358_vm12, %v8318_v21, %v8398_v58  ;;  %v12323_v23 = vsel %vm8359_vm13, %v8319_v30, %v8399_v50  ;;  %v8514_v13 = vcombine.low %v8434_v25, %v8435_v22  ;;  %v7088_v10 = vpop.f32.mrf.mxu1 }
 0x349   : > { %v12326_v59 = vsel %vm8360_vm6, %v8320_v11, %v8400_v7  ;;  %v8515_v8 = vcombine.low %v8436_v57, %v8437_v40  ;;  %v8536_v4 = vrot.slane %v8438_v34, %v10509_v15  ;;  %v7161_v53 = vcombine.high %v7159_v17, %v7159_v17 }
 0x34a   : > { %v8553_v61 = vcombine.low %v12323_v23, %v12326_v59  ;;  %v8401_v54 = vmul.f32 0.01, %v12313_v42  ;;  %v7168_v21 = vrot.slane %v7152_v36, %v10509_v15  ;;  %v7175_v30 = vrot.slane %v7159_v17, %v10509_v15  ;;  %v9832_v50 = vpop.f32.mrf.mxu1 }
 0x34b   : > { %v7182_v56 = vrot.slane %v7160_v39, %v10509_v15  ;;  %v8522_v11 = vrot.slane %v8514_v13, %v10509_v15  ;;  %v8529_v60 = vrot.slane %v8515_v8, %v10509_v15  ;;  %v8551_v2 = vrot.slane %v8536_v4, %v10509_v15 }
 0x34c   : > { %v7189_v58 = vrot.slane %v7161_v53, %v10509_v15  ;;  %v7190_v7 = vcombine.high %v7168_v21, %v7168_v21  ;;  %v7191_v25 = vcombine.high %v7175_v30, %v7175_v30  ;;  %v7389_v57 = vadd.f32 %v7168_v21, %v12062_v12 }
 0x34d   : > { %v7192_v22 = vcombine.high %v7182_v56, %v7182_v56  ;;  %vm8361_vm9 = vcmp.gt.f32.partialorder %v12313_v42, 0.0  ;;  %v8537_v36 = vcombine.low %v8522_v11, %v8529_v60  ;;  %v7390_v39 = vadd.f32 %v7182_v56, %v12078_v24 }
 0x34e   : > { %v7193_v17 = vcombine.high %v7189_v58, %v7189_v58  ;;  %v7393_v40 = vadd.f32 %v7175_v30, %v12067_v49  ;;  %v12816_v8 = vcombine.high %v12062_v12, %v12062_v12  ;;  %v12817_v34 = vcombine.high %v12078_v24, %v12078_v24 }
 0x34f   : > { %v7394_v4 = vadd.f32 %v7189_v58, %v12098_v6  ;;  %v12818_v53 = vcombine.high %v12067_v49, %v12067_v49  ;;  %v8544_v21 = vrot.slane %v8537_v36, %v10509_v15  ;;  %v12819_v56 = vcombine.high %v12098_v6, %v12098_v6 }
 0x350   : > { %v7391_v38 = vadd.f32 %v7190_v7, %v12816_v8  ;;  %v7392_v13 = vadd.f32 %v7192_v22, %v12817_v34  ;;  %v8232_v11 = vadd.f32 %v12199_v0, %v7389_v57  ;;  %v8233_v12 = vadd.f32 %v12214_v27, %v7390_v39 }
 0x351   : > { %v7395_v10 = vadd.f32 %v7191_v25, %v12818_v53  ;;  %v7396_v30 = vadd.f32 %v7193_v17, %v12819_v56  ;;  %v12820_v24 = vcombine.high %v12199_v0, %v12199_v0  ;;  %v12821_v58 = vcombine.high %v12214_v27, %v12214_v27 }
 0x352   : > { %v8236_v49 = vadd.f32 %v12206_v62, %v7393_v40  ;;  %v8237_v7 = vadd.f32 %v12223_v55, %v7394_v4  ;;  %v8552_v25 = vcombine.low %v8544_v21, %v8551_v2  ;;  %v12822_v6 = vcombine.high %v12206_v62, %v12206_v62 }
 0x353   : > { %v8234_v60 = vadd.f32 %v12820_v24, %v7391_v38  ;;  %v8235_v50 = vadd.f32 %v12821_v58, %v7392_v13  ;;  %v12823_v57 = vcombine.high %v12223_v55, %v12223_v55  ;;  %v8322_v0 = vadd.f32 %v12075_v28, %v8232_v11 }
 0x354   : > { %v8238_v22 = vadd.f32 %v12822_v6, %v7395_v10  ;;  %v8323_v17 = vadd.f32 %v12048_v63, %v8233_v12  ;;  %v8326_v40 = vadd.f32 %v12071_v44, %v8236_v49  ;;  %v8835_v2 = vsel %vm8834_vm8, %v8552_v25, -inf }
 0x355   : > { %v8239_v36 = vadd.f32 %v12823_v57, %v7396_v30  ;;  %v8324_v27 = vadd.f32 %v12039_v9, %v8234_v60  ;;  %v8325_v39 = vadd.f32 %v12042_v18, %v8235_v50  ;;  %v8327_v8 = vadd.f32 %v12075_v28, %v8237_v7 }
 0x356   : > { %v8328_v62 = vadd.f32 %v12048_v63, %v8238_v22  ;;  %v8836_v55 = vrot.slane %v8835_v2, 4  ;;  %vm8362_vm15 = vcmp.gt.f32.partialorder %v8322_v0, 0.0  ;;  %vm8363_vm7 = vcmp.gt.f32.partialorder %v8323_v17, 0.0 }
 0x357   : > { %v8329_v38 = vadd.f32 %v12039_v9, %v8239_v36  ;;  %vm8364_vm10 = vcmp.gt.f32.partialorder %v8324_v27, 0.0  ;;  %vm8365_vm11 = vcmp.gt.f32.partialorder %v8325_v39, 0.0  ;;  %vm8366_vm12 = vcmp.gt.f32.partialorder %v8326_v40, 0.0 }
 0x358   : > { %vm8367_vm13 = vcmp.gt.f32.partialorder %v8327_v8, 0.0  ;;  %vm8368_vm6 = vcmp.gt.f32.partialorder %v8328_v62, 0.0  ;;  %v8402_v34 = vmul.f32 0.01, %v8322_v0  ;;  %v8403_v13 = vmul.f32 0.01, %v8323_v17 }
 0x359   : > { %v8404_v4 = vmul.f32 0.01, %v8324_v27  ;;  %v8101_v53 = vcombine.high %v12253_v37, %v12253_v37  ;;  %v8405_v10 = vmul.f32 0.01, %v8325_v39  ;;  %v8406_v21 = vmul.f32 0.01, %v8326_v40 }
 0x35a   : > { %v8407_v56 = vmul.f32 0.01, %v8327_v8  ;;  %v8441_v30 = vsel %vm8361_vm9, %v12313_v42, %v8401_v54  ;;  %v12387_v11 = vmax.f32 %v8835_v2, %v8836_v55  ;;  %v8408_v12 = vmul.f32 0.01, %v8328_v62 }
 0x35b   : > { %v8409_v24 = vmul.f32 0.01, %v8329_v38  ;;  %v8442_v60 = vsel %vm8362_vm15, %v8322_v0, %v8402_v34  ;;  %v8443_v58 = vsel %vm8363_vm7, %v8323_v17, %v8403_v13  ;;  %v8444_v50 = vsel %vm8364_vm10, %v8324_v27, %v8404_v4 }
 0x35c   : > { %v8445_v49 = vsel %vm8365_vm11, %v8325_v39, %v8405_v10  ;;  %v8446_v7 = vsel %vm8366_vm12, %v8326_v40, %v8406_v21  ;;  %v8447_v25 = vsel %vm8367_vm13, %v8327_v8, %v8407_v56  ;;  %v8448_v6 = vsel %vm8368_vm6, %v8328_v62, %v8408_v12 }
 0x35d   : > { %v8554_v22 = vcombine.low %v8441_v30, %v8442_v60  ;;  %v8561_v42 = vrot.slane %v8553_v61, %v10509_v15  ;;  %v8575_v54 = vrot.slane %v8443_v58, %v10509_v15  ;;  %v8592_v57 = vcombine.low %v8444_v50, %v8445_v49 }
 0x35e   : > { %v8593_v36 = vcombine.low %v8446_v7, %v8447_v25  ;;  %v8614_v0 = vrot.slane %v8448_v6, %v10509_v15  ;;  %v7194_v27 = vcombine.high %v12275_v14, %v12275_v14  ;;  %v7201_v39 = vrot.slane %v12275_v14, %v10509_v15 }
 0x35f   : > { %v8568_v17 = vrot.slane %v8554_v22, %v10509_v15  ;;  %vm8369_vm9 = vcmp.gt.f32.partialorder %v8329_v38, 0.0  ;;  %v8838_v40 = vrot.slane %v12387_v11, 2  ;;  %v8590_v23 = vrot.slane %v8575_v54, %v10509_v15 }
 0x360   : > { %v8600_v59 = vrot.slane %v8592_v57, %v10509_v15  ;;  %v8607_v61 = vrot.slane %v8593_v36, %v10509_v15  ;;  %v7208_v8 = vrot.slane %v7194_v27, %v10509_v15  ;;  %v7209_v62 = vcombine.high %v7201_v39, %v7201_v39 }
 0x361   : > { %v8576_v2 = vcombine.low %v8561_v42, %v8568_v17  ;;  %v7217_v55 = vrot.slane %v7201_v39, %v10509_v15  ;;  %v8629_v13 = vrot.slane %v8614_v0, %v10509_v15  ;;  %v12414_v4 = vsel %vm8369_vm9, %v8329_v38, %v8409_v24 }
 0x362   : > { %v8615_v34 = vcombine.low %v8600_v59, %v8607_v61  ;;  %v8102_v14 = vcombine.high %v12256_v32, %v12256_v32  ;;  %v7210_v21 = vcombine.high %v7208_v8, %v7208_v8  ;;  %v7224_v56 = vrot.slane %v7208_v8, %v10509_v15 }
 0x363   : > { %v8583_v10 = vrot.slane %v8576_v2, %v10509_v15  ;;  %v7231_v30 = vrot.slane %v7209_v62, %v10509_v15  ;;  %v7239_v60 = vcombine.high %v7217_v55, %v7217_v55  ;;  %v7397_v58 = vadd.f32 %v7217_v55, %v12094_v31 }
 0x364   : > { %v8622_v12 = vrot.slane %v8615_v34, %v10509_v15  ;;  %v12425_v50 = vrot.slane %v12253_v37, %v10509_v15  ;;  %v7238_v24 = vrot.slane %v7210_v21, %v10509_v15  ;;  %v7240_v49 = vcombine.high %v7224_v56, %v7224_v56 }
 0x365   : > { %v8591_v38 = vcombine.low %v8583_v10, %v8590_v23  ;;  %v7241_v7 = vcombine.high %v7231_v30, %v7231_v30  ;;  %v7398_v6 = vadd.f32 %v7231_v30, %v12111_v48  ;;  %v12824_v22 = vcombine.high %v12094_v31, %v12094_v31 }
 0x366   : > { %v8630_v25 = vcombine.low %v8622_v12, %v8629_v13  ;;  %v7401_v54 = vadd.f32 %v7224_v56, %v12108_v1  ;;  %v7242_v36 = vcombine.high %v7238_v24, %v7238_v24  ;;  %v12825_v0 = vcombine.high %v12111_v48, %v12111_v48 }
 0x367   : > { %v7399_v42 = vadd.f32 %v7239_v60, %v12824_v22  ;;  %v8842_v57 = vsel %vm8834_vm8, %v8591_v38, -inf  ;;  %v7402_v27 = vadd.f32 %v7238_v24, %v12119_v41  ;;  %v12826_v59 = vcombine.high %v12108_v1, %v12108_v1 }
 0x368   : > { %v7400_v17 = vadd.f32 %v7241_v7, %v12825_v0  ;;  %v8843_v39 = vrot.slane %v8842_v57, 4  ;;  %v12439_v23 = vsel %vm8834_vm8, %v8630_v25, -inf  ;;  %v8240_v61 = vadd.f32 %v12209_v45, %v7397_v58 }
 0x369   : > { %v7403_v31 = vadd.f32 %v7240_v49, %v12826_v59  ;;  %v12827_v2 = vcombine.high %v12119_v41, %v12119_v41  ;;  %v8241_v62 = vadd.f32 %v12228_v33, %v7398_v6  ;;  %v12828_v48 = vcombine.high %v12209_v45, %v12209_v45 }
 0x36a   : > { %v12454_v34 = vrot.slane %v12256_v32, %v10509_v15  ;;  %v8850_v13 = vrot.slane %v12439_v23, 4  ;;  %v12829_v1 = vcombine.high %v12228_v33, %v12228_v33  ;;  %v8244_v21 = vadd.f32 %v12217_v52, %v7401_v54 }
 0x36b   : > { %v7404_v8 = vadd.f32 %v7242_v36, %v12827_v2  ;;  %v8242_v55 = vadd.f32 %v12828_v48, %v7399_v42  ;;  %v8245_v41 = vadd.f32 %v12234_v43, %v7402_v27  ;;  %v12830_v56 = vcombine.high %v12217_v52, %v12217_v52 }
 0x36c   : > { %v8243_v10 = vadd.f32 %v12829_v1, %v7400_v17  ;;  %v12831_v45 = vcombine.high %v12234_v43, %v12234_v43  ;;  %v8330_v60 = vadd.f32 %v12042_v18, %v8240_v61  ;;  %v8331_v58 = vadd.f32 %v12071_v44, %v8241_v62 }
 0x36d   : > { %v8246_v30 = vadd.f32 %v12830_v56, %v7403_v31  ;;  %v12470_v38 = vmax.f32 %v8842_v57, %v8843_v39  ;;  %v8332_v33 = vadd.f32 %v12075_v28, %v8242_v55  ;;  %v8334_v49 = vadd.f32 %v12039_v9, %v8244_v21 }
 0x36e   : > { %v8247_v12 = vadd.f32 %v12831_v45, %v7404_v8  ;;  %v8333_v24 = vadd.f32 %v12048_v63, %v8243_v10  ;;  %v8335_v7 = vadd.f32 %v12042_v18, %v8245_v41  ;;  %vm8370_vm15 = vcmp.gt.f32.partialorder %v8330_v60, 0.0 }
 0x36f   : > { %v8336_v52 = vadd.f32 %v12071_v44, %v8246_v30  ;;  %vm8371_vm7 = vcmp.gt.f32.partialorder %v8331_v58, 0.0  ;;  %vm8372_vm10 = vcmp.gt.f32.partialorder %v8332_v33, 0.0  ;;  %vm8374_vm12 = vcmp.gt.f32.partialorder %v8334_v49, 0.0 }
 0x370   : > { %v8337_v25 = vadd.f32 %v12075_v28, %v8247_v12  ;;  %vm8373_vm11 = vcmp.gt.f32.partialorder %v8333_v24, 0.0  ;;  %vm8375_vm13 = vcmp.gt.f32.partialorder %v8335_v7, 0.0  ;;  %v8410_v43 = vmul.f32 0.01, %v8330_v60 }
 0x371   : > { %vm8376_vm6 = vcmp.gt.f32.partialorder %v8336_v52, 0.0  ;;  %v8411_v6 = vmul.f32 0.01, %v8331_v58  ;;  %v8412_v22 = vmul.f32 0.01, %v8332_v33  ;;  %v12482_v54 = vrot.slane %v8101_v53, %v10509_v15 }
 0x372   : > { %vm8377_vm9 = vcmp.gt.f32.partialorder %v8337_v25, 0.0  ;;  %v8413_v42 = vmul.f32 0.01, %v8333_v24  ;;  %v8414_v57 = vmul.f32 0.01, %v8334_v49  ;;  %v8450_v17 = vsel %vm8370_vm15, %v8330_v60, %v8410_v43 }
 0x373   : > { %v8415_v36 = vmul.f32 0.01, %v8335_v7  ;;  %v8416_v0 = vmul.f32 0.01, %v8336_v52  ;;  %v8417_v27 = vmul.f32 0.01, %v8337_v25  ;;  %v8451_v39 = vsel %vm8371_vm7, %v8331_v58, %v8411_v6 }
 0x374   : > { %v8452_v59 = vsel %vm8372_vm10, %v8332_v33, %v8412_v22  ;;  %v8453_v31 = vsel %vm8373_vm11, %v8333_v24, %v8413_v42  ;;  %v8454_v61 = vsel %vm8374_vm12, %v8334_v49, %v8414_v57  ;;  %v8631_v53 = vcombine.low %v12414_v4, %v8450_v17 }
 0x375   : > { %v8455_v2 = vsel %vm8375_vm13, %v8335_v7, %v8415_v36  ;;  %v8456_v37 = vsel %vm8376_vm6, %v8336_v52, %v8416_v0  ;;  %v8457_v8 = vsel %vm8377_vm9, %v8337_v25, %v8417_v27  ;;  %v8632_v62 = vcombine.low %v8451_v39, %v8452_v59 }
 0x376   : > { %v8653_v48 = vrot.slane %v8453_v31, %v10509_v15  ;;  %v8670_v55 = vcombine.low %v8454_v61, %v8455_v2  ;;  %v8639_v1 = vrot.slane %v8631_v53, %v10509_v15  ;;  %v8671_v10 = vcombine.low %v8456_v37, %v8457_v8 }
 0x377   : > { %v8130_v21 = vrot.slane %v8102_v14, %v10509_v15  ;;  %v8131_v41 = vcombine.high %v12425_v50, %v12425_v50  ;;  %v8646_v56 = vrot.slane %v8632_v62, %v10509_v15  ;;  %v8132_v45 = vcombine.high %v12454_v34, %v12454_v34 }
 0x378   : > { %v12503_v4 = vrot.slane %v8653_v48, %v10509_v15  ;;  %v8678_v30 = vrot.slane %v8670_v55, %v10509_v15  ;;  %v8685_v12 = vrot.slane %v8671_v10, %v10509_v15  ;;  %v8133_v60 = vcombine.high %v12482_v54, %v12482_v54 }
 0x379   : > { %v8134_v32 = vcombine.high %v8130_v21, %v8130_v21  ;;  %v7243_v14 = vcombine.high %v12304_v51, %v12304_v51  ;;  %v8654_v58 = vcombine.low %v8639_v1, %v8646_v56  ;;  %v7250_v33 = vrot.slane %v12304_v51, %v10509_v15 }
 0x37a   : > { %v12832_v24 = vcombine.high %v12246_v46, %v12246_v46  ;;  %v8150_v7 = vcombine.high %v12265_v5, %v12265_v5  ;;  %v8693_v52 = vcombine.low %v8678_v30, %v8685_v12  ;;  %v12526_v43 = vrot.slane %v12265_v5, %v10509_v15 }
 0x37b   : > { %v7257_v25 = vrot.slane %v7243_v14, %v10509_v15  ;;  %v7292_v6 = vcombine.high %v12315_v19, %v12315_v19  ;;  %v12531_v51 = vrot.slane %v8654_v58, %v10509_v15  ;;  %v7258_v22 = vcombine.high %v7250_v33, %v7250_v33 }
 0x37c   : > { %v12519_v49 = vrot.slane %v12832_v24, %v10509_v15  ;;  %v7266_v46 = vrot.slane %v7250_v33, %v10509_v15  ;;  %v12538_v0 = vrot.slane %v8693_v52, %v10509_v15  ;;  %v12551_v37 = vrot.slane %v8150_v7, %v10509_v15 }
 0x37d   : > { %v7259_v57 = vcombine.high %v7257_v25, %v7257_v25  ;;  %v7273_v36 = vrot.slane %v7257_v25, %v10509_v15  ;;  %v8669_v17 = vcombine.low %v12531_v51, %v12503_v4  ;;  %v7280_v27 = vrot.slane %v7258_v22, %v10509_v15 }
 0x37e   : > { %v8151_v42 = vcombine.high %v12519_v49, %v12519_v49  ;;  %v12542_v5 = vrot.slane %v12519_v49, %v10509_v15  ;;  %v7288_v39 = vcombine.high %v7266_v46, %v7266_v46  ;;  %v7405_v59 = vadd.f32 %v7266_v46, %v12128_v35 }
 0x37f   : > { %v7287_v31 = vrot.slane %v7259_v57, %v10509_v15  ;;  %v7289_v61 = vcombine.high %v7273_v36, %v7273_v36  ;;  %v7409_v2 = vadd.f32 %v7273_v36, %v12131_v47  ;;  %v7290_v53 = vcombine.high %v7280_v27, %v7280_v27 }
 0x380   : > { %v7406_v8 = vadd.f32 %v7280_v27, %v12134_v20  ;;  %v12833_v62 = vcombine.high %v12128_v35, %v12128_v35  ;;  %v8248_v55 = vadd.f32 %v12425_v50, %v7405_v59  ;;  %v12834_v56 = vcombine.high %v12131_v47, %v12131_v47 }
 0x381   : > { %v7291_v1 = vcombine.high %v7287_v31, %v7287_v31  ;;  %v7410_v10 = vadd.f32 %v7287_v31, %v12144_v3  ;;  %v8252_v12 = vadd.f32 %v12454_v34, %v7409_v2  ;;  %v12835_v14 = vcombine.high %v12134_v20, %v12134_v20 }
 0x382   : > { %v7407_v48 = vadd.f32 %v7288_v39, %v12833_v62  ;;  %v7411_v30 = vadd.f32 %v7289_v61, %v12834_v56  ;;  %v8249_v33 = vadd.f32 %v12482_v54, %v7406_v8  ;;  %v8338_v35 = vadd.f32 %v12048_v63, %v8248_v55 }
 0x383   : > { %v7408_v58 = vadd.f32 %v7290_v53, %v12835_v14  ;;  %v12836_v50 = vcombine.high %v12144_v3, %v12144_v3  ;;  %v8253_v52 = vadd.f32 %v8130_v21, %v7410_v10  ;;  %v8342_v47 = vadd.f32 %v12075_v28, %v8252_v12 }
 0x384   : > { %v8250_v24 = vadd.f32 %v8131_v41, %v7407_v48  ;;  %v8254_v25 = vadd.f32 %v8132_v45, %v7411_v30  ;;  %v8339_v34 = vadd.f32 %v12039_v9, %v8249_v33  ;;  %vm8378_vm15 = vcmp.gt.f32.partialorder %v8338_v35, 0.0 }
 0x385   : > { %v7412_v7 = vadd.f32 %v7291_v1, %v12836_v50  ;;  %v8251_v22 = vadd.f32 %v8133_v60, %v7408_v58  ;;  %v8343_v54 = vadd.f32 %v12048_v63, %v8253_v52  ;;  %vm8382_vm7 = vcmp.gt.f32.partialorder %v8342_v47, 0.0 }
 0x386   : > { %v8340_v46 = vadd.f32 %v12042_v18, %v8250_v24  ;;  %v8344_v41 = vadd.f32 %v12039_v9, %v8254_v25  ;;  %vm8379_vm10 = vcmp.gt.f32.partialorder %v8339_v34, 0.0  ;;  %v8418_v3 = vmul.f32 0.01, %v8338_v35 }
 0x387   : > { %v8255_v20 = vadd.f32 %v8134_v32, %v7412_v7  ;;  %v8341_v57 = vadd.f32 %v12071_v44, %v8251_v22  ;;  %vm8383_vm12 = vcmp.gt.f32.partialorder %v8343_v54, 0.0  ;;  %v8419_v45 = vmul.f32 0.01, %v8339_v34 }
 0x388   : > { %vm8380_vm11 = vcmp.gt.f32.partialorder %v8340_v46, 0.0  ;;  %vm8384_vm13 = vcmp.gt.f32.partialorder %v8344_v41, 0.0  ;;  %v8420_v60 = vmul.f32 0.01, %v8340_v46  ;;  %v8458_v32 = vsel %vm8378_vm15, %v8338_v35, %v8418_v3 }
 0x389   : > { %v8345_v21 = vadd.f32 %v12042_v18, %v8255_v20  ;;  %vm8381_vm6 = vcmp.gt.f32.partialorder %v8341_v57, 0.0  ;;  %v8421_v36 = vmul.f32 0.01, %v8341_v57  ;;  %v8422_v27 = vmul.f32 0.01, %v8342_v47 }
 0x38a   : > { %v8423_v39 = vmul.f32 0.01, %v8343_v54  ;;  %v8459_v59 = vsel %vm8379_vm10, %v8339_v34, %v8419_v45  ;;  %v8424_v31 = vmul.f32 0.01, %v8344_v41  ;;  %v8460_v2 = vsel %vm8380_vm11, %v8340_v46, %v8420_v60 }
 0x38b   : > { %vm8385_vm9 = vcmp.gt.f32.partialorder %v8345_v21, 0.0  ;;  %v8425_v61 = vmul.f32 0.01, %v8345_v21  ;;  %v8461_v53 = vsel %vm8381_vm6, %v8341_v57, %v8421_v36  ;;  %v8462_v8 = vsel %vm8382_vm7, %v8342_v47, %v8422_v27 }
 0x38c   : > { %v8463_v62 = vsel %vm8383_vm12, %v8343_v54, %v8423_v39  ;;  %v8692_v48 = vrot.slane %v8458_v32, %v10509_v15  ;;  %v8709_v55 = vcombine.low %v8459_v59, %v8460_v2  ;;  %v8464_v1 = vsel %vm8384_vm13, %v8344_v41, %v8424_v31 }
 0x38d   : > { %v8465_v10 = vsel %vm8385_vm9, %v8345_v21, %v8425_v61  ;;  %v8710_v56 = vcombine.low %v8461_v53, %v8462_v8  ;;  %v8731_v30 = vrot.slane %v8463_v62, %v10509_v15  ;;  %v8845_v12 = vrot.slane %v12470_v38, 2  ;;  %v12838_v53 = vld [vmem:[#allocation18_spill] sm:$0xff] }
 0x38e   : > { %v8707_v14 = vrot.slane %v8692_v48, %v10509_v15  ;;  %v8748_v58 = vcombine.low %v8464_v1, %v8465_v10  ;;  %v8179_v33 = vrot.slane %v8151_v42, %v10509_v15  ;;  %v8717_v24 = vrot.slane %v8709_v55, %v10509_v15 }
 0x38f   : > { %v8724_v35 = vrot.slane %v8710_v56, %v10509_v15  ;;  %v12594_v50 = vrot.slane %v8731_v30, %v10509_v15  ;;  %v8180_v7 = vcombine.high %v12526_v43, %v12526_v43  ;;  %v8181_v25 = vcombine.high %v12542_v5, %v12542_v5 }
 0x390   : > { %v8708_v52 = vcombine.low %v12538_v0, %v8707_v14  ;;  %v8182_v47 = vcombine.high %v12551_v37, %v12551_v37  ;;  %v7299_v49 = vrot.slane %v12315_v19, %v10509_v15  ;;  %v8183_v22 = vcombine.high %v8179_v33, %v8179_v33 }
 0x391   : > { %v8732_v42 = vcombine.low %v8717_v24, %v8724_v35  ;;  %v7306_v34 = vrot.slane %v7292_v6, %v10509_v15  ;;  %v12612_v0 = vmax.f32 %v12387_v11, %v8838_v40  ;;  %v12619_v41 = vrot.slane %v8748_v58, %v10509_v15 }
 0x392   : > { %v12615_v46 = vsel %vm8834_vm8, %v8708_v52, -inf  ;;  %v7307_v20 = vcombine.high %v7299_v49, %v7299_v49  ;;  %v7315_v54 = vrot.slane %v7299_v49, %v10509_v15  ;;  %v12626_v6 = vmax.f32 %v12470_v38, %v8845_v12 }
 0x393   : > { %v12622_v57 = vrot.slane %v8732_v42, %v10509_v15  ;;  %v7308_v3 = vcombine.high %v7306_v34, %v7306_v34  ;;  %v7322_v19 = vrot.slane %v7306_v34, %v10509_v15  ;;  %v8840_v45 = vrot.slane %v12612_v0, 1 }
 0x394   : > { %v7329_v11 = vrot.slane %v7307_v20, %v10509_v15  ;;  %v7337_v40 = vcombine.high %v7315_v54, %v7315_v54  ;;  %v7413_v21 = vadd.f32 %v7315_v54, %v12138_v26  ;;  %v12837_v38 = vcombine.high %v12138_v26, %v12138_v26 }
 0x395   : > { %v7336_v60 = vrot.slane %v7308_v3, %v10509_v15  ;;  %v7338_v36 = vcombine.high %v7322_v19, %v7322_v19  ;;  %v7417_v32 = vadd.f32 %v7322_v19, %v12151_v29  ;;  %v8747_v27 = vcombine.low %v12622_v57, %v12594_v50 }
 0x396   : > { %v7339_v39 = vcombine.high %v7329_v11, %v7329_v11  ;;  %v7414_v59 = vadd.f32 %v7329_v11, %v12157_v16  ;;  %v7415_v31 = vadd.f32 %v7337_v40, %v12837_v38  ;;  %v8256_v61 = vadd.f32 %v12526_v43, %v7413_v21 }
 0x397   : > { %v7340_v2 = vcombine.high %v7336_v60, %v7336_v60  ;;  %v7418_v8 = vadd.f32 %v7336_v60, %v12838_v53  ;;  %v12839_v62 = vcombine.high %v12151_v29, %v12151_v29  ;;  %v8260_v55 = vadd.f32 %v12542_v5, %v7417_v32 }
 0x398   : > { %v12840_v1 = vcombine.high %v12157_v16, %v12157_v16  ;;  %v8257_v56 = vadd.f32 %v12551_v37, %v7414_v59  ;;  %v8258_v30 = vadd.f32 %v8180_v7, %v7415_v31  ;;  %v8346_v26 = vadd.f32 %v12071_v44, %v8256_v61 }
 0x399   : > { %v7419_v48 = vadd.f32 %v7338_v36, %v12839_v62  ;;  %v12841_v43 = vcombine.high %v12838_v53, %v12838_v53  ;;  %v8261_v14 = vadd.f32 %v8179_v33, %v7418_v8  ;;  %v8350_v29 = vadd.f32 %v12042_v18, %v8260_v55 }
 0x39a   : > { %v7416_v10 = vadd.f32 %v7339_v39, %v12840_v1  ;;  %v8347_v5 = vadd.f32 %v12075_v28, %v8257_v56  ;;  %v8348_v35 = vadd.f32 %v12048_v63, %v8258_v30  ;;  %vm8386_vm15 = vcmp.gt.f32.partialorder %v8346_v26, 0.0 }
 0x39b   : > { %v7420_v12 = vadd.f32 %v7340_v2, %v12841_v43  ;;  %v8262_v58 = vadd.f32 %v8181_v25, %v7419_v48  ;;  %v8351_v37 = vadd.f32 %v12071_v44, %v8261_v14  ;;  %vm8390_vm7 = vcmp.gt.f32.partialorder %v8350_v29, 0.0 }
 0x39c   : > { %v8259_v24 = vadd.f32 %v8182_v47, %v7416_v10  ;;  %vm8387_vm10 = vcmp.gt.f32.partialorder %v8347_v5, 0.0  ;;  %vm8388_vm11 = vcmp.gt.f32.partialorder %v8348_v35, 0.0  ;;  %v8426_v33 = vmul.f32 0.01, %v8346_v26 }
 0x39d   : > { %v8263_v16 = vadd.f32 %v8183_v22, %v7420_v12  ;;  %v8352_v7 = vadd.f32 %v12075_v28, %v8262_v58  ;;  %vm8391_vm12 = vcmp.gt.f32.partialorder %v8351_v37, 0.0  ;;  %v8427_v18 = vmul.f32 0.01, %v8347_v5 }
 0x39e   : > { %v8349_v52 = vadd.f32 %v12039_v9, %v8259_v24  ;;  %v8428_v47 = vmul.f32 0.01, %v8348_v35  ;;  %v8466_v42 = vsel %vm8386_vm15, %v8346_v26, %v8426_v33  ;;  %v8430_v44 = vmul.f32 0.01, %v8350_v29 }
 0x39f   : > { %v8353_v25 = vadd.f32 %v12048_v63, %v8263_v16  ;;  %vm8392_vm13 = vcmp.gt.f32.partialorder %v8352_v7, 0.0  ;;  %v8431_v22 = vmul.f32 0.01, %v8351_v37  ;;  %v8467_v28 = vsel %vm8387_vm10, %v8347_v5, %v8427_v18 }
 0x3a0   : > { %vm8389_vm6 = vcmp.gt.f32.partialorder %v8349_v52, 0.0  ;;  %v8429_v49 = vmul.f32 0.01, %v8349_v52  ;;  %v8432_v34 = vmul.f32 0.01, %v8352_v7  ;;  %v8468_v9 = vsel %vm8388_vm11, %v8348_v35, %v8428_v47 }
 0x3a1   : > { %vm8393_vm9 = vcmp.gt.f32.partialorder %v8353_v25, 0.0  ;;  %v8433_v20 = vmul.f32 0.01, %v8353_v25  ;;  %v8470_v3 = vsel %vm8390_vm7, %v8350_v29, %v8430_v44  ;;  %v8471_v63 = vsel %vm8391_vm12, %v8351_v37, %v8431_v22 }
 0x3a2   : > { %v8469_v54 = vsel %vm8389_vm6, %v8349_v52, %v8429_v49  ;;  %v8749_v19 = vcombine.low %v8466_v42, %v8467_v28  ;;  %v8770_v11 = vrot.slane %v8468_v9, %v10509_v15  ;;  %v8864_v40 = vrot.slane %v12615_v46, 4 }
 0x3a3   : > { %v8472_v21 = vsel %vm8392_vm13, %v8352_v7, %v8432_v34  ;;  %v8473_v60 = vsel %vm8393_vm9, %v8353_v25, %v8433_v20  ;;  %v8787_v36 = vcombine.low %v8469_v54, %v8470_v3  ;;  %v8841_v38 = vmax.f32 %v12612_v0, %v8840_v45 }
 0x3a4   : > { %v8763_v32 = vrot.slane %v8749_v19, %v10509_v15  ;;  %v8788_v39 = vcombine.low %v8471_v63, %v8472_v21  ;;  %v8809_v59 = vrot.slane %v8473_v60, %v10509_v15  ;;  %v8847_v61 = vrot.slane %v12626_v6, 1  ;;  %v12842_v21 = vld [vmem:[#allocation17_spill] sm:$0xff]  ;;  %v12843_v60 = vld [vmem:[#allocation16_spill] sm:$0xff] }
 0x3a5   : > { %v8795_v31 = vrot.slane %v8787_v36, %v10509_v15  ;;  %v8851_v2 = vmax.f32 %v12439_v23, %v8850_v13  ;;  %v8856_v53 = vsel %vm8834_vm8, %v8669_v17, -inf  ;;  %v8785_v62 = vrot.slane %v8770_v11, %v10509_v15 }
 0x3a6   : > { %v8771_v8 = vcombine.low %v12619_v41, %v8763_v32  ;;  %v8802_v48 = vrot.slane %v8788_v39, %v10509_v15  ;;  %v8857_v0 = vrot.slane %v8856_v53, 4  ;;  %v8848_v45 = vmax.f32 %v12626_v6, %v8847_v61  ;;  %v9389_v39 = vld [vmem:[%s12749_s8] ss:$0 sm:$0xff] }
 0x3a7   : > { %v8852_v55 = vrot.slane %v8851_v2, 2  ;;  %v8865_v1 = vmax.f32 %v12615_v46, %v8864_v40  ;;  %v8870_v23 = vsel %vm8834_vm8, %v8747_v27, -inf  ;;  %v8824_v41 = vrot.slane %v8809_v59, %v10509_v15 }
 0x3a8   : > { %v8778_v13 = vrot.slane %v8771_v8, %v10509_v15  ;;  %v8810_v4 = vcombine.low %v8795_v31, %v8802_v48  ;;  %v8858_v51 = vmax.f32 %v8856_v53, %v8857_v0  ;;  %v8871_v17 = vrot.slane %v8870_v23, 4 }
 0x3a9   : > { %v8853_v10 = vmax.f32 %v8851_v2, %v8852_v55  ;;  %v8866_v56 = vrot.slane %v8865_v1, 2  ;;  %v8915_v30 = vsel %vm5107_vm0, %v8848_v45, %v8841_v38  ;;  %v5275_v36 = vadd.f32 %v12843_v60, %v12842_v21 }
 0x3aa   : > { %v8786_v6 = vcombine.low %v8778_v13, %v8785_v62  ;;  %v8817_v26 = vrot.slane %v8810_v4, %v10509_v15  ;;  %v8859_v46 = vrot.slane %v8858_v51, 2  ;;  %v8872_v43 = vmax.f32 %v8870_v23, %v8871_v17 }
 0x3ab   : > { %v8854_v12 = vrot.slane %v8853_v10, 1  ;;  %v8867_v50 = vmax.f32 %v8865_v1, %v8866_v56 }
 0x3ac   : > { %v8825_v57 = vcombine.low %v8817_v26, %v8824_v41  ;;  %v8860_v27 = vmax.f32 %v8858_v51, %v8859_v46  ;;  %v8873_v14 = vrot.slane %v8872_v43, 2  ;;  %v8877_v58 = vsel %vm8834_vm8, %v8786_v6, -inf }
 0x3ad   : > { %v8855_v29 = vmax.f32 %v8853_v10, %v8854_v12  ;;  %v8868_v24 = vrot.slane %v8867_v50, 1  ;;  %v8878_v5 = vrot.slane %v8877_v58, 4 }
 0x3ae   : > { %v8861_v35 = vrot.slane %v8860_v27, 1  ;;  %v8874_v16 = vmax.f32 %v8872_v43, %v8873_v14  ;;  %v8884_v37 = vsel %vm8834_vm8, %v8825_v57, -inf }
 0x3af   : > { %v8869_v7 = vmax.f32 %v8867_v50, %v8868_v24  ;;  %v8879_v52 = vmax.f32 %v8877_v58, %v8878_v5  ;;  %v8885_v33 = vrot.slane %v8884_v37, 4  ;;  %v8916_v15 = vsel %vm5109_vm1, %v8855_v29, %v8915_v30 }
 0x3b0   : > { %v8862_v25 = vmax.f32 %v8860_v27, %v8861_v35  ;;  %v8875_v18 = vrot.slane %v8874_v16, 1 }
 0x3b1   : > { %v8880_v47 = vrot.slane %v8879_v52, 2  ;;  %v8886_v49 = vmax.f32 %v8884_v37, %v8885_v33 }
 0x3b2   : > { %v8876_v42 = vmax.f32 %v8874_v16, %v8875_v18  ;;  %v8917_v44 = vsel %vm5111_vm2, %v8862_v25, %v8916_v15 }
 0x3b3   : > { %v8881_v22 = vmax.f32 %v8879_v52, %v8880_v47  ;;  %v8887_v28 = vrot.slane %v8886_v49, 2  ;;  %v8918_v34 = vsel %vm5113_vm3, %v8869_v7, %v8917_v44 }
 0x3b4   : > { %v8919_v20 = vsel %vm5115_vm4, %v8876_v42, %v8918_v34 }
 0x3b5   : > { %v8882_v9 = vrot.slane %v8881_v22, 1  ;;  %v8888_v54 = vmax.f32 %v8886_v49, %v8887_v28 }
 0x3b7   : > { %v8883_v3 = vmax.f32 %v8881_v22, %v8882_v9  ;;  %v8889_v63 = vrot.slane %v8888_v54, 1 }
 0x3b9   : > { %v8890_v19 = vmax.f32 %v8888_v54, %v8889_v63  ;;  %v8920_v11 = vsel %vm5117_vm14, %v8883_v3, %v8919_v20 }
 0x3bb   : > { %v8921_v40 = vsel %vm5119_vm5, %v8890_v19, %v8920_v11 }
 0x3bc   : > { %9894 = vmatmul.mubr.f32.vlgmr.msra.gmra.mxu1 %v8921_v40 }
 0x47c   : > { %v8989_v32 = vpop.f32.mrf.mxu1 }
 0x47d   : > { %v8993_v59 = vadd.f32 %v8989_v32, %v5275_v36 }
 0x47e   : > { %v9895_v38 = vpop.f32.mrf.mxu1 }
 0x47f   : > { %v9001_v31 = vadd.f32 %v9389_v39, %v8993_v59 }
 0x481   : > { %9002 = vst [vmem:[%s408_s14] sm:$0xff] %v9001_v31 }
 0x482   : > { %10208 = shalt.err (!%p10205_p5)
}
 0x483   : > { %s10209_s25 = scalar_lea.hbm %s9015_s15, 128  ;;  %s10213_s20 = scalar_lea.hbm %s12750_s9, 256 }
 0x484   : > { %p10210_p6 = scmp.ne.s32.totalorder %s9015_s15, %s10209_s25  ;;  %p10214_p13 = scmp.lt.s32.totalorder %s9015_s15, %s12750_s9 }
 0x485   : > { %p10215_p2 = scmp.lt.s32.totalorder %s10213_s20, %s10209_s25 }
 0x486   : > { %p10211_p4 = pnand %p10210_p6, %p12844_p12 }
 0x487   : > { %p10216_p3 = por %p10215_p2, %p10214_p13 }
 0x488   : > { %p10212_p8 = pneg %p10211_p4 }
 0x48a   : > { %p10217_p10 = pnand %p10216_p3, %p10212_p8 }
 0x48c   : > { %10220 = shalt.err (!%p10217_p10)
}
 0x48d   : > { %9914 = dma.vmem_to_hbm [thread:$0]  (%p12844_p12), %s9018_s5, 128, %s9015_s15, %s9004_s17  }
 0x48e PF: > { %s9029_s14 = sand.u32 1, %s10255_s30   ;;  %p12845_p7 = scmp.ne.s32.totalorder %s12768_s16, 0 }
 0x48f   : > { %p12846_p1 = scmp.ge.s32.totalorder %s10267_s12, 2  ;;  %s9030_s18 = scalar_lea.sflag [#allocation4], %s9029_s14 }
 0x491   : > { %p9934_p9 = pnand %p12846_p1, %p12845_p7 }
 0x493   : > { %p9935_p0 = pneg %p9934_p9 }
 0x495   : > { %10250 = dma.done.wait (%p9935_p0), %s9030_s18, 128  }
 0x496   : > { %10252 = vsyncadd (%p9935_p0), %s9030_s18, 4294967168  ;;  %p24_p11 = scmp.ge.s32.totalorder %s10430_s19, 4   ;;  %s12847_s30 = smov %s10259_s10 }
 0x497   : > { %s12848_s10 = smov %s10263_s11  ;;  %s12849_s11 = smov %s10439_s22 }
 0x498   : > { %s12850_s12 = smov %s10430_s19  ;;  %26 = sbr.rel (!%p24_p11) target bundleno = 11 (0xb), region = 117 }
 0x49d   :  { %9035 = vsyncpa [#allocation3], 1 }
 0x49e   :  { %9037 = vsyncpa [#allocation3 + $0x1], 1 }
 0x49f   :  { %9038 = vsyncpa [#allocation6], 1 }
 0x4a0   :  { %9039 = vsyncpa [#allocation9], 1 }
 0x4a1   :  { %9040 = vsyncpa [#allocation4], 1 }
 0x4a2   :  { %9042 = vsyncpa [#allocation4 + $0x1], 1 }

</bundles_post_ra>
